<compile_context>
chip_gen: v5e
topology: v5e:2x2
jax: 0.10.0
libtpu: 0.0.40
codegen_flags: <defaults>
</compile_context>

<pallas_src>
import math

import jax
import jax.numpy as jnp
from jax.experimental import pallas as pl
from jax.experimental.pallas import tpu as pltpu


def _make_se_kernel(hw_total):
    """Builds the kernel, closing over the static full spatial size H*W."""

    def kernel(x_ref, w1_ref, w2_ref, o_ref, acc_ref):
        # x_ref : (TB, C, THW)   input dtype (bf16 or f32)
        # w1_ref: (C, HIDDEN)    f32 (fc1 weight, transposed vs. torch)
        # w2_ref: (HIDDEN, OUT)  f32 (fc2 weight, transposed vs. torch)
        # o_ref : (TB, OUT)      f32
        # acc_ref: (TB, C)       f32 running spatial sum (VMEM scratch)
        s = pl.program_id(1)                      # spatial (reduction) step
        tb, c, thw = x_ref.shape

        @pl.when(s == 0)
        def _init():
            acc_ref[...] = jnp.zeros_like(acc_ref)

        # Upcast in-register (free under the DMA; required on v5e which has no
        # bf16 VPU) and accumulate the spatial partial sum in f32.
        xf = x_ref[...].astype(jnp.float32)       # (TB, C, THW)
        if hw_total % thw != 0:
            # Partial last tile: mask out-of-range spatial positions.  Static
            # Python branch, so aligned configs pay nothing for it.
            lane_idx = jax.lax.broadcasted_iota(jnp.int32, xf.shape, dimension=2)
            valid = (s * thw + lane_idx) < hw_total
            xf = jnp.where(valid, xf, 0.0)
        acc_ref[...] += jnp.sum(xf, axis=-1)      # (TB, C)

        # Epilogue: tiny fc1/ReLU/fc2/softmax, only on the last spatial step.
        @pl.when(s == pl.num_programs(1) - 1)
        def _finalize():
            pooled = acc_ref[...] * jnp.float32(1.0 / hw_total)   # mean over full H*W
            h = jnp.dot(pooled, w1_ref[...],
                        preferred_element_type=jnp.float32)       # (TB, HIDDEN)
            h = jnp.maximum(h, 0.0)
            logits = jnp.dot(h, w2_ref[...],
                             preferred_element_type=jnp.float32)  # (TB, OUT)
            # Softmax over the output-channel axis (dim=1 in torch terms).
            m = jnp.max(logits, axis=-1, keepdims=True)
            e = jnp.exp(logits - m)
            denom = jnp.sum(e, axis=-1, keepdims=True)
            o_ref[...] = (e * pl.reciprocal(denom, approx=True)).astype(o_ref.dtype)

    return kernel


def _pick_spatial_tile(hw, bytes_per_elem, tb, c, budget_bytes=4 * 1024 * 1024):
    """Spatial tile: full HW if it fits the budget, else a 128-multiple tile
    keeping one x block <= ~4 MiB (double-buffered <= ~8 MiB: safe on v7x)."""
    max_elems = max(128, budget_bytes // (bytes_per_elem * tb * c))
    if hw <= max_elems:
        return hw                       # full dim is always a legal block dim
    return (max_elems // 128) * 128     # multiple of 128 -> legal block dim


def se_layer(x, w1, w2):
    """x: (B, C, H, W) (bf16 or f32); w1: (HIDDEN, C); w2: (OUT, HIDDEN) in
    torch Linear layout.  Returns (B, OUT, 1, 1) float32 softmax gates."""
    b, c, h, w = x.shape
    hidden, c_in = w1.shape
    out_ch, hidden2 = w2.shape
    assert c_in == c and hidden2 == hidden
    hw = h * w

    # Metadata-only reshape (contiguous NCHW): no extra HBM pass, and x keeps
    # its input dtype so bf16 inputs halve the DMA bytes.
    x_flat = x.reshape(b, c, hw)
    w1_t = jnp.transpose(w1).astype(jnp.float32)   # (C, HIDDEN)
    w2_t = jnp.transpose(w2).astype(jnp.float32)   # (HIDDEN, OUT)

    tb = math.gcd(b, 8)                            # batch tile (divides B)
    thw = _pick_spatial_tile(hw, x_flat.dtype.itemsize, tb, c)
    grid = (b // tb, pl.cdiv(hw, thw))             # reduction axis last

    flops = (2 * b * c * hw            # masked spatial reduce
             + 2 * b * c * hidden      # fc1
             + 2 * b * hidden * out_ch # fc2
             + 8 * b * out_ch)         # softmax-ish
    bytes_accessed = (x_flat.size * x_flat.dtype.itemsize
                      + w1_t.size * 4 + w2_t.size * 4 + b * out_ch * 4)

    y = pl.pallas_call(
        _make_se_kernel(hw),
        out_shape=jax.ShapeDtypeStruct((b, out_ch), jnp.float32),
        grid_spec=pltpu.PrefetchScalarGridSpec(
            num_scalar_prefetch=0,
            grid=grid,
            in_specs=[
                # Streaming x tiles (double-buffered by the Pallas pipeline).
                pl.BlockSpec((tb, c, thw), lambda bi, si: (bi, 0, si)),
                # Weights: constant block index -> resident, no re-DMA.
                pl.BlockSpec((c, hidden), lambda bi, si: (0, 0)),
                pl.BlockSpec((hidden, out_ch), lambda bi, si: (0, 0)),
            ],
            # Output block constant across the spatial axis -> accumulator
            # pattern; written only on the last spatial step.
            out_specs=pl.BlockSpec((tb, out_ch), lambda bi, si: (bi, 0)),
            scratch_shapes=[pltpu.VMEM((tb, c), jnp.float32)],
        ),
        compiler_params=pltpu.CompilerParams(
            dimension_semantics=("parallel", "arbitrary"),
            vmem_limit_bytes=32 * 1024 * 1024,
        ),
        cost_estimate=pl.CostEstimate(
            flops=flops,
            transcendentals=b * out_ch,
            bytes_accessed=bytes_accessed,
        ),
    )(x_flat, w1_t, w2_t)

    # .view(b, -1, 1, 1)
    return y.reshape(b, out_ch, 1, 1)


def se_layer_ref(x, w1, w2):
    """Pure-JAX reference (same math as the PyTorch module)."""
    b = x.shape[0]
    pooled = jnp.mean(x.astype(jnp.float32), axis=(2, 3))           # (B, C)
    h = jnp.maximum(pooled @ jnp.transpose(w1).astype(jnp.float32), 0.0)
    logits = h @ jnp.transpose(w2).astype(jnp.float32)
    return jax.nn.softmax(logits, axis=-1).reshape(b, -1, 1, 1)


def _c2_xavier_fill(key, out_features, in_features):
    # c2_xavier_fill: kaiming_uniform with a=1 -> uniform(-bound, bound),
    # bound = sqrt(6 / ((1 + a^2) * fan_in)) = sqrt(3 / fan_in).  No bias here.
    bound = math.sqrt(3.0 / in_features)
    return jax.random.uniform(
        key, (out_features, in_features), minval=-bound, maxval=bound,
        dtype=jnp.float32)


if __name__ == "__main__":
    in_channel = 512
    reduction = 16
    output_channel = 2
    hidden = in_channel // reduction  # 32

    batch, spatial = 2, 8             # HW = 64

    key = jax.random.PRNGKey(0)
    kx, k1, k2 = jax.random.split(key, 3)

    # bf16 input: halves HBM traffic on x (the kernel's entire cost).
    x = jax.random.normal(kx, (batch, in_channel, spatial, spatial),
                          dtype=jnp.bfloat16)
    w1 = _c2_xavier_fill(k1, hidden, in_channel)      # torch Linear (out, in)
    w2 = _c2_xavier_fill(k2, output_channel, hidden)  # torch Linear (out, in)

    y = se_layer(x, w1, w2)
    jax.block_until_ready(y)

    # Sanity: shape, softmax normalization, and match vs. pure-JAX reference
    # (loose tolerance: bf16 input + approx reciprocal in the softmax).
    assert y.shape == (batch, output_channel, 1, 1)
    sums = jnp.sum(y, axis=1).reshape(-1)
    assert bool(jnp.all(jnp.abs(sums - 1.0) < 5e-3))
    y_ref = se_layer_ref(x, w1, w2)
    assert bool(jnp.allclose(y, y_ref, atol=1e-2, rtol=0.0))

    print("KERNEL_OK")
</pallas_src>

<mosaic_0001>
module attributes {stable_mosaic.version = 11 : i64} {
  func.func @kernel(%arg0: i32, %arg1: i32, %arg2: memref<2x512x64xbf16, #tpu.memory_space<vmem>>, %arg3: memref<512x32xf32, #tpu.memory_space<vmem>>, %arg4: memref<32x2xf32, #tpu.memory_space<vmem>>, %arg5: memref<2x2xf32, #tpu.memory_space<vmem>>, %arg6: memref<2x512xf32, #tpu.memory_space<vmem>>) attributes {dimension_semantics = [#tpu.dimension_semantics<parallel>, #tpu.dimension_semantics<arbitrary>], iteration_bounds = array<i64: 1, 1>, scalar_prefetch = 0 : i64, scratch_operands = 1 : i64, tpu.core_type = #tpu.core_type<tc>, window_params = [{transform_indices = @transform_0, window_bounds = array<i64: 2, 512, 64>}, {pipeline_mode = #tpu.pipeline_mode<synchronous>, transform_indices = @transform_1, window_bounds = array<i64: 512, 32>}, {pipeline_mode = #tpu.pipeline_mode<synchronous>, transform_indices = @transform_2, window_bounds = array<i64: 32, 2>}, {transform_indices = @transform_3, window_bounds = array<i64: 2, 2>}]} {
    %c0_i32 = arith.constant 0 : i32
    %0 = arith.cmpi eq, %arg1, %c0_i32 : i32
    %1 = arith.extui %0 : i1 to i32
    %c0_i32_0 = arith.constant 0 : i32
    %2 = arith.cmpi ne, %1, %c0_i32_0 : i32
    scf.if %2 {
      %cst_9 = arith.constant 0.000000e+00 : f32
      %12 = vector.broadcast %cst_9 : f32 to vector<2x512xf32>
      %c0_10 = arith.constant 0 : index
      %c0_11 = arith.constant 0 : index
      %13 = vector.load %arg6[%c0_10, %c0_11] : memref<2x512xf32, #tpu.memory_space<vmem>>, vector<2x512xf32>
      tpu.vector_store %arg6[%c0_10, %c0_11], %12 {strides = array<i32>} : memref<2x512xf32, #tpu.memory_space<vmem>>, vector<2x512xf32>,
    } else {
    }
    %c0 = arith.constant 0 : index
    %c0_1 = arith.constant 0 : index
    %c0_2 = arith.constant 0 : index
    %3 = vector.load %arg2[%c0, %c0_1, %c0_2] : memref<2x512x64xbf16, #tpu.memory_space<vmem>>, vector<2x512x64xbf16>
    %4 = arith.extf %3 : vector<2x512x64xbf16> to vector<2x512x64xf32>
    %c0_3 = arith.constant 0 : index
    %c0_4 = arith.constant 0 : index
    %5 = vector.load %arg6[%c0_3, %c0_4] : memref<2x512xf32, #tpu.memory_space<vmem>>, vector<2x512xf32>
    %cst = arith.constant dense<0.000000e+00> : vector<2x512xf32>
    %6 = vector.multi_reduction <add>, %4, %cst [2] : vector<2x512x64xf32> to vector<2x512xf32>
    %7 = arith.addf %5, %6 : vector<2x512xf32>
    %c0_5 = arith.constant 0 : index
    %c0_6 = arith.constant 0 : index
    %8 = vector.load %arg6[%c0_5, %c0_6] : memref<2x512xf32, #tpu.memory_space<vmem>>, vector<2x512xf32>
    tpu.vector_store %arg6[%c0_5, %c0_6], %7 {strides = array<i32>} : memref<2x512xf32, #tpu.memory_space<vmem>>, vector<2x512xf32>,
    %c0_i32_7 = arith.constant 0 : i32
    %9 = arith.cmpi eq, %arg1, %c0_i32_7 : i32
    %10 = arith.extui %9 : i1 to i32
    %c0_i32_8 = arith.constant 0 : i32
    %11 = arith.cmpi ne, %10, %c0_i32_8 : i32
    scf.if %11 {
      %c0_9 = arith.constant 0 : index
      %c0_10 = arith.constant 0 : index
      %12 = vector.load %arg6[%c0_9, %c0_10] : memref<2x512xf32, #tpu.memory_space<vmem>>, vector<2x512xf32>
      %cst_11 = arith.constant 1.562500e-02 : f32
      %13 = vector.broadcast %cst_11 : f32 to vector<2x512xf32>
      %14 = arith.mulf %12, %13 : vector<2x512xf32>
      %c0_12 = arith.constant 0 : index
      %c0_13 = arith.constant 0 : index
      %15 = vector.load %arg3[%c0_12, %c0_13] : memref<512x32xf32, #tpu.memory_space<vmem>>, vector<512x32xf32>
      %cst_14 = arith.constant dense<0.000000e+00> : vector<2x32xf32>
      %16 = tpu.matmul %14, %15, %cst_14 {dimension_numbers = #tpu.dot_dimension_numbers<[1], [0], [0], [1], [0, 0, 1, 1], [], []>} : vector<2x512xf32>, vector<512x32xf32>, vector<2x32xf32> -> vector<2x32xf32>
      %cst_15 = arith.constant 0.000000e+00 : f32
      %17 = vector.broadcast %cst_15 : f32 to vector<2x32xf32>
      %18 = arith.maximumf %16, %17 : vector<2x32xf32>
      %c0_16 = arith.constant 0 : index
      %c0_17 = arith.constant 0 : index
      %19 = vector.load %arg4[%c0_16, %c0_17] : memref<32x2xf32, #tpu.memory_space<vmem>>, vector<32x2xf32>
      %cst_18 = arith.constant dense<0.000000e+00> : vector<2x2xf32>
      %20 = tpu.matmul %18, %19, %cst_18 {dimension_numbers = #tpu.dot_dimension_numbers<[1], [0], [0], [1], [0, 0, 1, 1], [], []>} : vector<2x32xf32>, vector<32x2xf32>, vector<2x2xf32> -> vector<2x2xf32>
      %cst_19 = arith.constant dense<0xFF800000> : vector<2xf32>
      %21 = vector.multi_reduction <maximumf>, %20, %cst_19 [1] : vector<2x2xf32> to vector<2xf32>
      %22 = vector.shape_cast %21 : vector<2xf32> to vector<2x1xf32>
      %23 = vector.broadcast %22 : vector<2x1xf32> to vector<2x2xf32>
      %24 = arith.subf %20, %23 : vector<2x2xf32>
      %25 = math.exp %24 : vector<2x2xf32>
      %cst_20 = arith.constant dense<0.000000e+00> : vector<2xf32>
      %26 = vector.multi_reduction <add>, %25, %cst_20 [1] : vector<2x2xf32> to vector<2xf32>
      %27 = vector.shape_cast %26 : vector<2xf32> to vector<2x1xf32>
      %28 = tpu.reciprocal %27 {approx = true} : vector<2x1xf32> -> vector<2x1xf32>
      %29 = vector.broadcast %28 : vector<2x1xf32> to vector<2x2xf32>
      %30 = arith.mulf %25, %29 : vector<2x2xf32>
      %c0_21 = arith.constant 0 : index
      %c0_22 = arith.constant 0 : index
      %31 = vector.load %arg5[%c0_21, %c0_22] : memref<2x2xf32, #tpu.memory_space<vmem>>, vector<2x2xf32>
      tpu.vector_store %arg5[%c0_21, %c0_22], %30 {strides = array<i32>} : memref<2x2xf32, #tpu.memory_space<vmem>>, vector<2x2xf32>,
    } else {
    }
    return
  }
  func.func @transform_0(%arg0: i32, %arg1: i32) -> (i32, i32, i32) {
    %c0_i32 = arith.constant 0 : i32
    %c0_i32_0 = arith.constant 0 : i32
    return %arg0, %c0_i32, %arg1 : i32, i32, i32
  }
  func.func @transform_1(%arg0: i32, %arg1: i32) -> (i32, i32) {
    %c0_i32 = arith.constant 0 : i32
    %c0_i32_0 = arith.constant 0 : i32
    %c0_i32_1 = arith.constant 0 : i32
    return %c0_i32, %c0_i32_0 : i32, i32
  }
  func.func @transform_2(%arg0: i32, %arg1: i32) -> (i32, i32) {
    %c0_i32 = arith.constant 0 : i32
    %c0_i32_0 = arith.constant 0 : i32
    %c0_i32_1 = arith.constant 0 : i32
    return %c0_i32, %c0_i32_0 : i32, i32
  }
  func.func @transform_3(%arg0: i32, %arg1: i32) -> (i32, i32) {
    %c0_i32 = arith.constant 0 : i32
    %c0_i32_0 = arith.constant 0 : i32
    return %arg0, %c0_i32 : i32, i32
  }
}

</mosaic_0001>

<bundles_post_ra>
// kernel: tpu_custom_call.1
= control target key start
LH: loop header
LB: loop body
LE: loop exit
PB: predicated region body
PF: predicated region fallthrough
CT: control target
= control target key end

     0   :  { %vm277_vm0 = vcmask 523264   ;;  %s7107_s0 = inlined_call_operand.vmem [shape: bf16[2,512,64], index: 0, kind: input, shape index: {}]   ;;  %s7108_s1 = inlined_call_operand.vmem [shape: f32[512,32], index: 1, kind: input, shape index: {}]   ;;  %s7109_s2 = inlined_call_operand.vmem [shape: f32[32,2], index: 2, kind: input, shape index: {}]   ;;  %s7110_s3 = inlined_call_operand.hbm [shape: f32[2,2], index: 3, kind: output, shape index: {}]  }
   0x1   :  { %v4641_v0 = vld [vmem:[%s7107_s0 + $0x10] sm:$0xff]   ;;  %v4640_v1 = vld [vmem:[%s7107_s0 + $0x8] sm:$0xff]   ;;  %v4385_v2 = vld [vmem:[%s7107_s0] sm:$0xff]  }
   0x2   :  { %v4394_v3 = vunpack.c.l.bf16 %v4641_v0  ;;  %v4390_v4 = vunpack.c.l.bf16 %v4640_v1  ;;  %v4386_v5 = vunpack.c.l.bf16 %v4385_v2 }
   0x3   :  { %8 = vsyncpa [#allocation4], 0  ;;  %v4395_v9 = vunpack.c.h.bf16 %v4641_v0  ;;  %v4391_v10 = vunpack.c.h.bf16 %v4640_v1  ;;  %v4387_v11 = vunpack.c.h.bf16 %v4385_v2  ;;  %v4643_v15 = vld [vmem:[%s7107_s0 + $0x20] sm:$0xff]   ;;  %v4642_v16 = vld [vmem:[%s7107_s0 + $0x18] sm:$0xff]   ;;  %vm3874_vm1 = vcmask 130112   ;;  %s4374_s30 = sshll.u32 %s7110_s3, 4  ;;  %s4375_s30 = int_to_ptr.hbm [resolvable:$true] %s4374_s30 }
   0x4   :  { %v290_v6 = vsel %vm277_vm0, %v4394_v3, 0.0  ;;  %v284_v7 = vsel %vm277_vm0, %v4390_v4, 0.0  ;;  %v278_v8 = vsel %vm277_vm0, %v4386_v5, 0.0  ;;  %v4402_v17 = vunpack.c.l.bf16 %v4643_v15  ;;  %v4644_v23 = vld [vmem:[%s7107_s0 + $0x28] sm:$0xff]   ;;  %v4646_v30 = vld [vmem:[%s7107_s0 + $0x38] sm:$0xff]   ;;  %v4645_v31 = vld [vmem:[%s7107_s0 + $0x30] sm:$0xff]  }
   0x5   :  { %291 = vadd.xlane.f32.xlu2 %v290_v6  ;;  %285 = vadd.xlane.f32.xlu1 %v284_v7  ;;  %v293_v12 = vsel %vm277_vm0, %v4395_v9, 0.0  ;;  %v287_v13 = vsel %vm277_vm0, %v4391_v10, 0.0  ;;  %v281_v14 = vsel %vm277_vm0, %v4387_v11, 0.0  ;;  %v4399_v18 = vunpack.c.h.bf16 %v4642_v16  ;;  %v4647_v38 = vld [vmem:[%s7107_s0 + $0x40] sm:$0xff]   ;;  %v4649_v45 = vld [vmem:[%s7107_s0 + $0x50] sm:$0xff]   ;;  %v4648_v46 = vld [vmem:[%s7107_s0 + $0x48] sm:$0xff]  }
   0x6   :  { %279 = vadd.xlane.f32.xlu0 %v278_v8  ;;  %v4398_v19 = vunpack.c.l.bf16 %v4642_v16  ;;  %v302_v20 = vsel %vm277_vm0, %v4402_v17, 0.0  ;;  %v4407_v24 = vunpack.c.h.bf16 %v4644_v23  ;;  %v4406_v25 = vunpack.c.l.bf16 %v4644_v23  ;;  %v4650_v53 = vld [vmem:[%s7107_s0 + $0x58] sm:$0xff]   ;;  %v4652_v60 = vld [vmem:[%s7107_s0 + $0x68] sm:$0xff]   ;;  %v4651_v61 = vld [vmem:[%s7107_s0 + $0x60] sm:$0xff]  }
   0x7   :  { %v299_v21 = vsel %vm277_vm0, %v4399_v18, 0.0  ;;  %v4403_v26 = vunpack.c.h.bf16 %v4643_v15  ;;  %v4414_v32 = vunpack.c.l.bf16 %v4646_v30  ;;  %v4411_v33 = vunpack.c.h.bf16 %v4645_v31  ;;  %v4653_v4 = vld [vmem:[%s7107_s0 + $0x70] sm:$0xff]   ;;  %v4655_v11 = vld [vmem:[%s7107_s0 + $0x80] sm:$0xff]  }
   0x8   :  { %v296_v22 = vsel %vm277_vm0, %v4398_v19, 0.0  ;;  %v311_v27 = vsel %vm277_vm0, %v4407_v24, 0.0  ;;  %v308_v28 = vsel %vm277_vm0, %v4406_v25, 0.0  ;;  %v4410_v34 = vunpack.c.l.bf16 %v4645_v31  ;;  %v4656_v19 = vld [vmem:[%s7107_s0 + $0x88] sm:$0xff]  }
   0x9   :  { %v305_v29 = vsel %vm277_vm0, %v4403_v26, 0.0  ;;  %v320_v35 = vsel %vm277_vm0, %v4414_v32, 0.0  ;;  %v317_v36 = vsel %vm277_vm0, %v4411_v33, 0.0  ;;  %v4419_v39 = vunpack.c.h.bf16 %v4647_v38  ;;  %v4658_v26 = vld [vmem:[%s7107_s0 + $0x98] sm:$0xff]  }
   0xa   :  { %v314_v37 = vsel %vm277_vm0, %v4410_v34, 0.0  ;;  %v4418_v40 = vunpack.c.l.bf16 %v4647_v38  ;;  %v4415_v41 = vunpack.c.h.bf16 %v4646_v30  ;;  %v4426_v47 = vunpack.c.l.bf16 %v4649_v45  ;;  %v4659_v34 = vld [vmem:[%s7107_s0 + $0xa0] sm:$0xff]  }
   0xb   :  { %v329_v42 = vsel %vm277_vm0, %v4419_v39, 0.0  ;;  %v4423_v48 = vunpack.c.h.bf16 %v4648_v46  ;;  %v4422_v49 = vunpack.c.l.bf16 %v4648_v46  ;;  %v4431_v54 = vunpack.c.h.bf16 %v4650_v53 }
   0xc   :  { %v326_v43 = vsel %vm277_vm0, %v4418_v40, 0.0  ;;  %v323_v44 = vsel %vm277_vm0, %v4415_v41, 0.0  ;;  %v338_v50 = vsel %vm277_vm0, %v4426_v47, 0.0  ;;  %v4430_v55 = vunpack.c.l.bf16 %v4650_v53  ;;  %v4661_v40 = vld [vmem:[%s7107_s0 + $0xb0] sm:$0xff]  }
   0xd   :  { %294 = vadd.xlane.f32.xlu2 %v293_v12  ;;  %288 = vadd.xlane.f32.xlu1 %v287_v13  ;;  %v335_v51 = vsel %vm277_vm0, %v4423_v48, 0.0  ;;  %v332_v52 = vsel %vm277_vm0, %v4422_v49, 0.0  ;;  %v4427_v56 = vunpack.c.h.bf16 %v4649_v45  ;;  %v347_v57 = vsel %vm277_vm0, %v4431_v54, 0.0  ;;  %v4654_v12 = vld [vmem:[%s7107_s0 + $0x78] sm:$0xff]  }
   0xe   :  { %282 = vadd.xlane.f32.xlu0 %v281_v14  ;;  %v344_v58 = vsel %vm277_vm0, %v4430_v55, 0.0  ;;  %v4438_v62 = vunpack.c.l.bf16 %v4652_v60  ;;  %v4435_v63 = vunpack.c.h.bf16 %v4651_v61  ;;  %v4434_v0 = vunpack.c.l.bf16 %v4651_v61  ;;  %v4662_v54 = vld [vmem:[%s7107_s0 + $0xb8] sm:$0xff]  }
   0xf   :  { %v341_v59 = vsel %vm277_vm0, %v4427_v56, 0.0  ;;  %v4443_v5 = vunpack.c.h.bf16 %v4653_v4  ;;  %v4442_v6 = vunpack.c.l.bf16 %v4653_v4  ;;  %v4439_v7 = vunpack.c.h.bf16 %v4652_v60 }
  0x10   :  { %v356_v1 = vsel %vm277_vm0, %v4438_v62, 0.0  ;;  %v353_v2 = vsel %vm277_vm0, %v4435_v63, 0.0  ;;  %v350_v3 = vsel %vm277_vm0, %v4434_v0, 0.0  ;;  %v4450_v13 = vunpack.c.l.bf16 %v4655_v11 }
  0x11   :  { %v365_v8 = vsel %vm277_vm0, %v4443_v5, 0.0  ;;  %v362_v9 = vsel %vm277_vm0, %v4442_v6, 0.0  ;;  %v359_v10 = vsel %vm277_vm0, %v4439_v7, 0.0  ;;  %v4447_v14 = vunpack.c.h.bf16 %v4654_v12  ;;  %v4664_v7 = vld [vmem:[%s7107_s0 + $0xc8] sm:$0xff]  }
  0x12   :  { %v4446_v15 = vunpack.c.l.bf16 %v4654_v12  ;;  %v374_v16 = vsel %vm277_vm0, %v4450_v13, 0.0  ;;  %v4742_v48 = vmov 269488144   ;;  %v4745_v56 = vmov 1987475062  }
  0x13   :  { %v371_v17 = vsel %vm277_vm0, %v4447_v14, 0.0  ;;  %v791_v49 = vunpack.c.l.s4 %v4742_v48  ;;  %v4478_v62 = vunpack.c.l.bf16 %v4662_v54  ;;  %v4475_v0 = vunpack.c.h.bf16 %v4661_v40 }
  0x14   :  { %v368_v18 = vsel %vm277_vm0, %v4446_v15, 0.0  ;;  %vm3878_vm2 = vcmask 195712   ;;  %vm3882_vm3 = vcmask 261312   ;;  %vm3886_vm4 = vcmask 326912  }
  0x15   :  { %303 = vadd.xlane.f32.xlu2 %v302_v20  ;;  %300 = vadd.xlane.f32.xlu1 %v299_v21  ;;  %v4455_v20 = vunpack.c.h.bf16 %v4656_v19  ;;  %v4454_v21 = vunpack.c.l.bf16 %v4656_v19  ;;  %v416_v6 = vsel %vm277_vm0, %v4478_v62, 0.0  ;;  %vm3890_vm5 = vcmask 392512  }
  0x16   :  { %297 = vadd.xlane.f32.xlu0 %v296_v22  ;;  %v4451_v22 = vunpack.c.h.bf16 %v4655_v11  ;;  %v4486_v11 = vunpack.c.l.bf16 %v4664_v7  ;;  %vm3894_vm6 = vcmask 458112   ;;  %vm3898_vm7 = vcmask 523712  }
  0x17   :  { %v383_v23 = vsel %vm277_vm0, %v4455_v20, 0.0  ;;  %v380_v24 = vsel %vm277_vm0, %v4454_v21, 0.0  ;;  %vm3902_vm8 = vcmask 589312   ;;  %vm3906_vm9 = vcmask 654912  }
  0x18   :  { %v377_v25 = vsel %vm277_vm0, %v4451_v22, 0.0  ;;  %vm3910_vm10 = vcmask 720512   ;;  %vm3914_vm11 = vcmask 786112   ;;  %vm3918_vm12 = vcmask 851712  }
  0x19   :  { %vm3922_vm13 = vcmask 917312   ;;  %vm3926_vm14 = vcmask 982912   ;;  %vm3930_vm15 = vcmask 1048512  }
  0x1d   :  { %312 = vadd.xlane.f32.xlu2 %v311_v27  ;;  %309 = vadd.xlane.f32.xlu1 %v308_v28  ;;  %v4657_v27 = vld [vmem:[%s7107_s0 + $0x90] sm:$0xff]   ;;  %v4462_v28 = vunpack.c.l.bf16 %v4658_v26 }
  0x1e   :  { %306 = vadd.xlane.f32.xlu0 %v305_v29  ;;  %v4459_v29 = vunpack.c.h.bf16 %v4657_v27  ;;  %v4458_v30 = vunpack.c.l.bf16 %v4657_v27 }
  0x1f   :  { %v392_v31 = vsel %vm277_vm0, %v4462_v28, 0.0 }
  0x20   :  { %v389_v32 = vsel %vm277_vm0, %v4459_v29, 0.0  ;;  %v386_v33 = vsel %vm277_vm0, %v4458_v30, 0.0 }
  0x25   :  { %321 = vadd.xlane.f32.xlu2 %v320_v35  ;;  %318 = vadd.xlane.f32.xlu1 %v317_v36  ;;  %v4467_v35 = vunpack.c.h.bf16 %v4659_v34  ;;  %v4466_v36 = vunpack.c.l.bf16 %v4659_v34 }
  0x26   :  { %315 = vadd.xlane.f32.xlu0 %v314_v37  ;;  %v4463_v37 = vunpack.c.h.bf16 %v4658_v26 }
  0x27   :  { %v401_v38 = vsel %vm277_vm0, %v4467_v35, 0.0  ;;  %v398_v39 = vsel %vm277_vm0, %v4466_v36, 0.0  ;;  %v4667_v35 = vld [vmem:[%s7107_s0 + $0xe0] sm:$0xff]   ;;  %v4666_v36 = vld [vmem:[%s7107_s0 + $0xd8] sm:$0xff]  }
  0x28   :  { %v395_v41 = vsel %vm277_vm0, %v4463_v37, 0.0  ;;  %v4499_v62 = vunpack.c.h.bf16 %v4667_v35 }
  0x2d   :  { %330 = vadd.xlane.f32.xlu2 %v329_v42  ;;  %327 = vadd.xlane.f32.xlu1 %v326_v43  ;;  %v4660_v42 = vld [vmem:[%s7107_s0 + $0xa8] sm:$0xff]   ;;  %v4474_v43 = vunpack.c.l.bf16 %v4661_v40  ;;  %v4495_v40 = vunpack.c.h.bf16 %v4666_v36 }
  0x2e   :  { %324 = vadd.xlane.f32.xlu0 %v323_v44  ;;  %v4471_v44 = vunpack.c.h.bf16 %v4660_v42  ;;  %v4470_v45 = vunpack.c.l.bf16 %v4660_v42 }
  0x2f   :  { %v410_v46 = vsel %vm277_vm0, %v4474_v43, 0.0 }
  0x30   :  { %v407_v47 = vsel %vm277_vm0, %v4471_v44, 0.0  ;;  %v404_v55 = vsel %vm277_vm0, %v4470_v45, 0.0  ;;  %v4494_v44 = vunpack.c.l.bf16 %v4666_v36 }
  0x35   :  { %339 = vadd.xlane.f32.xlu2 %v338_v50  ;;  %336 = vadd.xlane.f32.xlu1 %v335_v51  ;;  %v4743_v50 = vmov 842150450  }
  0x36   :  { %333 = vadd.xlane.f32.xlu0 %v332_v52  ;;  %v795_v51 = vunpack.c.l.s4 %v4743_v50  ;;  %v4744_v52 = vmov 1414812756  }
  0x37   :  { %v799_v53 = vunpack.c.l.s4 %v4744_v52 }
  0x38   :  { %v4887_v60 = vunpack.c.0.s8 %v795_v51 }
  0x39   :  { %v4889_v61 = vunpack.c.0.s8 %v799_v53  ;;  %v440_v53 = vsel %vm277_vm0, %v4494_v44, 0.0 }
  0x3d   :  { %348 = vadd.xlane.f32.xlu2 %v347_v57  ;;  %345 = vadd.xlane.f32.xlu1 %v344_v58  ;;  %v803_v57 = vunpack.c.l.s4 %v4745_v56  ;;  %v4479_v58 = vunpack.c.h.bf16 %v4662_v54  ;;  %v4668_v54 = vld [vmem:[%s7107_s0 + $0xe8] sm:$0xff]  }
  0x3e   :  { %342 = vadd.xlane.f32.xlu0 %v341_v59  ;;  %v4885_v59 = vunpack.c.0.s8 %v791_v49  ;;  %v443_v49 = vsel %vm277_vm0, %v4495_v40, 0.0 }
  0x3f   :  { %v4891_v63 = vunpack.c.0.s8 %v803_v57  ;;  %v4503_v57 = vunpack.c.h.bf16 %v4668_v54 }
  0x45   :  { %357 = vadd.xlane.f32.xlu2 %v356_v1  ;;  %354 = vadd.xlane.f32.xlu1 %v353_v2  ;;  %v419_v2 = vsel %vm277_vm0, %v4479_v58, 0.0  ;;  %v4502_v58 = vunpack.c.l.bf16 %v4668_v54 }
  0x46   :  { %351 = vadd.xlane.f32.xlu0 %v350_v3 }
  0x4d   :  { %366 = vadd.xlane.f32.xlu2 %v365_v8  ;;  %363 = vadd.xlane.f32.xlu1 %v362_v9  ;;  %v413_v9 = vsel %vm277_vm0, %v4475_v0, 0.0 }
  0x4e   :  { %360 = vadd.xlane.f32.xlu0 %v359_v10  ;;  %v4663_v10 = vld [vmem:[%s7107_s0 + $0xc0] sm:$0xff]  }
  0x4f   :  { %v4483_v12 = vunpack.c.h.bf16 %v4663_v10  ;;  %v4482_v13 = vunpack.c.l.bf16 %v4663_v10 }
  0x51   :  { %v425_v20 = vsel %vm277_vm0, %v4483_v12, 0.0  ;;  %v422_v22 = vsel %vm277_vm0, %v4482_v13, 0.0  ;;  %v4669_v12 = vld [vmem:[%s7107_s0 + $0xf0] sm:$0xff]  }
  0x55   :  { %375 = vadd.xlane.f32.xlu2 %v374_v16  ;;  %372 = vadd.xlane.f32.xlu1 %v371_v17  ;;  %v428_v16 = vsel %vm277_vm0, %v4486_v11, 0.0  ;;  %v4670_v11 = vld [vmem:[%s7107_s0 + $0xf8] sm:$0xff]  }
  0x56   :  { %369 = vadd.xlane.f32.xlu0 %v368_v18 }
  0x5d   :  { %384 = vadd.xlane.f32.xlu2 %v383_v23  ;;  %381 = vadd.xlane.f32.xlu1 %v380_v24  ;;  %v4665_v23 = vld [vmem:[%s7107_s0 + $0xd0] sm:$0xff]  }
  0x5e   :  { %378 = vadd.xlane.f32.xlu0 %v377_v25  ;;  %v4491_v28 = vunpack.c.h.bf16 %v4665_v23  ;;  %v4490_v29 = vunpack.c.l.bf16 %v4665_v23 }
  0x65   :  { %393 = vadd.xlane.f32.xlu2 %v392_v31  ;;  %390 = vadd.xlane.f32.xlu1 %v389_v32  ;;  %v4487_v31 = vunpack.c.h.bf16 %v4664_v7  ;;  %v437_v32 = vsel %vm277_vm0, %v4491_v28, 0.0 }
  0x66   :  { %387 = vadd.xlane.f32.xlu0 %v386_v33  ;;  %v434_v33 = vsel %vm277_vm0, %v4490_v29, 0.0 }
  0x67   :  { %v431_v34 = vsel %vm277_vm0, %v4487_v31, 0.0 }
  0x6d   :  { %402 = vadd.xlane.f32.xlu2 %v401_v38  ;;  %399 = vadd.xlane.f32.xlu1 %v398_v39  ;;  %v4498_v39 = vunpack.c.l.bf16 %v4667_v35 }
  0x6e   :  { %396 = vadd.xlane.f32.xlu0 %v395_v41 }
  0x6f   :  { %v446_v48 = vsel %vm277_vm0, %v4498_v39, 0.0 }
  0x75   :  { %411 = vadd.xlane.f32.xlu2 %v410_v46  ;;  %408 = vadd.xlane.f32.xlu1 %v407_v47 }
  0x76   :  { %405 = vadd.xlane.f32.xlu0 %v404_v55 }
  0x78   :  { %v286_v14 = vpop.xlane.xlu1 %285  ;;  %v292_v37 = vpop.xlane.xlu2 %291 }
  0x79   :  { %v280_v1 = vpop.xlane.xlu0 %279  ;;  %v825_v21 = vperm.slane %v286_v14, %v4885_v59  ;;  %v829_v24 = vperm.slane %v286_v14, %v4887_v60  ;;  %v833_v25 = vperm.slane %v286_v14, %v4889_v61  ;;  %v837_v27 = vperm.slane %v286_v14, %v4891_v63 }
  0x7a   :  { %v793_v3 = vperm.slane %v280_v1, %v4885_v59  ;;  %v797_v4 = vperm.slane %v280_v1, %v4887_v60  ;;  %v801_v5 = vperm.slane %v280_v1, %v4889_v61  ;;  %v805_v8 = vperm.slane %v280_v1, %v4891_v63 }
  0x7b   :  { %v857_v38 = vperm.slane %v292_v37, %v4885_v59  ;;  %v861_v41 = vperm.slane %v292_v37, %v4887_v60  ;;  %v865_v43 = vperm.slane %v292_v37, %v4889_v61  ;;  %v869_v45 = vperm.slane %v292_v37, %v4891_v63 }
  0x7c   :  { %2838 = vst [vmem:[#allocation1] ss:$4 sm:$0xff] %v793_v3  ;;  %v4510_v14 = vunpack.c.l.bf16 %v4670_v11 }
  0x7d   :  { %2840 = vst [vmem:[#allocation1 + $0x1] ss:$4 sm:$0xff] %v797_v4  ;;  %420 = vadd.xlane.f32.xlu2 %v419_v2  ;;  %417 = vadd.xlane.f32.xlu1 %v416_v6  ;;  %v455_v4 = vsel %vm277_vm0, %v4503_v57, 0.0  ;;  %v4672_v57 = vld [vmem:[%s7107_s0 + $0x108] sm:$0xff]  }
  0x7e   :  { %2842 = vst [vmem:[#allocation1 + $0x2] ss:$4 sm:$0xff] %v801_v5  ;;  %414 = vadd.xlane.f32.xlu0 %v413_v9  ;;  %v452_v5 = vsel %vm277_vm0, %v4502_v58, 0.0 }
  0x7f   :  { %2844 = vst [vmem:[#allocation1 + $0x3] ss:$4 sm:$0xff] %v805_v8  ;;  %v449_v8 = vsel %vm277_vm0, %v4499_v62, 0.0  ;;  %v4519_v62 = vunpack.c.h.bf16 %v4672_v57 }
  0x80   :  { %v289_v42 = vpop.xlane.xlu1 %288  ;;  %v295_v0 = vpop.xlane.xlu2 %294 }
  0x81   :  { %v283_v15 = vpop.xlane.xlu0 %282  ;;  %v841_v47 = vperm.slane %v289_v42, %v4885_v59  ;;  %v845_v51 = vperm.slane %v289_v42, %v4887_v60  ;;  %v849_v52 = vperm.slane %v289_v42, %v4889_v61  ;;  %v853_v55 = vperm.slane %v289_v42, %v4891_v63 }
  0x82   :  { %v809_v17 = vperm.slane %v283_v15, %v4885_v59  ;;  %v813_v18 = vperm.slane %v283_v15, %v4887_v60  ;;  %v817_v19 = vperm.slane %v283_v15, %v4889_v61  ;;  %v821_v30 = vperm.slane %v283_v15, %v4891_v63 }
  0x83   :  { %v873_v9 = vperm.slane %v295_v0, %v4885_v59  ;;  %v877_v10 = vperm.slane %v295_v0, %v4887_v60  ;;  %v881_v13 = vperm.slane %v295_v0, %v4889_v61  ;;  %v885_v15 = vperm.slane %v295_v0, %v4891_v63 }
  0x84   :  { %2846 = vst [vmem:[#allocation1 + $0x20] ss:$4 sm:$0xff] %v809_v17  ;;  %v4507_v17 = vunpack.c.h.bf16 %v4669_v12  ;;  %v4518_v0 = vunpack.c.l.bf16 %v4672_v57 }
  0x85   :  { %2848 = vst [vmem:[#allocation1 + $0x21] ss:$4 sm:$0xff] %v813_v18  ;;  %429 = vadd.xlane.f32.xlu2 %v428_v16  ;;  %426 = vadd.xlane.f32.xlu1 %v425_v20  ;;  %v4506_v18 = vunpack.c.l.bf16 %v4669_v12  ;;  %v464_v20 = vsel %vm277_vm0, %v4510_v14, 0.0 }
  0x86   :  { %v4918_v26 = vld.sshfl [vmem:[#allocation1] sm:$0xff pattern:$0x73625140]  ;;  %2850 = vst [vmem:[#allocation1 + $0x22] ss:$4 sm:$0xff] %v817_v19  ;;  %423 = vadd.xlane.f32.xlu0 %v422_v22  ;;  %v461_v23 = vsel %vm277_vm0, %v4507_v17, 0.0 }
  0x87   :  { %2855 = vst [vmem:[#allocation1] ss:$4 sm:$0xff] %v825_v21 }
  0x88   :  { %2856 = vst [vmem:[#allocation1 + $0x1] ss:$4 sm:$0xff] %v829_v24  ;;  %v304_v19 = vpop.xlane.xlu2 %303  ;;  %v301_v22 = vpop.xlane.xlu1 %300  ;;  %v458_v24 = vsel %vm277_vm0, %v4506_v18, 0.0 }
  0x89   :  { %2857 = vst [vmem:[#allocation1 + $0x2] ss:$4 sm:$0xff] %v833_v25  ;;  %v298_v56 = vpop.xlane.xlu0 %297  ;;  %v921_v21 = vperm.slane %v304_v19, %v4885_v59  ;;  %v925_v25 = vperm.slane %v304_v19, %v4887_v60  ;;  %v933_v28 = vperm.slane %v304_v19, %v4891_v63  ;;  %v917_v35 = vperm.slane %v301_v22, %v4891_v63 }
  0x8a   :  { %2858 = vst [vmem:[#allocation1 + $0x3] ss:$4 sm:$0xff] %v837_v27  ;;  %v889_v1 = vperm.slane %v298_v56, %v4885_v59  ;;  %v893_v2 = vperm.slane %v298_v56, %v4887_v60  ;;  %v897_v3 = vperm.slane %v298_v56, %v4889_v61  ;;  %v901_v7 = vperm.slane %v298_v56, %v4891_v63  ;;  %v4673_v56 = vld [vmem:[%s7107_s0 + $0x110] sm:$0xff]  }
  0x8b   :  { %2852 = vst [vmem:[#allocation1 + $0x23] ss:$4 sm:$0xff] %v821_v30  ;;  %v929_v27 = vperm.slane %v304_v19, %v4889_v61  ;;  %v905_v30 = vperm.slane %v301_v22, %v4885_v59  ;;  %v4522_v58 = vunpack.c.l.bf16 %v4673_v56  ;;  %v4674_v19 = vld [vmem:[%s7107_s0 + $0x118] sm:$0xff]  }
  0x8d   :  { %438 = vadd.xlane.f32.xlu2 %v437_v32  ;;  %435 = vadd.xlane.f32.xlu1 %v434_v33  ;;  %v909_v32 = vperm.slane %v301_v22, %v4887_v60  ;;  %v913_v33 = vperm.slane %v301_v22, %v4889_v61  ;;  %v4526_v22 = vunpack.c.l.bf16 %v4674_v19 }
  0x8e   :  { %432 = vadd.xlane.f32.xlu0 %v431_v34  ;;  %v4671_v34 = vld [vmem:[%s7107_s0 + $0x100] sm:$0xff]  }
  0x8f   :  { %v4515_v36 = vunpack.c.h.bf16 %v4671_v34  ;;  %v4514_v37 = vunpack.c.l.bf16 %v4671_v34 }
  0x90   :  { %v310_v39 = vpop.xlane.xlu1 %309 }
  0x91   :  { %v4935_v46 = vld.sshfl [vmem:[#allocation1] sm:$0xff pattern:$0x73625140]  ;;  %v307_v40 = vpop.xlane.xlu0 %306  ;;  %v470_v42 = vsel %vm277_vm0, %v4514_v37, 0.0  ;;  %v953_v44 = vperm.slane %v310_v39, %v4885_v59 }
  0x92   :  { %2865 = vst [vmem:[#allocation1] ss:$4 sm:$0xff] %v857_v38  ;;  %v4940_v50 = vld.sshfl [vmem:[#allocation1 + $0x20] sm:$0xff pattern:$0x73625140]  ;;  %v4511_v38 = vunpack.c.h.bf16 %v4670_v11 }
  0x93   :  { %2866 = vst [vmem:[#allocation1 + $0x1] ss:$4 sm:$0xff] %v861_v41  ;;  %v473_v41 = vsel %vm277_vm0, %v4515_v36, 0.0 }
  0x94   :  { %2867 = vst [vmem:[#allocation1 + $0x2] ss:$4 sm:$0xff] %v865_v43  ;;  %v467_v43 = vsel %vm277_vm0, %v4511_v38, 0.0 }
  0x95   :  { %2868 = vst [vmem:[#allocation1 + $0x3] ss:$4 sm:$0xff] %v869_v45  ;;  %447 = vadd.xlane.f32.xlu2 %v446_v48  ;;  %444 = vadd.xlane.f32.xlu1 %v443_v49  ;;  %v961_v48 = vperm.slane %v310_v39, %v4889_v61  ;;  %v937_v49 = vperm.slane %v307_v40, %v4885_v59 }
  0x96   :  { %2859 = vst [vmem:[#allocation1 + $0x20] ss:$4 sm:$0xff] %v841_v47  ;;  %441 = vadd.xlane.f32.xlu0 %v440_v53  ;;  %v957_v47 = vperm.slane %v310_v39, %v4887_v60  ;;  %v945_v53 = vperm.slane %v307_v40, %v4889_v61 }
  0x97   :  { %2860 = vst [vmem:[#allocation1 + $0x21] ss:$4 sm:$0xff] %v845_v51  ;;  %v965_v51 = vperm.slane %v310_v39, %v4891_v63 }
  0x98   :  { %2861 = vst [vmem:[#allocation1 + $0x22] ss:$4 sm:$0xff] %v849_v52  ;;  %v941_v52 = vperm.slane %v307_v40, %v4887_v60  ;;  %v319_v18 = vpop.xlane.xlu1 %318 }
  0x99   :  { %2862 = vst [vmem:[#allocation1 + $0x23] ss:$4 sm:$0xff] %v853_v55  ;;  %v949_v55 = vperm.slane %v307_v40, %v4891_v63  ;;  %v1005_v37 = vperm.slane %v319_v18, %v4887_v60  ;;  %v1009_v38 = vperm.slane %v319_v18, %v4889_v61  ;;  %v1013_v39 = vperm.slane %v319_v18, %v4891_v63 }
  0x9c   :  { %v4954_v6 = vld.sshfl [vmem:[#allocation1] sm:$0xff pattern:$0x73625140] }
  0x9d   :  { %2875 = vst [vmem:[#allocation1] ss:$4 sm:$0xff] %v889_v1  ;;  %456 = vadd.xlane.f32.xlu2 %v455_v4  ;;  %453 = vadd.xlane.f32.xlu1 %v452_v5  ;;  %v316_v1 = vpop.xlane.xlu0 %315  ;;  %v479_v4 = vsel %vm277_vm0, %v4519_v62, 0.0  ;;  %v476_v5 = vsel %vm277_vm0, %v4518_v0, 0.0 }
  0x9e   :  { %2876 = vst [vmem:[#allocation1 + $0x1] ss:$4 sm:$0xff] %v893_v2  ;;  %450 = vadd.xlane.f32.xlu0 %v449_v8  ;;  %v985_v2 = vperm.slane %v316_v1, %v4885_v59  ;;  %v313_v8 = vpop.xlane.xlu2 %312  ;;  %v997_v11 = vperm.slane %v316_v1, %v4891_v63 }
  0x9f   :  { %2877 = vst [vmem:[#allocation1 + $0x2] ss:$4 sm:$0xff] %v897_v3  ;;  %v482_v3 = vsel %vm277_vm0, %v4522_v58, 0.0  ;;  %v969_v12 = vperm.slane %v313_v8, %v4885_v59  ;;  %v981_v17 = vperm.slane %v313_v8, %v4891_v63 }
  0xa0   :  { %v4968_v16 = vld.sshfl [vmem:[#allocation1 + $0x20] sm:$0xff pattern:$0x73625140]  ;;  %2878 = vst [vmem:[#allocation1 + $0x3] ss:$4 sm:$0xff] %v901_v7  ;;  %v989_v7 = vperm.slane %v316_v1, %v4887_v60  ;;  %v328_v40 = vpop.xlane.xlu1 %327 }
  0xa1   :  { %2869 = vst [vmem:[#allocation1 + $0x20] ss:$4 sm:$0xff] %v873_v9  ;;  %v993_v9 = vperm.slane %v316_v1, %v4889_v61  ;;  %v1061_v62 = vperm.slane %v328_v40, %v4891_v63 }
  0xa2   :  { %2870 = vst [vmem:[#allocation1 + $0x21] ss:$4 sm:$0xff] %v877_v10 }
  0xa3   :  { %2871 = vst [vmem:[#allocation1 + $0x22] ss:$4 sm:$0xff] %v881_v13  ;;  %v973_v13 = vperm.slane %v313_v8, %v4887_v60 }
  0xa4   :  { %2872 = vst [vmem:[#allocation1 + $0x23] ss:$4 sm:$0xff] %v885_v15  ;;  %v977_v15 = vperm.slane %v313_v8, %v4889_v61 }
  0xa5   :  { %465 = vadd.xlane.f32.xlu2 %v464_v20  ;;  %462 = vadd.xlane.f32.xlu1 %v461_v23  ;;  %v4523_v23 = vunpack.c.h.bf16 %v4673_v56 }
  0xa6   :  { %459 = vadd.xlane.f32.xlu0 %v458_v24  ;;  %v322_v20 = vpop.xlane.xlu2 %321 }
  0xa7   :  { %v4977_v29 = vld.sshfl [vmem:[#allocation1] sm:$0xff pattern:$0x73625140]  ;;  %v1017_v24 = vperm.slane %v322_v20, %v4885_v59  ;;  %v1029_v34 = vperm.slane %v322_v20, %v4891_v63 }
  0xa8   :  { %2885 = vst [vmem:[#allocation1] ss:$4 sm:$0xff] %v921_v21  ;;  %v4527_v21 = vunpack.c.h.bf16 %v4674_v19 }
  0xa9   :  { %2886 = vst [vmem:[#allocation1 + $0x1] ss:$4 sm:$0xff] %v925_v25  ;;  %v1021_v25 = vperm.slane %v322_v20, %v4887_v60 }
  0xaa   :  { %2887 = vst [vmem:[#allocation1 + $0x2] ss:$4 sm:$0xff] %v929_v27 }
  0xab   :  { %v4980_v31 = vld.sshfl [vmem:[#allocation1 + $0x20] sm:$0xff pattern:$0x73625140]  ;;  %2888 = vst [vmem:[#allocation1 + $0x3] ss:$4 sm:$0xff] %v933_v28  ;;  %v491_v28 = vsel %vm277_vm0, %v4527_v21, 0.0 }
  0xac   :  { %2879 = vst [vmem:[#allocation1 + $0x20] ss:$4 sm:$0xff] %v905_v30  ;;  %v488_v30 = vsel %vm277_vm0, %v4526_v22, 0.0 }
  0xad   :  { %2880 = vst [vmem:[#allocation1 + $0x21] ss:$4 sm:$0xff] %v909_v32  ;;  %474 = vadd.xlane.f32.xlu2 %v473_v41  ;;  %471 = vadd.xlane.f32.xlu1 %v470_v42  ;;  %v485_v32 = vsel %vm277_vm0, %v4523_v23, 0.0  ;;  %v325_v41 = vpop.xlane.xlu0 %324  ;;  %v4676_v42 = vld [vmem:[%s7107_s0 + $0x128] sm:$0xff]  }
  0xae   :  { %2881 = vst [vmem:[#allocation1 + $0x22] ss:$4 sm:$0xff] %v913_v33  ;;  %468 = vadd.xlane.f32.xlu0 %v467_v43  ;;  %v1025_v33 = vperm.slane %v322_v20, %v4889_v61  ;;  %v4675_v43 = vld [vmem:[%s7107_s0 + $0x120] sm:$0xff]   ;;  %v1037_v0 = vperm.slane %v325_v41, %v4887_v60  ;;  %v1041_v1 = vperm.slane %v325_v41, %v4889_v61  ;;  %v331_v8 = vpop.xlane.xlu2 %330 }
  0xaf   :  { %2882 = vst [vmem:[#allocation1 + $0x23] ss:$4 sm:$0xff] %v917_v35  ;;  %v1001_v35 = vperm.slane %v319_v18, %v4885_v59  ;;  %v4535_v18 = vunpack.c.h.bf16 %v4676_v42  ;;  %v1065_v19 = vperm.slane %v331_v8, %v4885_v59  ;;  %v1069_v23 = vperm.slane %v331_v8, %v4887_v60 }
  0xb1   :  { %v503_v22 = vsel %vm277_vm0, %v4535_v18, 0.0 }
  0xb2   :  { %v4992_v45 = vld.sshfl [vmem:[#allocation1] sm:$0xff pattern:$0x73625140] }
  0xb3   :  { %2895 = vst [vmem:[#allocation1] ss:$4 sm:$0xff] %v953_v44  ;;  %v1049_v44 = vperm.slane %v328_v40, %v4885_v59 }
  0xb4   :  { %2896 = vst [vmem:[#allocation1 + $0x1] ss:$4 sm:$0xff] %v957_v47  ;;  %v4534_v47 = vunpack.c.l.bf16 %v4676_v42 }
  0xb5   :  { %2897 = vst [vmem:[#allocation1 + $0x2] ss:$4 sm:$0xff] %v961_v48  ;;  %483 = vadd.xlane.f32.xlu2 %v482_v3  ;;  %480 = vadd.xlane.f32.xlu1 %v479_v4  ;;  %v4531_v48 = vunpack.c.h.bf16 %v4675_v43  ;;  %v1045_v3 = vperm.slane %v325_v41, %v4891_v63  ;;  %v334_v4 = vpop.xlane.xlu0 %333 }
  0xb6   :  { %v5000_v54 = vld.sshfl [vmem:[#allocation1 + $0x20] sm:$0xff pattern:$0x73625140]  ;;  %2898 = vst [vmem:[#allocation1 + $0x3] ss:$4 sm:$0xff] %v965_v51  ;;  %477 = vadd.xlane.f32.xlu0 %v476_v5  ;;  %v500_v56 = vsel %vm277_vm0, %v4534_v47, 0.0  ;;  %v1081_v5 = vperm.slane %v334_v4, %v4885_v59 }
  0xb7   :  { %2889 = vst [vmem:[#allocation1 + $0x20] ss:$4 sm:$0xff] %v937_v49  ;;  %v4530_v49 = vunpack.c.l.bf16 %v4675_v43  ;;  %v497_v57 = vsel %vm277_vm0, %v4531_v48, 0.0 }
  0xb8   :  { %2890 = vst [vmem:[#allocation1 + $0x21] ss:$4 sm:$0xff] %v941_v52  ;;  %v1053_v52 = vperm.slane %v328_v40, %v4887_v60 }
  0xb9   :  { %2891 = vst [vmem:[#allocation1 + $0x22] ss:$4 sm:$0xff] %v945_v53  ;;  %v1057_v53 = vperm.slane %v328_v40, %v4889_v61  ;;  %v494_v58 = vsel %vm277_vm0, %v4530_v49, 0.0 }
  0xba   :  { %2892 = vst [vmem:[#allocation1 + $0x23] ss:$4 sm:$0xff] %v949_v55  ;;  %v1033_v55 = vperm.slane %v325_v41, %v4885_v59 }
  0xbd   :  { %v5015_v10 = vld.sshfl [vmem:[#allocation1] sm:$0xff pattern:$0x73625140]  ;;  %492 = vadd.xlane.f32.xlu2 %v491_v28  ;;  %489 = vadd.xlane.f32.xlu1 %v488_v30  ;;  %v1077_v28 = vperm.slane %v331_v8, %v4891_v63  ;;  %v337_v30 = vpop.xlane.xlu1 %336 }
  0xbe   :  { %2905 = vst [vmem:[#allocation1] ss:$4 sm:$0xff] %v985_v2  ;;  %486 = vadd.xlane.f32.xlu0 %v485_v32  ;;  %v340_v32 = vpop.xlane.xlu2 %339  ;;  %v1101_v48 = vperm.slane %v337_v30, %v4887_v60 }
  0xbf   :  { %2906 = vst [vmem:[#allocation1 + $0x1] ss:$4 sm:$0xff] %v989_v7  ;;  %v1085_v7 = vperm.slane %v334_v4, %v4887_v60  ;;  %v1125_v40 = vperm.slane %v340_v32, %v4891_v63 }
  0xc0   :  { %2907 = vst [vmem:[#allocation1 + $0x2] ss:$4 sm:$0xff] %v993_v9  ;;  %v1089_v9 = vperm.slane %v334_v4, %v4889_v61 }
  0xc1   :  { %v5020_v14 = vld.sshfl [vmem:[#allocation1 + $0x20] sm:$0xff pattern:$0x73625140]  ;;  %2908 = vst [vmem:[#allocation1 + $0x3] ss:$4 sm:$0xff] %v997_v11 }
  0xc2   :  { %2899 = vst [vmem:[#allocation1 + $0x20] ss:$4 sm:$0xff] %v969_v12  ;;  %v1093_v12 = vperm.slane %v334_v4, %v4891_v63 }
  0xc3   :  { %2900 = vst [vmem:[#allocation1 + $0x21] ss:$4 sm:$0xff] %v973_v13  ;;  %v4677_v13 = vld [vmem:[%s7107_s0 + $0x130] sm:$0xff]  }
  0xc4   :  { %2901 = vst [vmem:[#allocation1 + $0x22] ss:$4 sm:$0xff] %v977_v15  ;;  %v4539_v15 = vunpack.c.h.bf16 %v4677_v13 }
  0xc5   :  { %2902 = vst [vmem:[#allocation1 + $0x23] ss:$4 sm:$0xff] %v981_v17  ;;  %501 = vadd.xlane.f32.xlu2 %v500_v56  ;;  %498 = vadd.xlane.f32.xlu1 %v497_v57  ;;  %v4538_v17 = vunpack.c.l.bf16 %v4677_v13  ;;  %v346_v57 = vpop.xlane.xlu1 %345 }
  0xc6   :  { %495 = vadd.xlane.f32.xlu0 %v494_v58  ;;  %v509_v20 = vsel %vm277_vm0, %v4539_v15, 0.0  ;;  %v1145_v58 = vperm.slane %v346_v57, %v4885_v59  ;;  %v1153_v4 = vperm.slane %v346_v57, %v4889_v61 }
  0xc7   :  { %v506_v21 = vsel %vm277_vm0, %v4538_v17, 0.0 }
  0xc8   :  { %v5029_v27 = vld.sshfl [vmem:[#allocation1] sm:$0xff pattern:$0x73625140] }
  0xc9   :  { %2915 = vst [vmem:[#allocation1] ss:$4 sm:$0xff] %v1017_v24 }
  0xca   :  { %2916 = vst [vmem:[#allocation1 + $0x1] ss:$4 sm:$0xff] %v1021_v25  ;;  %v1073_v25 = vperm.slane %v331_v8, %v4889_v61  ;;  %v4680_v8 = vld [vmem:[%s7107_s0 + $0x148] sm:$0xff]  }
  0xcb   :  { %2917 = vst [vmem:[#allocation1 + $0x2] ss:$4 sm:$0xff] %v1025_v33  ;;  %v1113_v33 = vperm.slane %v340_v32, %v4885_v59  ;;  %v4551_v13 = vunpack.c.h.bf16 %v4680_v8  ;;  %v4550_v15 = vunpack.c.l.bf16 %v4680_v8 }
  0xcc   :  { %v5037_v36 = vld.sshfl [vmem:[#allocation1 + $0x20] sm:$0xff pattern:$0x73625140]  ;;  %2918 = vst [vmem:[#allocation1 + $0x3] ss:$4 sm:$0xff] %v1029_v34  ;;  %v1117_v34 = vperm.slane %v340_v32, %v4887_v60 }
  0xcd   :  { %2909 = vst [vmem:[#allocation1 + $0x20] ss:$4 sm:$0xff] %v1001_v35  ;;  %510 = vadd.xlane.f32.xlu2 %v509_v20  ;;  %507 = vadd.xlane.f32.xlu1 %v506_v21  ;;  %v527_v20 = vsel %vm277_vm0, %v4551_v13, 0.0  ;;  %v524_v21 = vsel %vm277_vm0, %v4550_v15, 0.0  ;;  %v4683_v15 = vld [vmem:[%s7107_s0 + $0x160] sm:$0xff]  }
  0xce   :  { %2910 = vst [vmem:[#allocation1 + $0x21] ss:$4 sm:$0xff] %v1005_v37  ;;  %504 = vadd.xlane.f32.xlu0 %v503_v22  ;;  %v4679_v37 = vld [vmem:[%s7107_s0 + $0x140] sm:$0xff]  }
  0xcf   :  { %2911 = vst [vmem:[#allocation1 + $0x22] ss:$4 sm:$0xff] %v1009_v38  ;;  %v4678_v38 = vld [vmem:[%s7107_s0 + $0x138] sm:$0xff]   ;;  %v4546_v41 = vunpack.c.l.bf16 %v4679_v37  ;;  %v4547_v17 = vunpack.c.h.bf16 %v4679_v37 }
  0xd0   :  { %2912 = vst [vmem:[#allocation1 + $0x23] ss:$4 sm:$0xff] %v1013_v39  ;;  %v1121_v39 = vperm.slane %v340_v32, %v4889_v61  ;;  %v4543_v42 = vunpack.c.h.bf16 %v4678_v38  ;;  %v4542_v43 = vunpack.c.l.bf16 %v4678_v38  ;;  %v4682_v38 = vld [vmem:[%s7107_s0 + $0x158] sm:$0xff]  }
  0xd1   :  { %v518_v49 = vsel %vm277_vm0, %v4546_v41, 0.0  ;;  %v521_v22 = vsel %vm277_vm0, %v4547_v17, 0.0 }
  0xd2   :  { %v512_v56 = vsel %vm277_vm0, %v4542_v43, 0.0  ;;  %v4558_v43 = vunpack.c.l.bf16 %v4682_v38 }
  0xd3   :  { %v5049_v51 = vld.sshfl [vmem:[#allocation1] sm:$0xff pattern:$0x73625140] }
  0xd4   :  { %2925 = vst [vmem:[#allocation1] ss:$4 sm:$0xff] %v1049_v44  ;;  %v1097_v44 = vperm.slane %v337_v30, %v4885_v59 }
  0xd5   :  { %2926 = vst [vmem:[#allocation1 + $0x1] ss:$4 sm:$0xff] %v1053_v52  ;;  %v1105_v52 = vperm.slane %v337_v30, %v4889_v61  ;;  %519 = vadd.xlane.f32.xlu2 %v518_v49 }
  0xd6   :  { %2927 = vst [vmem:[#allocation1 + $0x2] ss:$4 sm:$0xff] %v1057_v53  ;;  %v1109_v53 = vperm.slane %v337_v30, %v4891_v63  ;;  %513 = vadd.xlane.f32.xlu0 %v512_v56  ;;  %v355_v56 = vpop.xlane.xlu1 %354 }
  0xd7   :  { %v5060_v2 = vld.sshfl [vmem:[#allocation1 + $0x20] sm:$0xff pattern:$0x73625140]  ;;  %2928 = vst [vmem:[#allocation1 + $0x3] ss:$4 sm:$0xff] %v1061_v62  ;;  %v343_v62 = vpop.xlane.xlu0 %342  ;;  %v1197_v8 = vperm.slane %v355_v56, %v4887_v60  ;;  %v1205_v13 = vperm.slane %v355_v56, %v4891_v63 }
  0xd8   :  { %2919 = vst [vmem:[#allocation1 + $0x20] ss:$4 sm:$0xff] %v1033_v55  ;;  %v515_v55 = vsel %vm277_vm0, %v4543_v42, 0.0  ;;  %v1137_v18 = vperm.slane %v343_v62, %v4889_v61 }
  0xd9   :  { %2920 = vst [vmem:[#allocation1 + $0x21] ss:$4 sm:$0xff] %v1037_v0  ;;  %516 = vadd.xlane.f32.xlu1 %v515_v55  ;;  %v349_v0 = vpop.xlane.xlu2 %348 }
  0xda   :  { %2921 = vst [vmem:[#allocation1 + $0x22] ss:$4 sm:$0xff] %v1041_v1  ;;  %v1161_v37 = vperm.slane %v349_v0, %v4885_v59  ;;  %v1169_v42 = vperm.slane %v349_v0, %v4889_v61  ;;  %v1173_v49 = vperm.slane %v349_v0, %v4891_v63 }
  0xdb   :  { %2922 = vst [vmem:[#allocation1 + $0x23] ss:$4 sm:$0xff] %v1045_v3  ;;  %v1149_v3 = vperm.slane %v346_v57, %v4887_v60 }
  0xdd   :  { %528 = vadd.xlane.f32.xlu2 %v527_v20  ;;  %v4559_v20 = vunpack.c.h.bf16 %v4682_v38 }
  0xde   :  { %v5066_v11 = vld.sshfl [vmem:[#allocation1] sm:$0xff pattern:$0x73625140]  ;;  %522 = vadd.xlane.f32.xlu0 %v521_v22  ;;  %v364_v17 = vpop.xlane.xlu1 %363 }
  0xdf   :  { %2935 = vst [vmem:[#allocation1] ss:$4 sm:$0xff] %v1081_v5  ;;  %v1157_v5 = vperm.slane %v346_v57, %v4891_v63  ;;  %v1253_v38 = vperm.slane %v364_v17, %v4891_v63 }
  0xe0   :  { %2936 = vst [vmem:[#allocation1 + $0x1] ss:$4 sm:$0xff] %v1085_v7  ;;  %v1129_v7 = vperm.slane %v343_v62, %v4885_v59 }
  0xe1   :  { %2937 = vst [vmem:[#allocation1 + $0x2] ss:$4 sm:$0xff] %v1089_v9  ;;  %525 = vadd.xlane.f32.xlu1 %v524_v21 }
  0xe2   :  { %v5077_v24 = vld.sshfl [vmem:[#allocation1 + $0x20] sm:$0xff pattern:$0x73625140]  ;;  %2938 = vst [vmem:[#allocation1 + $0x3] ss:$4 sm:$0xff] %v1093_v12  ;;  %v1133_v12 = vperm.slane %v343_v62, %v4887_v60 }
  0xe3   :  { %2929 = vst [vmem:[#allocation1 + $0x20] ss:$4 sm:$0xff] %v1065_v19  ;;  %v1141_v19 = vperm.slane %v343_v62, %v4891_v63 }
  0xe4   :  { %2930 = vst [vmem:[#allocation1 + $0x21] ss:$4 sm:$0xff] %v1069_v23  ;;  %v352_v23 = vpop.xlane.xlu0 %351 }
  0xe5   :  { %2931 = vst [vmem:[#allocation1 + $0x22] ss:$4 sm:$0xff] %v1073_v25  ;;  %v358_v25 = vpop.xlane.xlu2 %357  ;;  %v1181_v32 = vperm.slane %v352_v23, %v4887_v60 }
  0xe6   :  { %2932 = vst [vmem:[#allocation1 + $0x23] ss:$4 sm:$0xff] %v1077_v28  ;;  %v1177_v28 = vperm.slane %v352_v23, %v4885_v59  ;;  %v1213_v62 = vperm.slane %v358_v25, %v4887_v60 }
  0xe9   :  { %v5083_v35 = vld.sshfl [vmem:[#allocation1] sm:$0xff pattern:$0x73625140] }
  0xea   :  { %2945 = vst [vmem:[#allocation1] ss:$4 sm:$0xff] %v1113_v33  ;;  %v1185_v33 = vperm.slane %v352_v23, %v4889_v61 }
  0xeb   :  { %2946 = vst [vmem:[#allocation1 + $0x1] ss:$4 sm:$0xff] %v1117_v34  ;;  %v1189_v34 = vperm.slane %v352_v23, %v4891_v63 }
  0xec   :  { %2947 = vst [vmem:[#allocation1 + $0x2] ss:$4 sm:$0xff] %v1121_v39  ;;  %v4681_v39 = vld [vmem:[%s7107_s0 + $0x150] sm:$0xff]  }
  0xed   :  { %v5094_v47 = vld.sshfl [vmem:[#allocation1 + $0x20] sm:$0xff pattern:$0x73625140]  ;;  %2948 = vst [vmem:[#allocation1 + $0x3] ss:$4 sm:$0xff] %v1125_v40  ;;  %v1165_v40 = vperm.slane %v349_v0, %v4887_v60  ;;  %v5141_v57 = vpop.xlane.xlu2 %366 }
  0xee   :  { %2939 = vst [vmem:[#allocation1 + $0x20] ss:$4 sm:$0xff] %v1097_v44  ;;  %v4555_v44 = vunpack.c.h.bf16 %v4681_v39 }
  0xef   :  { %2940 = vst [vmem:[#allocation1 + $0x21] ss:$4 sm:$0xff] %v1101_v48  ;;  %v4554_v48 = vunpack.c.l.bf16 %v4681_v39 }
  0xf0   :  { %2941 = vst [vmem:[#allocation1 + $0x22] ss:$4 sm:$0xff] %v1105_v52  ;;  %v536_v52 = vsel %vm277_vm0, %v4558_v43, 0.0 }
  0xf1   :  { %2942 = vst [vmem:[#allocation1 + $0x23] ss:$4 sm:$0xff] %v1109_v53  ;;  %v533_v53 = vsel %vm277_vm0, %v4555_v44, 0.0  ;;  %v530_v55 = vsel %vm277_vm0, %v4554_v48, 0.0  ;;  %537 = vadd.xlane.f32.xlu2 %v536_v52  ;;  %v5175_v48 = vpop.xlane.xlu1 %372  ;;  %v4684_v52 = vld [vmem:[%s7107_s0 + $0x168] sm:$0xff]  }
  0xf2   :  { %534 = vadd.xlane.f32.xlu1 %v533_v53  ;;  %531 = vadd.xlane.f32.xlu0 %v530_v55 }
  0xf4   :  { %v5103_v1 = vld.sshfl [vmem:[#allocation1] sm:$0xff pattern:$0x73625140] }
  0xf5   :  { %2955 = vst [vmem:[#allocation1] ss:$4 sm:$0xff] %v1145_v58  ;;  %v1209_v58 = vperm.slane %v358_v25, %v4885_v59  ;;  %v5158_v21 = vpop.xlane.xlu2 %375 }
  0xf6   :  { %2956 = vst [vmem:[#allocation1 + $0x1] ss:$4 sm:$0xff] %v1149_v3  ;;  %v1217_v3 = vperm.slane %v358_v25, %v4889_v61 }
  0xf7   :  { %2957 = vst [vmem:[#allocation1 + $0x2] ss:$4 sm:$0xff] %v1153_v4  ;;  %v1221_v4 = vperm.slane %v358_v25, %v4891_v63  ;;  %v539_v25 = vsel %vm277_vm0, %v4559_v20, 0.0 }
  0xf8   :  { %v5112_v9 = vld.sshfl [vmem:[#allocation1 + $0x20] sm:$0xff pattern:$0x73625140]  ;;  %2958 = vst [vmem:[#allocation1 + $0x3] ss:$4 sm:$0xff] %v1157_v5  ;;  %v1193_v5 = vperm.slane %v355_v56, %v4885_v59 }
  0xf9   :  { %2949 = vst [vmem:[#allocation1 + $0x20] ss:$4 sm:$0xff] %v1129_v7 }
  0xfa   :  { %2950 = vst [vmem:[#allocation1 + $0x21] ss:$4 sm:$0xff] %v1133_v12  ;;  %v1201_v12 = vperm.slane %v355_v56, %v4889_v61  ;;  %540 = vadd.xlane.f32.xlu0 %v539_v25  ;;  %v4567_v56 = vunpack.c.h.bf16 %v4684_v52  ;;  %v1269_v25 = vperm.slane %v5141_v57, %v4891_v63 }
  0xfb   :  { %2951 = vst [vmem:[#allocation1 + $0x22] ss:$4 sm:$0xff] %v1137_v18  ;;  %v4563_v18 = vunpack.c.h.bf16 %v4683_v15 }
  0xfc   :  { %2952 = vst [vmem:[#allocation1 + $0x23] ss:$4 sm:$0xff] %v1141_v19  ;;  %v4562_v19 = vunpack.c.l.bf16 %v4683_v15 }
  0xfd   :  { %v545_v22 = vsel %vm277_vm0, %v4563_v18, 0.0  ;;  %v5183_v53 = vpop.xlane.xlu2 %384  ;;  %v1257_v18 = vperm.slane %v5141_v57, %v4885_v59 }
  0xfe   :  { %v542_v23 = vsel %vm277_vm0, %v4562_v19, 0.0  ;;  %546 = vadd.xlane.f32.xlu2 %v545_v22  ;;  %v1261_v19 = vperm.slane %v5141_v57, %v4887_v60  ;;  %v1265_v22 = vperm.slane %v5141_v57, %v4889_v61  ;;  %v1309_v57 = vperm.slane %v5158_v21, %v4887_v60 }
  0xff   :  { %v5121_v30 = vld.sshfl [vmem:[#allocation1] sm:$0xff pattern:$0x73625140]  ;;  %543 = vadd.xlane.f32.xlu1 %v542_v23  ;;  %v382_v23 = vpop.xlane.xlu1 %381 }
 0x100   :  { %2965 = vst [vmem:[#allocation1] ss:$4 sm:$0xff] %v1177_v28  ;;  %v1241_v28 = vperm.slane %v364_v17, %v4885_v59 }
 0x101   :  { %2966 = vst [vmem:[#allocation1 + $0x1] ss:$4 sm:$0xff] %v1181_v32  ;;  %v361_v32 = vpop.xlane.xlu0 %360 }
 0x102   :  { %2967 = vst [vmem:[#allocation1 + $0x2] ss:$4 sm:$0xff] %v1185_v33  ;;  %v1225_v39 = vperm.slane %v361_v32, %v4885_v59  ;;  %v1233_v43 = vperm.slane %v361_v32, %v4889_v61  ;;  %v1237_v44 = vperm.slane %v361_v32, %v4891_v63 }
 0x103   :  { %v5134_v41 = vld.sshfl [vmem:[#allocation1 + $0x20] sm:$0xff pattern:$0x73625140]  ;;  %2968 = vst [vmem:[#allocation1 + $0x3] ss:$4 sm:$0xff] %v1189_v34  ;;  %v1245_v34 = vperm.slane %v364_v17, %v4887_v60 }
 0x104   :  { %2959 = vst [vmem:[#allocation1 + $0x20] ss:$4 sm:$0xff] %v1161_v37  ;;  %v1249_v37 = vperm.slane %v364_v17, %v4889_v61 }
 0x105   :  { %2960 = vst [vmem:[#allocation1 + $0x21] ss:$4 sm:$0xff] %v1165_v40 }
 0x106   :  { %2961 = vst [vmem:[#allocation1 + $0x22] ss:$4 sm:$0xff] %v1169_v42  ;;  %v1229_v42 = vperm.slane %v361_v32, %v4887_v60 }
 0x107   :  { %2962 = vst [vmem:[#allocation1 + $0x23] ss:$4 sm:$0xff] %v1173_v49  ;;  %v4685_v49 = vld [vmem:[%s7107_s0 + $0x170] sm:$0xff]  }
 0x108   :  { %v4570_v55 = vunpack.c.l.bf16 %v4685_v49 }
 0x10a   :  { %v5145_v0 = vld.sshfl [vmem:[#allocation1] sm:$0xff pattern:$0x73625140] }
 0x10b   :  { %7131 = vst [vmem:[#allocation6_spill] sm:$0xff] %v5145_v0 }
 0x10c   :  { %2975 = vst [vmem:[#allocation1] ss:$4 sm:$0xff] %v1209_v58  ;;  %v4566_v58 = vunpack.c.l.bf16 %v4684_v52 }
 0x10d   :  { %2976 = vst [vmem:[#allocation1 + $0x1] ss:$4 sm:$0xff] %v1213_v62  ;;  %v370_v62 = vpop.xlane.xlu0 %369 }
 0x10e   :  { %2977 = vst [vmem:[#allocation1 + $0x2] ss:$4 sm:$0xff] %v1217_v3  ;;  %v5150_v7 = vld.sshfl [vmem:[#allocation1 + $0x20] sm:$0xff pattern:$0x73625140]  ;;  %v1273_v3 = vperm.slane %v370_v62, %v4885_v59  ;;  %v1281_v15 = vperm.slane %v370_v62, %v4889_v61  ;;  %v1285_v17 = vperm.slane %v370_v62, %v4891_v63 }
 0x10f   :  { %2978 = vst [vmem:[#allocation1 + $0x3] ss:$4 sm:$0xff] %v1221_v4  ;;  %v554_v4 = vsel %vm277_vm0, %v4570_v55, 0.0 }
 0x110   :  { %2969 = vst [vmem:[#allocation1 + $0x20] ss:$4 sm:$0xff] %v1193_v5  ;;  %v551_v5 = vsel %vm277_vm0, %v4567_v56, 0.0  ;;  %555 = vadd.xlane.f32.xlu2 %v554_v4  ;;  %v5230_v4 = vpop.xlane.xlu1 %390 }
 0x111   :  { %2970 = vst [vmem:[#allocation1 + $0x21] ss:$4 sm:$0xff] %v1197_v8  ;;  %v548_v8 = vsel %vm277_vm0, %v4566_v58, 0.0  ;;  %552 = vadd.xlane.f32.xlu1 %v551_v5  ;;  %v1317_v58 = vperm.slane %v5158_v21, %v4891_v63  ;;  %v1297_v5 = vperm.slane %v5175_v48, %v4889_v61 }
 0x112   :  { %2971 = vst [vmem:[#allocation1 + $0x22] ss:$4 sm:$0xff] %v1201_v12  ;;  %549 = vadd.xlane.f32.xlu0 %v548_v8  ;;  %v1301_v8 = vperm.slane %v5175_v48, %v4891_v63 }
 0x113   :  { %2972 = vst [vmem:[#allocation1 + $0x23] ss:$4 sm:$0xff] %v1205_v13  ;;  %v1277_v13 = vperm.slane %v370_v62, %v4887_v60 }
 0x115   :  { %v5206_v32 = vpop.xlane.xlu0 %378 }
 0x116   :  { %v5164_v33 = vld.sshfl [vmem:[#allocation1] sm:$0xff pattern:$0x73625140] }
 0x117   :  { %2985 = vst [vmem:[#allocation1] ss:$4 sm:$0xff] %v1241_v28  ;;  %v5204_v28 = vpop.xlane.xlu2 %393 }
 0x118   :  { %2986 = vst [vmem:[#allocation1 + $0x1] ss:$4 sm:$0xff] %v1245_v34  ;;  %v4686_v34 = vld [vmem:[%s7107_s0 + $0x178] sm:$0xff]  }
 0x119   :  { %2987 = vst [vmem:[#allocation1 + $0x2] ss:$4 sm:$0xff] %v1249_v37  ;;  %v1305_v37 = vperm.slane %v5158_v21, %v4885_v59 }
 0x11a   :  { %v5170_v40 = vld.sshfl [vmem:[#allocation1 + $0x20] sm:$0xff pattern:$0x73625140]  ;;  %2988 = vst [vmem:[#allocation1 + $0x3] ss:$4 sm:$0xff] %v1253_v38  ;;  %v4575_v38 = vunpack.c.h.bf16 %v4686_v34 }
 0x11b   :  { %2979 = vst [vmem:[#allocation1 + $0x20] ss:$4 sm:$0xff] %v1225_v39  ;;  %v4574_v39 = vunpack.c.l.bf16 %v4686_v34 }
 0x11c   :  { %2980 = vst [vmem:[#allocation1 + $0x21] ss:$4 sm:$0xff] %v1229_v42  ;;  %v4571_v42 = vunpack.c.h.bf16 %v4685_v49  ;;  %v563_v52 = vsel %vm277_vm0, %v4575_v38, 0.0  ;;  %v1289_v49 = vperm.slane %v5175_v48, %v4885_v59  ;;  %v1349_v38 = vperm.slane %v382_v23, %v4891_v63 }
 0x11d   :  { %2981 = vst [vmem:[#allocation1 + $0x22] ss:$4 sm:$0xff] %v1233_v43  ;;  %v560_v55 = vsel %vm277_vm0, %v4574_v39, 0.0  ;;  %564 = vadd.xlane.f32.xlu2 %v563_v52  ;;  %v5255_v52 = vpop.xlane.xlu1 %399 }
 0x11e   :  { %2982 = vst [vmem:[#allocation1 + $0x23] ss:$4 sm:$0xff] %v1237_v44  ;;  %v1313_v44 = vperm.slane %v5158_v21, %v4889_v61  ;;  %v557_v56 = vsel %vm277_vm0, %v4571_v42, 0.0  ;;  %561 = vadd.xlane.f32.xlu1 %v560_v55 }
 0x11f   :  { %558 = vadd.xlane.f32.xlu0 %v557_v56  ;;  %v5234_v21 = vpop.xlane.xlu2 %402  ;;  %v1325_v56 = vperm.slane %v5206_v32, %v4887_v60 }
 0x121   :  { %v5189_v12 = vld.sshfl [vmem:[#allocation1] sm:$0xff pattern:$0x73625140] }
 0x122   :  { %7132 = vst [vmem:[#allocation7_spill] sm:$0xff] %v5189_v12 }
 0x123   :  { %2995 = vst [vmem:[#allocation1] ss:$4 sm:$0xff] %v1273_v3  ;;  %v1293_v3 = vperm.slane %v5175_v48, %v4887_v60 }
 0x124   :  { %2996 = vst [vmem:[#allocation1 + $0x1] ss:$4 sm:$0xff] %v1277_v13  ;;  %v388_v13 = vpop.xlane.xlu0 %387 }
 0x125   :  { %2997 = vst [vmem:[#allocation1 + $0x2] ss:$4 sm:$0xff] %v1281_v15  ;;  %v5198_v20 = vld.sshfl [vmem:[#allocation1 + $0x20] sm:$0xff pattern:$0x73625140]  ;;  %v4688_v15 = vld [vmem:[%s7107_s0 + $0x188] sm:$0xff]  }
 0x126   :  { %7133 = vst [vmem:[#allocation8_spill] sm:$0xff] %v5198_v20 }
 0x127   :  { %2998 = vst [vmem:[#allocation1 + $0x3] ss:$4 sm:$0xff] %v1285_v17  ;;  %v4687_v17 = vld [vmem:[%s7107_s0 + $0x180] sm:$0xff]  }
 0x128   :  { %2989 = vst [vmem:[#allocation1 + $0x20] ss:$4 sm:$0xff] %v1257_v18  ;;  %v1337_v18 = vperm.slane %v382_v23, %v4885_v59  ;;  %v4579_v48 = vunpack.c.h.bf16 %v4687_v17  ;;  %v4578_v34 = vunpack.c.l.bf16 %v4687_v17  ;;  %v1373_v17 = vperm.slane %v388_v13, %v4887_v60 }
 0x129   :  { %2990 = vst [vmem:[#allocation1 + $0x21] ss:$4 sm:$0xff] %v1261_v19 }
 0x12a   :  { %2991 = vst [vmem:[#allocation1 + $0x22] ss:$4 sm:$0xff] %v1265_v22  ;;  %v1341_v22 = vperm.slane %v382_v23, %v4887_v60  ;;  %v569_v42 = vsel %vm277_vm0, %v4579_v48, 0.0 }
 0x12b   :  { %2992 = vst [vmem:[#allocation1 + $0x23] ss:$4 sm:$0xff] %v1269_v25  ;;  %v4582_v25 = vunpack.c.l.bf16 %v4688_v15  ;;  %570 = vadd.xlane.f32.xlu1 %v569_v42  ;;  %v1357_v42 = vperm.slane %v5183_v53, %v4887_v60 }
 0x12d   :  { %v572_v39 = vsel %vm277_vm0, %v4582_v25, 0.0  ;;  %v5278_v25 = vpop.xlane.xlu1 %408 }
 0x12e   :  { %v5215_v43 = vld.sshfl [vmem:[#allocation1] sm:$0xff pattern:$0x73625140]  ;;  %573 = vadd.xlane.f32.xlu2 %v572_v39 }
 0x12f   :  { %7134 = vst [vmem:[#allocation9_spill] sm:$0xff] %v5215_v43 }
 0x130   :  { %3005 = vst [vmem:[#allocation1] ss:$4 sm:$0xff] %v1305_v37  ;;  %v1345_v37 = vperm.slane %v382_v23, %v4889_v61  ;;  %v5261_v23 = vpop.xlane.xlu2 %411 }
 0x131   :  { %3006 = vst [vmem:[#allocation1 + $0x1] ss:$4 sm:$0xff] %v1309_v57  ;;  %v566_v57 = vsel %vm277_vm0, %v4578_v34, 0.0 }
 0x132   :  { %3007 = vst [vmem:[#allocation1 + $0x2] ss:$4 sm:$0xff] %v1313_v44  ;;  %v5226_v62 = vld.sshfl [vmem:[#allocation1 + $0x20] sm:$0xff pattern:$0x73625140]  ;;  %v1321_v44 = vperm.slane %v5206_v32, %v4885_v59  ;;  %567 = vadd.xlane.f32.xlu0 %v566_v57 }
 0x133   :  { %3008 = vst [vmem:[#allocation1 + $0x3] ss:$4 sm:$0xff] %v1317_v58  ;;  %v1329_v58 = vperm.slane %v5206_v32, %v4889_v61 }
 0x134   :  { %2999 = vst [vmem:[#allocation1 + $0x20] ss:$4 sm:$0xff] %v1289_v49  ;;  %v1333_v49 = vperm.slane %v5206_v32, %v4891_v63  ;;  %v1381_v32 = vperm.slane %v388_v13, %v4891_v63 }
 0x135   :  { %3000 = vst [vmem:[#allocation1 + $0x21] ss:$4 sm:$0xff] %v1293_v3  ;;  %v5267_v3 = vpop.xlane.xlu0 %396 }
 0x136   :  { %3001 = vst [vmem:[#allocation1 + $0x22] ss:$4 sm:$0xff] %v1297_v5  ;;  %v1369_v5 = vperm.slane %v388_v13, %v4885_v59 }
 0x137   :  { %3002 = vst [vmem:[#allocation1 + $0x23] ss:$4 sm:$0xff] %v1301_v8 }
 0x138   :  { %v5282_v39 = vpop.xlane.xlu2 %420 }
 0x13a   :  { %v5245_v19 = vld.sshfl [vmem:[#allocation1] sm:$0xff pattern:$0x73625140] }
 0x13b   :  { %7135 = vst [vmem:[#allocation10_spill] sm:$0xff] %v5245_v19 }
 0x13c   :  { %3015 = vst [vmem:[#allocation1] ss:$4 sm:$0xff] %v1337_v18  ;;  %v1377_v18 = vperm.slane %v388_v13, %v4889_v61 }
 0x13d   :  { %3016 = vst [vmem:[#allocation1 + $0x1] ss:$4 sm:$0xff] %v1341_v22  ;;  %v4689_v22 = vld [vmem:[%s7107_s0 + $0x190] sm:$0xff]  }
 0x13e   :  { %3017 = vst [vmem:[#allocation1 + $0x2] ss:$4 sm:$0xff] %v1345_v37  ;;  %v5257_v55 = vld.sshfl [vmem:[#allocation1 + $0x20] sm:$0xff pattern:$0x73625140]  ;;  %v4587_v48 = vunpack.c.h.bf16 %v4689_v22  ;;  %v4586_v34 = vunpack.c.l.bf16 %v4689_v22  ;;  %v4583_v37 = vunpack.c.h.bf16 %v4688_v15  ;;  %v1365_v15 = vperm.slane %v5183_v53, %v4891_v63  ;;  %v5305_v22 = vpop.xlane.xlu1 %417 }
 0x13f   :  { %7136 = vst [vmem:[#allocation11_spill] sm:$0xff] %v5257_v55 }
 0x140   :  { %3018 = vst [vmem:[#allocation1 + $0x3] ss:$4 sm:$0xff] %v1349_v38  ;;  %v1353_v38 = vperm.slane %v5183_v53, %v4885_v59  ;;  %v581_v13 = vsel %vm277_vm0, %v4587_v48, 0.0  ;;  %v4690_v48 = vld [vmem:[%s7107_s0 + $0x198] sm:$0xff]  }
 0x141   :  { %3009 = vst [vmem:[#allocation1 + $0x20] ss:$4 sm:$0xff] %v1321_v44  ;;  %v1361_v44 = vperm.slane %v5183_v53, %v4889_v61  ;;  %582 = vadd.xlane.f32.xlu2 %v581_v13  ;;  %v1409_v53 = vperm.slane %v5204_v28, %v4889_v61  ;;  %v4591_v13 = vunpack.c.h.bf16 %v4690_v48 }
 0x142   :  { %3010 = vst [vmem:[#allocation1 + $0x21] ss:$4 sm:$0xff] %v1325_v56  ;;  %v5293_v56 = vpop.xlane.xlu0 %405 }
 0x143   :  { %3011 = vst [vmem:[#allocation1 + $0x22] ss:$4 sm:$0xff] %v1329_v58  ;;  %v578_v58 = vsel %vm277_vm0, %v4586_v34, 0.0  ;;  %v1413_v34 = vperm.slane %v5204_v28, %v4891_v63 }
 0x144   :  { %3012 = vst [vmem:[#allocation1 + $0x23] ss:$4 sm:$0xff] %v1333_v49  ;;  %v575_v49 = vsel %vm277_vm0, %v4583_v37, 0.0  ;;  %579 = vadd.xlane.f32.xlu1 %v578_v58  ;;  %v5315_v37 = vpop.xlane.xlu2 %429  ;;  %v1389_v58 = vperm.slane %v5230_v4, %v4887_v60 }
 0x145   :  { %576 = vadd.xlane.f32.xlu0 %v575_v49  ;;  %v1393_v49 = vperm.slane %v5230_v4, %v4889_v61 }
 0x147   :  { %v5270_v8 = vld.sshfl [vmem:[#allocation1] sm:$0xff pattern:$0x73625140] }
 0x148   :  { %7137 = vst [vmem:[#allocation12_spill] sm:$0xff] %v5270_v8 }
 0x149   :  { %3025 = vst [vmem:[#allocation1] ss:$4 sm:$0xff] %v1369_v5  ;;  %v1401_v5 = vperm.slane %v5204_v28, %v4885_v59 }
 0x14a   :  { %3026 = vst [vmem:[#allocation1 + $0x1] ss:$4 sm:$0xff] %v1373_v17  ;;  %v1405_v17 = vperm.slane %v5204_v28, %v4887_v60  ;;  %v5325_v28 = vpop.xlane.xlu0 %414 }
 0x14b   :  { %3027 = vst [vmem:[#allocation1 + $0x2] ss:$4 sm:$0xff] %v1377_v18  ;;  %v5286_v57 = vld.sshfl [vmem:[#allocation1 + $0x20] sm:$0xff pattern:$0x73625140] }
 0x14c   :  { %7138 = vst [vmem:[#allocation13_spill] sm:$0xff] %v5286_v57 }
 0x14d   :  { %3028 = vst [vmem:[#allocation1 + $0x3] ss:$4 sm:$0xff] %v1381_v32  ;;  %v4691_v32 = vld [vmem:[%s7107_s0 + $0x1a0] sm:$0xff]  }
 0x14e   :  { %3019 = vst [vmem:[#allocation1 + $0x20] ss:$4 sm:$0xff] %v1353_v38  ;;  %v1385_v38 = vperm.slane %v5230_v4, %v4885_v59 }
 0x14f   :  { %3020 = vst [vmem:[#allocation1 + $0x21] ss:$4 sm:$0xff] %v1357_v42  ;;  %v4594_v42 = vunpack.c.l.bf16 %v4691_v32 }
 0x150   :  { %3021 = vst [vmem:[#allocation1 + $0x22] ss:$4 sm:$0xff] %v1361_v44  ;;  %v4590_v44 = vunpack.c.l.bf16 %v4690_v48  ;;  %v1397_v48 = vperm.slane %v5230_v4, %v4891_v63  ;;  %v5342_v4 = vpop.xlane.xlu2 %438 }
 0x151   :  { %3022 = vst [vmem:[#allocation1 + $0x23] ss:$4 sm:$0xff] %v1365_v15 }
 0x154   :  { %v5301_v18 = vld.sshfl [vmem:[#allocation1] sm:$0xff pattern:$0x73625140] }
 0x155   :  { %7139 = vst [vmem:[#allocation14_spill] sm:$0xff] %v5301_v18  ;;  %v1429_v18 = vperm.slane %v5267_v3, %v4891_v63 }
 0x156   :  { %3035 = vst [vmem:[#allocation1] ss:$4 sm:$0xff] %v1401_v5  ;;  %v590_v5 = vsel %vm277_vm0, %v4594_v42, 0.0  ;;  %v1437_v42 = vperm.slane %v5255_v52, %v4887_v60 }
 0x157   :  { %3036 = vst [vmem:[#allocation1 + $0x1] ss:$4 sm:$0xff] %v1405_v17  ;;  %v587_v17 = vsel %vm277_vm0, %v4591_v13, 0.0  ;;  %591 = vadd.xlane.f32.xlu2 %v590_v5  ;;  %v5338_v13 = vpop.xlane.xlu1 %426 }
 0x158   :  { %3037 = vst [vmem:[#allocation1 + $0x2] ss:$4 sm:$0xff] %v1409_v53  ;;  %v5319_v15 = vld.sshfl [vmem:[#allocation1 + $0x20] sm:$0xff pattern:$0x73625140]  ;;  %v584_v53 = vsel %vm277_vm0, %v4590_v44, 0.0  ;;  %588 = vadd.xlane.f32.xlu1 %v587_v17  ;;  %v1441_v44 = vperm.slane %v5255_v52, %v4889_v61  ;;  %v1421_v17 = vperm.slane %v5267_v3, %v4887_v60 }
 0x159   :  { %7140 = vst [vmem:[#allocation15_spill] sm:$0xff] %v5319_v15  ;;  %585 = vadd.xlane.f32.xlu0 %v584_v53  ;;  %v5352_v53 = vpop.xlane.xlu0 %423 }
 0x15a   :  { %3038 = vst [vmem:[#allocation1 + $0x3] ss:$4 sm:$0xff] %v1413_v34  ;;  %v1433_v34 = vperm.slane %v5255_v52, %v4885_v59  ;;  %v1569_v15 = vperm.slane %v5352_v53, %v4889_v61 }
 0x15b   :  { %3029 = vst [vmem:[#allocation1 + $0x20] ss:$4 sm:$0xff] %v1385_v38 }
 0x15c   :  { %3030 = vst [vmem:[#allocation1 + $0x21] ss:$4 sm:$0xff] %v1389_v58  ;;  %v1445_v58 = vperm.slane %v5255_v52, %v4891_v63  ;;  %v1425_v52 = vperm.slane %v5267_v3, %v4889_v61 }
 0x15d   :  { %3031 = vst [vmem:[#allocation1 + $0x22] ss:$4 sm:$0xff] %v1393_v49  ;;  %v1417_v49 = vperm.slane %v5267_v3, %v4885_v59  ;;  %v1469_v3 = vperm.slane %v5293_v56, %v4887_v60 }
 0x15e   :  { %3032 = vst [vmem:[#allocation1 + $0x23] ss:$4 sm:$0xff] %v1397_v48  ;;  %v4692_v48 = vld [vmem:[%s7107_s0 + $0x1a8] sm:$0xff]  }
 0x15f   :  { %v5366_v8 = vpop.xlane.xlu1 %435 }
 0x161   :  { %v5334_v38 = vld.sshfl [vmem:[#allocation1] sm:$0xff pattern:$0x73625140] }
 0x162   :  { %7141 = vst [vmem:[#allocation16_spill] sm:$0xff] %v5334_v38  ;;  %v1497_v38 = vperm.slane %v5261_v23, %v4885_v59 }
 0x163   :  { %3045 = vst [vmem:[#allocation1] ss:$4 sm:$0xff] %v1433_v34  ;;  %v4599_v34 = vunpack.c.h.bf16 %v4692_v48 }
 0x164   :  { %3046 = vst [vmem:[#allocation1 + $0x1] ss:$4 sm:$0xff] %v1437_v42  ;;  %v4598_v42 = vunpack.c.l.bf16 %v4692_v48  ;;  %v1473_v48 = vperm.slane %v5293_v56, %v4889_v61 }
 0x165   :  { %3047 = vst [vmem:[#allocation1 + $0x2] ss:$4 sm:$0xff] %v1441_v44  ;;  %v5348_v5 = vld.sshfl [vmem:[#allocation1 + $0x20] sm:$0xff pattern:$0x73625140]  ;;  %v4595_v44 = vunpack.c.h.bf16 %v4691_v32 }
 0x166   :  { %7142 = vst [vmem:[#allocation17_spill] sm:$0xff] %v5348_v5  ;;  %v596_v5 = vsel %vm277_vm0, %v4598_v42, 0.0  ;;  %v4694_v42 = vld [vmem:[%s7107_s0 + $0x1b8] sm:$0xff]  }
 0x167   :  { %3048 = vst [vmem:[#allocation1 + $0x3] ss:$4 sm:$0xff] %v1445_v58  ;;  %v599_v58 = vsel %vm277_vm0, %v4599_v34, 0.0  ;;  %v593_v57 = vsel %vm277_vm0, %v4595_v44, 0.0  ;;  %597 = vadd.xlane.f32.xlu1 %v596_v5  ;;  %v1449_v5 = vperm.slane %v5234_v21, %v4885_v59  ;;  %v4693_v44 = vld [vmem:[%s7107_s0 + $0x1b0] sm:$0xff]  }
 0x168   :  { %3039 = vst [vmem:[#allocation1 + $0x20] ss:$4 sm:$0xff] %v1417_v49  ;;  %600 = vadd.xlane.f32.xlu2 %v599_v58  ;;  %v1465_v49 = vperm.slane %v5293_v56, %v4885_v59  ;;  %594 = vadd.xlane.f32.xlu0 %v593_v57  ;;  %v5380_v57 = vpop.xlane.xlu0 %432  ;;  %v1461_v58 = vperm.slane %v5234_v21, %v4891_v63 }
 0x169   :  { %3040 = vst [vmem:[#allocation1 + $0x21] ss:$4 sm:$0xff] %v1421_v17  ;;  %v5372_v17 = vpop.xlane.xlu2 %447 }
 0x16a   :  { %3041 = vst [vmem:[#allocation1 + $0x22] ss:$4 sm:$0xff] %v1425_v52  ;;  %v1453_v52 = vperm.slane %v5234_v21, %v4887_v60 }
 0x16b   :  { %3042 = vst [vmem:[#allocation1 + $0x23] ss:$4 sm:$0xff] %v1429_v18  ;;  %v1477_v18 = vperm.slane %v5293_v56, %v4891_v63  ;;  %v1457_v56 = vperm.slane %v5234_v21, %v4889_v61  ;;  %v1501_v21 = vperm.slane %v5261_v23, %v4887_v60 }
 0x16e   :  { %v5368_v32 = vld.sshfl [vmem:[#allocation1] sm:$0xff pattern:$0x73625140] }
 0x16f   :  { %7143 = vst [vmem:[#allocation18_spill] sm:$0xff] %v5368_v32 }
 0x170   :  { %3055 = vst [vmem:[#allocation1] ss:$4 sm:$0xff] %v1465_v49  ;;  %v4606_v49 = vunpack.c.l.bf16 %v4694_v42 }
 0x171   :  { %3056 = vst [vmem:[#allocation1 + $0x1] ss:$4 sm:$0xff] %v1469_v3  ;;  %v4603_v3 = vunpack.c.h.bf16 %v4693_v44  ;;  %v5403_v43 = vpop.xlane.xlu2 %456 }
 0x172   :  { %3057 = vst [vmem:[#allocation1 + $0x2] ss:$4 sm:$0xff] %v1473_v48  ;;  %v5384_v34 = vld.sshfl [vmem:[#allocation1 + $0x20] sm:$0xff pattern:$0x73625140]  ;;  %v4602_v48 = vunpack.c.l.bf16 %v4693_v44  ;;  %v1509_v44 = vperm.slane %v5261_v23, %v4891_v63 }
 0x173   :  { %7144 = vst [vmem:[#allocation19_spill] sm:$0xff] %v5384_v34  ;;  %v605_v34 = vsel %vm277_vm0, %v4603_v3, 0.0  ;;  %v1489_v3 = vperm.slane %v5278_v25, %v4889_v61 }
 0x174   :  { %3058 = vst [vmem:[#allocation1 + $0x3] ss:$4 sm:$0xff] %v1477_v18  ;;  %v608_v18 = vsel %vm277_vm0, %v4606_v49, 0.0  ;;  %v602_v32 = vsel %vm277_vm0, %v4602_v48, 0.0  ;;  %606 = vadd.xlane.f32.xlu1 %v605_v34  ;;  %v1481_v49 = vperm.slane %v5278_v25, %v4885_v59  ;;  %v1485_v34 = vperm.slane %v5278_v25, %v4887_v60 }
 0x175   :  { %3049 = vst [vmem:[#allocation1 + $0x20] ss:$4 sm:$0xff] %v1449_v5  ;;  %v5399_v5 = vpop.xlane.xlu1 %444  ;;  %609 = vadd.xlane.f32.xlu2 %v608_v18  ;;  %603 = vadd.xlane.f32.xlu0 %v602_v32 }
 0x176   :  { %3050 = vst [vmem:[#allocation1 + $0x21] ss:$4 sm:$0xff] %v1453_v52 }
 0x177   :  { %3051 = vst [vmem:[#allocation1 + $0x22] ss:$4 sm:$0xff] %v1457_v56  ;;  %v1505_v56 = vperm.slane %v5261_v23, %v4889_v61  ;;  %v1493_v23 = vperm.slane %v5278_v25, %v4891_v63 }
 0x178   :  { %3052 = vst [vmem:[#allocation1 + $0x23] ss:$4 sm:$0xff] %v1461_v58  ;;  %v5413_v58 = vpop.xlane.xlu0 %441 }
 0x17b   :  { %v5407_v52 = vld.sshfl [vmem:[#allocation1] sm:$0xff pattern:$0x73625140] }
 0x17c   :  { %7145 = vst [vmem:[#allocation20_spill] sm:$0xff] %v5407_v52 }
 0x17d   :  { %3065 = vst [vmem:[#allocation1] ss:$4 sm:$0xff] %v1497_v38  ;;  %v4695_v38 = vld [vmem:[%s7107_s0 + $0x1c0] sm:$0xff]   ;;  %v5428_v48 = vpop.xlane.xlu1 %453 }
 0x17e   :  { %3066 = vst [vmem:[#allocation1 + $0x1] ss:$4 sm:$0xff] %v1501_v21  ;;  %v4611_v18 = vunpack.c.h.bf16 %v4695_v38  ;;  %v4610_v21 = vunpack.c.l.bf16 %v4695_v38 }
 0x17f   :  { %3067 = vst [vmem:[#allocation1 + $0x2] ss:$4 sm:$0xff] %v1505_v56  ;;  %v5417_v32 = vld.sshfl [vmem:[#allocation1 + $0x20] sm:$0xff pattern:$0x73625140]  ;;  %v4607_v56 = vunpack.c.h.bf16 %v4694_v42  ;;  %v1537_v42 = vperm.slane %v5305_v22, %v4889_v61 }
 0x180   :  { %7146 = vst [vmem:[#allocation21_spill] sm:$0xff] %v5417_v32  ;;  %v617_v52 = vsel %vm277_vm0, %v4611_v18, 0.0  ;;  %v614_v25 = vsel %vm277_vm0, %v4610_v21, 0.0  ;;  %v5443_v38 = vpop.xlane.xlu0 %450  ;;  %v1541_v18 = vperm.slane %v5305_v22, %v4891_v63  ;;  %v1513_v21 = vperm.slane %v5325_v28, %v4885_v59 }
 0x181   :  { %3068 = vst [vmem:[#allocation1 + $0x3] ss:$4 sm:$0xff] %v1509_v44  ;;  %v5430_v44 = vpop.xlane.xlu2 %465  ;;  %618 = vadd.xlane.f32.xlu2 %v617_v52  ;;  %615 = vadd.xlane.f32.xlu1 %v614_v25  ;;  %v1517_v52 = vperm.slane %v5325_v28, %v4887_v60  ;;  %v1525_v25 = vperm.slane %v5325_v28, %v4891_v63 }
 0x182   :  { %3059 = vst [vmem:[#allocation1 + $0x20] ss:$4 sm:$0xff] %v1481_v49  ;;  %v1529_v49 = vperm.slane %v5305_v22, %v4885_v59 }
 0x183   :  { %3060 = vst [vmem:[#allocation1 + $0x21] ss:$4 sm:$0xff] %v1485_v34  ;;  %v611_v34 = vsel %vm277_vm0, %v4607_v56, 0.0 }
 0x184   :  { %3061 = vst [vmem:[#allocation1 + $0x22] ss:$4 sm:$0xff] %v1489_v3  ;;  %612 = vadd.xlane.f32.xlu0 %v611_v34  ;;  %v4697_v34 = vld [vmem:[%s7107_s0 + $0x1d0] sm:$0xff]  }
 0x185   :  { %3062 = vst [vmem:[#allocation1 + $0x23] ss:$4 sm:$0xff] %v1493_v23  ;;  %v1533_v23 = vperm.slane %v5305_v22, %v4887_v60  ;;  %v5457_v22 = vpop.xlane.xlu1 %462 }
 0x188   :  { %v5437_v3 = vld.sshfl [vmem:[#allocation1] sm:$0xff pattern:$0x73625140] }
 0x189   :  { %7147 = vst [vmem:[#allocation22_spill] sm:$0xff] %v5437_v3  ;;  %v5473_v3 = vpop.xlane.xlu0 %459 }
 0x18a   :  { %3075 = vst [vmem:[#allocation1] ss:$4 sm:$0xff] %v1529_v49  ;;  %v1521_v49 = vperm.slane %v5325_v28, %v4889_v61  ;;  %v1561_v28 = vperm.slane %v5352_v53, %v4885_v59 }
 0x18b   :  { %3076 = vst [vmem:[#allocation1 + $0x1] ss:$4 sm:$0xff] %v1533_v23  ;;  %v4696_v23 = vld [vmem:[%s7107_s0 + $0x1c8] sm:$0xff]  }
 0x18c   :  { %3077 = vst [vmem:[#allocation1 + $0x2] ss:$4 sm:$0xff] %v1537_v42  ;;  %v5449_v56 = vld.sshfl [vmem:[#allocation1 + $0x20] sm:$0xff pattern:$0x73625140]  ;;  %v5465_v42 = vpop.xlane.xlu2 %474 }
 0x18d   :  { %7148 = vst [vmem:[#allocation23_spill] sm:$0xff] %v5449_v56  ;;  %v4614_v56 = vunpack.c.l.bf16 %v4696_v23 }
 0x18e   :  { %3078 = vst [vmem:[#allocation1 + $0x3] ss:$4 sm:$0xff] %v1541_v18  ;;  %v4618_v18 = vunpack.c.l.bf16 %v4697_v34 }
 0x18f   :  { %3069 = vst [vmem:[#allocation1 + $0x20] ss:$4 sm:$0xff] %v1513_v21  ;;  %v4615_v21 = vunpack.c.h.bf16 %v4696_v23  ;;  %v1573_v23 = vperm.slane %v5352_v53, %v4891_v63 }
 0x190   :  { %3070 = vst [vmem:[#allocation1 + $0x21] ss:$4 sm:$0xff] %v1517_v52  ;;  %v626_v32 = vsel %vm277_vm0, %v4618_v18, 0.0  ;;  %v1549_v18 = vperm.slane %v5282_v39, %v4887_v60 }
 0x191   :  { %3071 = vst [vmem:[#allocation1 + $0x22] ss:$4 sm:$0xff] %v1521_v49  ;;  %v1565_v49 = vperm.slane %v5352_v53, %v4887_v60  ;;  %v623_v55 = vsel %vm277_vm0, %v4615_v21, 0.0  ;;  %627 = vadd.xlane.f32.xlu2 %v626_v32  ;;  %v1557_v53 = vperm.slane %v5282_v39, %v4891_v63 }
 0x192   :  { %3072 = vst [vmem:[#allocation1 + $0x23] ss:$4 sm:$0xff] %v1525_v25  ;;  %v620_v25 = vsel %vm277_vm0, %v4614_v56, 0.0  ;;  %624 = vadd.xlane.f32.xlu1 %v623_v55  ;;  %v1553_v56 = vperm.slane %v5282_v39, %v4889_v61  ;;  %v5492_v55 = vpop.xlane.xlu1 %471 }
 0x193   :  { %621 = vadd.xlane.f32.xlu0 %v620_v25 }
 0x194   :  { %v5494_v32 = vpop.xlane.xlu2 %483 }
 0x195   :  { %v5469_v52 = vld.sshfl [vmem:[#allocation1] sm:$0xff pattern:$0x73625140] }
 0x196   :  { %7149 = vst [vmem:[#allocation24_spill] sm:$0xff] %v5469_v52  ;;  %v1545_v52 = vperm.slane %v5282_v39, %v4885_v59 }
 0x197   :  { %3085 = vst [vmem:[#allocation1] ss:$4 sm:$0xff] %v1561_v28  ;;  %v5498_v28 = vpop.xlane.xlu0 %468 }
 0x198   :  { %3086 = vst [vmem:[#allocation1 + $0x1] ss:$4 sm:$0xff] %v1565_v49  ;;  %v4698_v49 = vld [vmem:[%s7107_s0 + $0x1d8] sm:$0xff]  }
 0x199   :  { %3087 = vst [vmem:[#allocation1 + $0x2] ss:$4 sm:$0xff] %v1569_v15  ;;  %v5486_v21 = vld.sshfl [vmem:[#allocation1 + $0x20] sm:$0xff pattern:$0x73625140]  ;;  %v1593_v15 = vperm.slane %v5315_v37, %v4885_v59  ;;  %v4623_v25 = vunpack.c.h.bf16 %v4698_v49 }
 0x19a   :  { %7150 = vst [vmem:[#allocation25_spill] sm:$0xff] %v5486_v21 }
 0x19b   :  { %3088 = vst [vmem:[#allocation1 + $0x3] ss:$4 sm:$0xff] %v1573_v23  ;;  %v4622_v23 = vunpack.c.l.bf16 %v4698_v49  ;;  %v635_v21 = vsel %vm277_vm0, %v4623_v25, 0.0 }
 0x19c   :  { %3079 = vst [vmem:[#allocation1 + $0x20] ss:$4 sm:$0xff] %v1545_v52  ;;  %v1597_v52 = vperm.slane %v5315_v37, %v4887_v60  ;;  %636 = vadd.xlane.f32.xlu2 %v635_v21  ;;  %v5526_v25 = vpop.xlane.xlu2 %492  ;;  %v4700_v21 = vld [vmem:[%s7107_s0 + $0x1e8] sm:$0xff]  }
 0x19d   :  { %3080 = vst [vmem:[#allocation1 + $0x21] ss:$4 sm:$0xff] %v1549_v18  ;;  %v4619_v18 = vunpack.c.h.bf16 %v4697_v34  ;;  %v632_v20 = vsel %vm277_vm0, %v4622_v23, 0.0  ;;  %v1581_v34 = vperm.slane %v5338_v13, %v4887_v60 }
 0x19e   :  { %3081 = vst [vmem:[#allocation1 + $0x22] ss:$4 sm:$0xff] %v1553_v56  ;;  %v1601_v56 = vperm.slane %v5315_v37, %v4889_v61  ;;  %633 = vadd.xlane.f32.xlu1 %v632_v20  ;;  %v1625_v20 = vperm.slane %v5366_v8, %v4885_v59 }
 0x19f   :  { %3082 = vst [vmem:[#allocation1 + $0x23] ss:$4 sm:$0xff] %v1557_v53  ;;  %v1605_v53 = vperm.slane %v5315_v37, %v4891_v63  ;;  %v629_v12 = vsel %vm277_vm0, %v4619_v18, 0.0  ;;  %v1585_v37 = vperm.slane %v5338_v13, %v4889_v61  ;;  %v5528_v23 = vpop.xlane.xlu0 %477  ;;  %v1633_v18 = vperm.slane %v5366_v8, %v4889_v61 }
 0x1a0   :  { %630 = vadd.xlane.f32.xlu0 %v629_v12  ;;  %v4699_v12 = vld [vmem:[%s7107_s0 + $0x1e0] sm:$0xff]  }
 0x1a2   :  { %v5505_v39 = vld.sshfl [vmem:[#allocation1] sm:$0xff pattern:$0x73625140] }
 0x1a3   :  { %7151 = vst [vmem:[#allocation26_spill] sm:$0xff] %v5505_v39  ;;  %v1577_v39 = vperm.slane %v5338_v13, %v4885_v59 }
 0x1a4   :  { %3095 = vst [vmem:[#allocation1] ss:$4 sm:$0xff] %v1593_v15  ;;  %v5522_v15 = vpop.xlane.xlu1 %480 }
 0x1a5   :  { %3096 = vst [vmem:[#allocation1 + $0x1] ss:$4 sm:$0xff] %v1597_v52  ;;  %v1589_v52 = vperm.slane %v5338_v13, %v4891_v63  ;;  %v1629_v13 = vperm.slane %v5366_v8, %v4887_v60 }
 0x1a6   :  { %3097 = vst [vmem:[#allocation1 + $0x2] ss:$4 sm:$0xff] %v1601_v56  ;;  %v5516_v49 = vld.sshfl [vmem:[#allocation1 + $0x20] sm:$0xff pattern:$0x73625140]  ;;  %v4630_v56 = vunpack.c.l.bf16 %v4700_v21 }
 0x1a7   :  { %7152 = vst [vmem:[#allocation27_spill] sm:$0xff] %v5516_v49 }
 0x1a8   :  { %3098 = vst [vmem:[#allocation1 + $0x3] ss:$4 sm:$0xff] %v1605_v53  ;;  %v4627_v53 = vunpack.c.h.bf16 %v4699_v12 }
 0x1a9   :  { %3089 = vst [vmem:[#allocation1 + $0x20] ss:$4 sm:$0xff] %v1577_v39 }
 0x1aa   :  { %3090 = vst [vmem:[#allocation1 + $0x21] ss:$4 sm:$0xff] %v1581_v34  ;;  %v4626_v34 = vunpack.c.l.bf16 %v4699_v12  ;;  %v641_v49 = vsel %vm277_vm0, %v4627_v53, 0.0  ;;  %v1657_v53 = vperm.slane %v5413_v58, %v4885_v59 }
 0x1ab   :  { %3091 = vst [vmem:[#allocation1 + $0x22] ss:$4 sm:$0xff] %v1585_v37  ;;  %v1637_v37 = vperm.slane %v5366_v8, %v4891_v63  ;;  %v1617_v8 = vperm.slane %v5380_v57, %v4889_v61  ;;  %642 = vadd.xlane.f32.xlu1 %v641_v49  ;;  %v1665_v49 = vperm.slane %v5413_v58, %v4889_v61 }
 0x1ac   :  { %3092 = vst [vmem:[#allocation1 + $0x23] ss:$4 sm:$0xff] %v1589_v52  ;;  %v1609_v52 = vperm.slane %v5380_v57, %v4885_v59  ;;  %v638_v19 = vsel %vm277_vm0, %v4626_v34, 0.0  ;;  %v5555_v12 = vpop.xlane.xlu1 %489 }
 0x1ad   :  { %639 = vadd.xlane.f32.xlu0 %v638_v19  ;;  %v4701_v19 = vld [vmem:[%s7107_s0 + $0x1f0] sm:$0xff]  }
 0x1af   :  { %v5538_v39 = vld.sshfl [vmem:[#allocation1] sm:$0xff pattern:$0x73625140] }
 0x1b0   :  { %7153 = vst [vmem:[#allocation28_spill] sm:$0xff] %v5538_v39  ;;  %v644_v39 = vsel %vm277_vm0, %v4630_v56, 0.0  ;;  %v5563_v56 = vpop.xlane.xlu0 %486 }
 0x1b1   :  { %3105 = vst [vmem:[#allocation1] ss:$4 sm:$0xff] %v1625_v20  ;;  %v1613_v20 = vperm.slane %v5380_v57, %v4887_v60  ;;  %645 = vadd.xlane.f32.xlu2 %v644_v39  ;;  %v1641_v39 = vperm.slane %v5342_v4, %v4885_v59 }
 0x1b2   :  { %3106 = vst [vmem:[#allocation1 + $0x1] ss:$4 sm:$0xff] %v1629_v13  ;;  %v5559_v13 = vpop.xlane.xlu2 %501 }
 0x1b3   :  { %3107 = vst [vmem:[#allocation1 + $0x2] ss:$4 sm:$0xff] %v1633_v18  ;;  %v5551_v0 = vld.sshfl [vmem:[#allocation1 + $0x20] sm:$0xff pattern:$0x73625140]  ;;  %v1621_v18 = vperm.slane %v5380_v57, %v4891_v63  ;;  %v1669_v57 = vperm.slane %v5413_v58, %v4891_v63 }
 0x1b4   :  { %7154 = vst [vmem:[#allocation29_spill] sm:$0xff] %v5551_v0 }
 0x1b5   :  { %3108 = vst [vmem:[#allocation1 + $0x3] ss:$4 sm:$0xff] %v1637_v37  ;;  %v1661_v37 = vperm.slane %v5413_v58, %v4887_v60 }
 0x1b6   :  { %3099 = vst [vmem:[#allocation1 + $0x20] ss:$4 sm:$0xff] %v1609_v52  ;;  %v5580_v52 = vpop.xlane.xlu1 %498 }
 0x1b7   :  { %3100 = vst [vmem:[#allocation1 + $0x21] ss:$4 sm:$0xff] %v1613_v20  ;;  %v4635_v20 = vunpack.c.h.bf16 %v4701_v19 }
 0x1b8   :  { %3101 = vst [vmem:[#allocation1 + $0x22] ss:$4 sm:$0xff] %v1617_v8  ;;  %v4634_v8 = vunpack.c.l.bf16 %v4701_v19  ;;  %v5595_v19 = vpop.xlane.xlu0 %495 }
 0x1b9   :  { %3102 = vst [vmem:[#allocation1 + $0x23] ss:$4 sm:$0xff] %v1621_v18  ;;  %v4631_v18 = vunpack.c.h.bf16 %v4700_v21  ;;  %v653_v0 = vsel %vm277_vm0, %v4635_v20, 0.0  ;;  %v1653_v21 = vperm.slane %v5342_v4, %v4891_v63 }
 0x1ba   :  { %7156 = vst [vmem:[#allocation31_spill] sm:$0xff] %v5580_v52  ;;  %v5586_v58 = vpop.xlane.xlu2 %510  ;;  %654 = vadd.xlane.f32.xlu2 %v653_v0 }
 0x1bb   :  { %v647_v52 = vsel %vm277_vm0, %v4631_v18, 0.0  ;;  %v1673_v18 = vperm.slane %v5399_v5, %v4885_v59 }
 0x1bc   :  { %v5567_v34 = vld.sshfl [vmem:[#allocation1] sm:$0xff pattern:$0x73625140]  ;;  %648 = vadd.xlane.f32.xlu0 %v647_v52  ;;  %v4702_v52 = vld [vmem:[%s7107_s0 + $0x1f8] sm:$0xff]  }
 0x1bd   :  { %7155 = vst [vmem:[#allocation30_spill] sm:$0xff] %v5567_v34 }
 0x1be   :  { %3115 = vst [vmem:[#allocation1] ss:$4 sm:$0xff] %v1657_v53  ;;  %v1645_v53 = vperm.slane %v5342_v4, %v4887_v60  ;;  %v5607_v0 = vpop.xlane.xlu1 %507 }
 0x1bf   :  { %3116 = vst [vmem:[#allocation1 + $0x1] ss:$4 sm:$0xff] %v1661_v37  ;;  %v1649_v37 = vperm.slane %v5342_v4, %v4889_v61  ;;  %v1701_v4 = vperm.slane %v5372_v17, %v4891_v63 }
 0x1c0   :  { %3117 = vst [vmem:[#allocation1 + $0x2] ss:$4 sm:$0xff] %v1665_v49  ;;  %v5584_v34 = vld.sshfl [vmem:[#allocation1 + $0x20] sm:$0xff pattern:$0x73625140]  ;;  %v650_v49 = vsel %vm277_vm0, %v4634_v8, 0.0  ;;  %v1697_v8 = vperm.slane %v5372_v17, %v4889_v61 }
 0x1c1   :  { %7157 = vst [vmem:[#allocation32_spill] sm:$0xff] %v5584_v34  ;;  %651 = vadd.xlane.f32.xlu1 %v650_v49  ;;  %v1677_v49 = vperm.slane %v5399_v5, %v4887_v60 }
 0x1c2   :  { %3118 = vst [vmem:[#allocation1 + $0x3] ss:$4 sm:$0xff] %v1669_v57  ;;  %v1689_v57 = vperm.slane %v5372_v17, %v4885_v59 }
 0x1c3   :  { %3109 = vst [vmem:[#allocation1 + $0x20] ss:$4 sm:$0xff] %v1641_v39  ;;  %v1693_v39 = vperm.slane %v5372_v17, %v4887_v60  ;;  %v4639_v17 = vunpack.c.h.bf16 %v4702_v52 }
 0x1c4   :  { %3110 = vst [vmem:[#allocation1 + $0x21] ss:$4 sm:$0xff] %v1645_v53  ;;  %v5614_v53 = vpop.xlane.xlu2 %519 }
 0x1c5   :  { %3111 = vst [vmem:[#allocation1 + $0x22] ss:$4 sm:$0xff] %v1649_v37 }
 0x1c6   :  { %3112 = vst [vmem:[#allocation1 + $0x23] ss:$4 sm:$0xff] %v1653_v21  ;;  %v4638_v21 = vunpack.c.l.bf16 %v4702_v52 }
 0x1c8   :  { %v656_v34 = vsel %vm277_vm0, %v4638_v21, 0.0 }
 0x1c9   :  { %v5601_v20 = vld.sshfl [vmem:[#allocation1] sm:$0xff pattern:$0x73625140]  ;;  %657 = vadd.xlane.f32.xlu0 %v656_v34  ;;  %v1705_v34 = vperm.slane %v5443_v38, %v4885_v59 }
 0x1ca   :  { %7158 = vst [vmem:[#allocation33_spill] sm:$0xff] %v5601_v20  ;;  %v5624_v20 = vpop.xlane.xlu0 %504 }
 0x1cb   :  { %3125 = vst [vmem:[#allocation1] ss:$4 sm:$0xff] %v1689_v57  ;;  %v1681_v57 = vperm.slane %v5399_v5, %v4889_v61 }
 0x1cc   :  { %3126 = vst [vmem:[#allocation1 + $0x1] ss:$4 sm:$0xff] %v1693_v39  ;;  %v1685_v39 = vperm.slane %v5399_v5, %v4891_v63  ;;  %v1729_v5 = vperm.slane %v5428_v48, %v4889_v61  ;;  %v5640_v21 = vpop.xlane.xlu2 %528 }
 0x1cd   :  { %3127 = vst [vmem:[#allocation1 + $0x2] ss:$4 sm:$0xff] %v1697_v8  ;;  %v5616_v37 = vld.sshfl [vmem:[#allocation1 + $0x20] sm:$0xff pattern:$0x73625140]  ;;  %v659_v8 = vsel %vm277_vm0, %v4639_v17, 0.0  ;;  %v1733_v17 = vperm.slane %v5428_v48, %v4891_v63 }
 0x1ce   :  { %3128 = vst [vmem:[#allocation1 + $0x3] ss:$4 sm:$0xff] %v1701_v4  ;;  %660 = vadd.xlane.f32.xlu1 %v659_v8  ;;  %v1721_v4 = vperm.slane %v5428_v48, %v4885_v59  ;;  %v1713_v8 = vperm.slane %v5443_v38, %v4889_v61  ;;  %vm4149_vm0 = vcmask 1041409  }
 0x1cf   :  { %3119 = vst [vmem:[#allocation1 + $0x20] ss:$4 sm:$0xff] %v1673_v18  ;;  %v1725_v18 = vperm.slane %v5428_v48, %v4887_v60  ;;  %v1717_v48 = vperm.slane %v5443_v38, %v4891_v63 }
 0x1d0   :  { %3120 = vst [vmem:[#allocation1 + $0x21] ss:$4 sm:$0xff] %v1677_v49  ;;  %v5636_v49 = vpop.xlane.xlu1 %516 }
 0x1d1   :  { %3121 = vst [vmem:[#allocation1 + $0x22] ss:$4 sm:$0xff] %v1681_v57 }
 0x1d2   :  { %3122 = vst [vmem:[#allocation1 + $0x23] ss:$4 sm:$0xff] %v1685_v39  ;;  %v1709_v39 = vperm.slane %v5443_v38, %v4887_v60  ;;  %v1765_v38 = vperm.slane %v5473_v3, %v4891_v63 }
 0x1d5   :  { %v5630_v52 = vld.sshfl [vmem:[#allocation1] sm:$0xff pattern:$0x73625140] }
 0x1d6   :  { %7159 = vst [vmem:[#allocation34_spill] sm:$0xff] %v5630_v52  ;;  %v5664_v52 = vpop.xlane.xlu2 %537 }
 0x1d7   :  { %3135 = vst [vmem:[#allocation1] ss:$4 sm:$0xff] %v1721_v4  ;;  %v5650_v4 = vpop.xlane.xlu0 %513 }
 0x1d8   :  { %3136 = vst [vmem:[#allocation1 + $0x1] ss:$4 sm:$0xff] %v1725_v18  ;;  %v1753_v18 = vperm.slane %v5473_v3, %v4885_v59 }
 0x1d9   :  { %3137 = vst [vmem:[#allocation1 + $0x2] ss:$4 sm:$0xff] %v1729_v5  ;;  %v5644_v57 = vld.sshfl [vmem:[#allocation1 + $0x20] sm:$0xff pattern:$0x73625140] }
 0x1da   :  { %7160 = vst [vmem:[#allocation35_spill] sm:$0xff] %v5644_v57  ;;  %v5660_v57 = vpop.xlane.xlu1 %525 }
 0x1db   :  { %3138 = vst [vmem:[#allocation1 + $0x3] ss:$4 sm:$0xff] %v1733_v17  ;;  %v1757_v17 = vperm.slane %v5473_v3, %v4887_v60 }
 0x1dc   :  { %3129 = vst [vmem:[#allocation1 + $0x20] ss:$4 sm:$0xff] %v1705_v34  ;;  %v1761_v34 = vperm.slane %v5473_v3, %v4889_v61  ;;  %v1749_v3 = vperm.slane %v5403_v43, %v4891_v63 }
 0x1dd   :  { %3130 = vst [vmem:[#allocation1 + $0x21] ss:$4 sm:$0xff] %v1709_v39  ;;  %v1737_v39 = vperm.slane %v5403_v43, %v4885_v59 }
 0x1de   :  { %3131 = vst [vmem:[#allocation1 + $0x22] ss:$4 sm:$0xff] %v1713_v8  ;;  %v1741_v8 = vperm.slane %v5403_v43, %v4887_v60 }
 0x1df   :  { %3132 = vst [vmem:[#allocation1 + $0x23] ss:$4 sm:$0xff] %v1717_v48 }
 0x1e2   :  { %v5656_v5 = vld.sshfl [vmem:[#allocation1] sm:$0xff pattern:$0x73625140] }
 0x1e3   :  { %7161 = vst [vmem:[#allocation36_spill] sm:$0xff] %v5656_v5  ;;  %v5674_v5 = vpop.xlane.xlu0 %522 }
 0x1e4   :  { %3145 = vst [vmem:[#allocation1] ss:$4 sm:$0xff] %v1753_v18  ;;  %v1745_v18 = vperm.slane %v5403_v43, %v4889_v61 }
 0x1e5   :  { %3146 = vst [vmem:[#allocation1 + $0x1] ss:$4 sm:$0xff] %v1757_v17  ;;  %v4746_v17 = vmov 0  }
 0x1e6   :  { %3147 = vst [vmem:[#allocation1 + $0x2] ss:$4 sm:$0xff] %v1761_v34  ;;  %v5672_v48 = vld.sshfl [vmem:[#allocation1 + $0x20] sm:$0xff pattern:$0x73625140]  ;;  %4709 = vset.pattern.permute.xlu2 %v4746_v17  ;;  %4710 = vset.pattern.permute.xlu0 %v4746_v17  ;;  %v1785_v34 = vperm.slane %v5430_v44, %v4885_v59 }
 0x1e7   :  { %3148 = vst [vmem:[#allocation1 + $0x3] ss:$4 sm:$0xff] %v1765_v38  ;;  %3486 = vperm.xlu2 %4709, %v4918_v26   ;;  %3489 = vperm.xlu0 %4710, %v4940_v50   ;;  %v5684_v38 = vpop.xlane.xlu1 %534  ;;  %v1793_v26 = vperm.slane %v5430_v44, %v4889_v61  ;;  %v1797_v50 = vperm.slane %v5430_v44, %v4891_v63 }
 0x1e8   :  { %3139 = vst [vmem:[#allocation1 + $0x20] ss:$4 sm:$0xff] %v1737_v39  ;;  %4711 = vset.pattern.permute.xlu1 %v4746_v17  ;;  %v1789_v39 = vperm.slane %v5430_v44, %v4887_v60  ;;  %v1781_v44 = vperm.slane %v5457_v22, %v4891_v63 }
 0x1e9   :  { %3140 = vst [vmem:[#allocation1 + $0x21] ss:$4 sm:$0xff] %v1741_v8  ;;  %v5690_v8 = vpop.xlane.xlu2 %546  ;;  %3492 = vperm.xlu1 %4711, %v4935_v46   ;;  %v1777_v46 = vperm.slane %v5457_v22, %v4889_v61 }
 0x1ea   :  { %3141 = vst [vmem:[#allocation1 + $0x22] ss:$4 sm:$0xff] %v1745_v18  ;;  %v1769_v18 = vperm.slane %v5457_v22, %v4885_v59 }
 0x1eb   :  { %3142 = vst [vmem:[#allocation1 + $0x23] ss:$4 sm:$0xff] %v1749_v3  ;;  %v5699_v3 = vpop.xlane.xlu0 %531 }
 0x1ee   :  { %v5688_v43 = vld.sshfl [vmem:[#allocation1] sm:$0xff pattern:$0x73625140] }
 0x1ef   :  { %7162 = vst [vmem:[#allocation37_spill] sm:$0xff] %v5688_v43  ;;  %v1773_v43 = vperm.slane %v5457_v22, %v4887_v60  ;;  %3495 = vperm.xlu2 %4709, %v4968_v16   ;;  %3510 = vperm.xlu0 %4710, %v4992_v45   ;;  %v1821_v22 = vperm.slane %v5492_v55, %v4887_v60 }
 0x1f0   :  { %3155 = vst [vmem:[#allocation1] ss:$4 sm:$0xff] %v1785_v34  ;;  %v5712_v34 = vpop.xlane.xlu1 %543  ;;  %v1825_v16 = vperm.slane %v5492_v55, %v4889_v61  ;;  %v1829_v45 = vperm.slane %v5492_v55, %v4891_v63 }
 0x1f1   :  { %3156 = vst [vmem:[#allocation1 + $0x1] ss:$4 sm:$0xff] %v1789_v39  ;;  %3501 = vperm.xlu1 %4711, %v4980_v31   ;;  %v1817_v39 = vperm.slane %v5492_v55, %v4885_v59  ;;  %v1809_v55 = vperm.slane %v5498_v28, %v4889_v61 }
 0x1f2   :  { %3157 = vst [vmem:[#allocation1 + $0x2] ss:$4 sm:$0xff] %v1793_v26  ;;  %v5701_v17 = vld.sshfl [vmem:[#allocation1 + $0x20] sm:$0xff pattern:$0x73625140]  ;;  %v5716_v26 = vpop.xlane.xlu2 %555 }
 0x1f3   :  { %7163 = vst [vmem:[#allocation38_spill] sm:$0xff] %v5701_v17  ;;  %v5726_v31 = vpop.xlane.xlu0 %540 }
 0x1f4   :  { %3158 = vst [vmem:[#allocation1 + $0x3] ss:$4 sm:$0xff] %v1797_v50 }
 0x1f5   :  { %3149 = vst [vmem:[#allocation1 + $0x20] ss:$4 sm:$0xff] %v1769_v18 }
 0x1f6   :  { %3150 = vst [vmem:[#allocation1 + $0x21] ss:$4 sm:$0xff] %v1773_v43  ;;  %v1801_v43 = vperm.slane %v5498_v28, %v4885_v59 }
 0x1f7   :  { %3151 = vst [vmem:[#allocation1 + $0x22] ss:$4 sm:$0xff] %v1777_v46  ;;  %3498 = vperm.xlu2 %4709, %v4954_v6   ;;  %3519 = vperm.xlu0 %4710, %v5037_v36   ;;  %v1805_v46 = vperm.slane %v5498_v28, %v4887_v60 }
 0x1f8   :  { %3152 = vst [vmem:[#allocation1 + $0x23] ss:$4 sm:$0xff] %v1781_v44  ;;  %v1813_v44 = vperm.slane %v5498_v28, %v4891_v63  ;;  %v5741_v6 = vpop.xlane.xlu1 %552 }
 0x1f9   :  { %3507 = vperm.xlu1 %4711, %v5000_v54   ;;  %v1857_v54 = vperm.slane %v5528_v23, %v4889_v61 }
 0x1fa   :  { %v5743_v36 = vpop.xlane.xlu2 %564 }
 0x1fb   :  { %v5718_v50 = vld.sshfl [vmem:[#allocation1] sm:$0xff pattern:$0x73625140]  ;;  %v5755_v28 = vpop.xlane.xlu0 %549 }
 0x1fc   :  { %7164 = vst [vmem:[#allocation39_spill] sm:$0xff] %v5718_v50 }
 0x1fd   :  { %3165 = vst [vmem:[#allocation1] ss:$4 sm:$0xff] %v1817_v39  ;;  %v1849_v39 = vperm.slane %v5528_v23, %v4885_v59 }
 0x1fe   :  { %3166 = vst [vmem:[#allocation1 + $0x1] ss:$4 sm:$0xff] %v1821_v22 }
 0x1ff   :  { %3167 = vst [vmem:[#allocation1 + $0x2] ss:$4 sm:$0xff] %v1825_v16  ;;  %v5732_v18 = vld.sshfl [vmem:[#allocation1 + $0x20] sm:$0xff pattern:$0x73625140]  ;;  %v1853_v16 = vperm.slane %v5528_v23, %v4887_v60  ;;  %3504 = vperm.xlu2 %4709, %v4977_v29   ;;  %3528 = vperm.xlu0 %4710, %v5049_v51   ;;  %v1837_v29 = vperm.slane %v5465_v42, %v4887_v60 }
 0x200   :  { %7165 = vst [vmem:[#allocation40_spill] sm:$0xff] %v5732_v18 }
 0x201   :  { %3168 = vst [vmem:[#allocation1 + $0x3] ss:$4 sm:$0xff] %v1829_v45  ;;  %v1861_v45 = vperm.slane %v5528_v23, %v4891_v63  ;;  %3516 = vperm.xlu1 %4711, %v5015_v10   ;;  %v1845_v23 = vperm.slane %v5465_v42, %v4891_v63  ;;  %v1881_v10 = vperm.slane %v5494_v32, %v4885_v59 }
 0x202   :  { %3159 = vst [vmem:[#allocation1 + $0x20] ss:$4 sm:$0xff] %v1801_v43  ;;  %v1833_v43 = vperm.slane %v5465_v42, %v4885_v59 }
 0x203   :  { %3160 = vst [vmem:[#allocation1 + $0x21] ss:$4 sm:$0xff] %v1805_v46  ;;  %v1841_v46 = vperm.slane %v5465_v42, %v4889_v61  ;;  %v5782_v42 = vpop.xlane.xlu0 %558 }
 0x204   :  { %3161 = vst [vmem:[#allocation1 + $0x22] ss:$4 sm:$0xff] %v1809_v55  ;;  %v5770_v55 = vpop.xlane.xlu1 %561 }
 0x205   :  { %3162 = vst [vmem:[#allocation1 + $0x23] ss:$4 sm:$0xff] %v1813_v44  ;;  %v5772_v44 = vpop.xlane.xlu2 %573 }
 0x207   :  { %3513 = vperm.xlu2 %4709, %v5020_v14   ;;  %3537 = vperm.xlu0 %4710, %v5094_v47   ;;  %v1893_v14 = vperm.slane %v5494_v32, %v4891_v63  ;;  %v1865_v47 = vperm.slane %v5522_v15, %v4885_v59 }
 0x208   :  { %v5747_v22 = vld.sshfl [vmem:[#allocation1] sm:$0xff pattern:$0x73625140] }
 0x209   :  { %3175 = vst [vmem:[#allocation1] ss:$4 sm:$0xff] %v1849_v39  ;;  %v1885_v39 = vperm.slane %v5494_v32, %v4887_v60  ;;  %3525 = vperm.xlu1 %4711, %v5060_v2   ;;  %v1873_v2 = vperm.slane %v5522_v15, %v4889_v61 }
 0x20a   :  { %3176 = vst [vmem:[#allocation1 + $0x1] ss:$4 sm:$0xff] %v1853_v16 }
 0x20b   :  { %3177 = vst [vmem:[#allocation1 + $0x2] ss:$4 sm:$0xff] %v1857_v54  ;;  %v1889_v54 = vperm.slane %v5494_v32, %v4889_v61  ;;  %v1877_v32 = vperm.slane %v5522_v15, %v4891_v63 }
 0x20c   :  { %v5764_v51 = vld.sshfl [vmem:[#allocation1 + $0x20] sm:$0xff pattern:$0x73625140]  ;;  %3178 = vst [vmem:[#allocation1 + $0x3] ss:$4 sm:$0xff] %v1861_v45 }
 0x20d   :  { %7166 = vst [vmem:[#allocation41_spill] sm:$0xff] %v5764_v51  ;;  %v1993_v51 = vperm.slane %v5624_v20, %v4885_v59 }
 0x20e   :  { %3169 = vst [vmem:[#allocation1 + $0x20] ss:$4 sm:$0xff] %v1833_v43  ;;  %v1869_v43 = vperm.slane %v5522_v15, %v4887_v60  ;;  %v1921_v15 = vperm.slane %v5555_v12, %v4889_v61 }
 0x20f   :  { %3170 = vst [vmem:[#allocation1 + $0x21] ss:$4 sm:$0xff] %v1837_v29  ;;  %3522 = vperm.xlu2 %4709, %v5029_v27   ;;  %3546 = vperm.xlu0 %4710, %v5103_v1   ;;  %v5801_v29 = vpop.xlane.xlu1 %570  ;;  %v1917_v1 = vperm.slane %v5555_v12, %v4887_v60 }
 0x210   :  { %3171 = vst [vmem:[#allocation1 + $0x22] ss:$4 sm:$0xff] %v1841_v46  ;;  %v5803_v46 = vpop.xlane.xlu2 %582 }
 0x211   :  { %3172 = vst [vmem:[#allocation1 + $0x23] ss:$4 sm:$0xff] %v1845_v23  ;;  %3534 = vperm.xlu1 %4711, %v5066_v11   ;;  %v1913_v23 = vperm.slane %v5555_v12, %v4885_v59  ;;  %v1897_v11 = vperm.slane %v5563_v56, %v4885_v59 }
 0x213   :  { %v5780_v16 = vld.sshfl [vmem:[#allocation1] sm:$0xff pattern:$0x73625140] }
 0x214   :  { %3185 = vst [vmem:[#allocation1] ss:$4 sm:$0xff] %v1881_v10  ;;  %v5808_v10 = vpop.xlane.xlu0 %567 }
 0x215   :  { %3186 = vst [vmem:[#allocation1 + $0x1] ss:$4 sm:$0xff] %v1885_v39  ;;  %v1925_v39 = vperm.slane %v5555_v12, %v4891_v63  ;;  %v1905_v12 = vperm.slane %v5563_v56, %v4889_v61 }
 0x216   :  { %3187 = vst [vmem:[#allocation1 + $0x2] ss:$4 sm:$0xff] %v1889_v54 }
 0x217   :  { %3188 = vst [vmem:[#allocation1 + $0x3] ss:$4 sm:$0xff] %v1893_v14  ;;  %3531 = vperm.xlu2 %4709, %v5077_v24   ;;  %3555 = vperm.xlu0 %4710, %v5150_v7   ;;  %v5822_v54 = vpop.xlane.xlu1 %579  ;;  %v1909_v24 = vperm.slane %v5563_v56, %v4891_v63 }
 0x218   :  { %v5791_v45 = vld.sshfl [vmem:[#allocation1 + $0x20] sm:$0xff pattern:$0x73625140] }
 0x219   :  { %3179 = vst [vmem:[#allocation1 + $0x20] ss:$4 sm:$0xff] %v1865_v47  ;;  %v1901_v47 = vperm.slane %v5563_v56, %v4887_v60  ;;  %3543 = vperm.xlu1 %4711, %v5112_v9   ;;  %v1953_v9 = vperm.slane %v5595_v19, %v4889_v61 }
 0x21a   :  { %3180 = vst [vmem:[#allocation1 + $0x21] ss:$4 sm:$0xff] %v1869_v43  ;;  %v5828_v43 = vpop.xlane.xlu2 %591 }
 0x21b   :  { %3181 = vst [vmem:[#allocation1 + $0x22] ss:$4 sm:$0xff] %v1873_v2  ;;  %v1945_v2 = vperm.slane %v5595_v19, %v4885_v59 }
 0x21c   :  { %3182 = vst [vmem:[#allocation1 + $0x23] ss:$4 sm:$0xff] %v1877_v32  ;;  %v5835_v7 = vpop.xlane.xlu0 %576 }
 0x21e   :  { %v5810_v27 = vld.sshfl [vmem:[#allocation1] sm:$0xff pattern:$0x73625140] }
 0x21f   :  { %3195 = vst [vmem:[#allocation1] ss:$4 sm:$0xff] %v1913_v23  ;;  %3540 = vperm.xlu2 %4709, %v5083_v35   ;;  %3564 = vperm.xlu0 %4710, %v5164_v33   ;;  %v1949_v23 = vperm.slane %v5595_v19, %v4887_v60  ;;  %v5845_v56 = vpop.xlane.xlu1 %588  ;;  %v1929_v35 = vperm.slane %v5526_v25, %v4885_v59 }
 0x220   :  { %3196 = vst [vmem:[#allocation1 + $0x1] ss:$4 sm:$0xff] %v1917_v1  ;;  %v1933_v33 = vperm.slane %v5526_v25, %v4887_v60 }
 0x221   :  { %3197 = vst [vmem:[#allocation1 + $0x2] ss:$4 sm:$0xff] %v1921_v15  ;;  %v1957_v15 = vperm.slane %v5595_v19, %v4891_v63  ;;  %3552 = vperm.xlu1 %4711, %v5121_v30   ;;  %v1941_v19 = vperm.slane %v5526_v25, %v4891_v63 }
 0x222   :  { %3198 = vst [vmem:[#allocation1 + $0x3] ss:$4 sm:$0xff] %v1925_v39  ;;  %v5849_v1 = vpop.xlane.xlu2 %600 }
 0x223   :  { %v5824_v14 = vld.sshfl [vmem:[#allocation1 + $0x20] sm:$0xff pattern:$0x73625140] }
 0x224   :  { %3189 = vst [vmem:[#allocation1 + $0x20] ss:$4 sm:$0xff] %v1897_v11  ;;  %v5860_v11 = vpop.xlane.xlu0 %585 }
 0x225   :  { %3190 = vst [vmem:[#allocation1 + $0x21] ss:$4 sm:$0xff] %v1901_v47  ;;  %v1937_v47 = vperm.slane %v5526_v25, %v4889_v61  ;;  %v1989_v25 = vperm.slane %v5559_v13, %v4891_v63 }
 0x226   :  { %3191 = vst [vmem:[#allocation1 + $0x22] ss:$4 sm:$0xff] %v1905_v12 }
 0x227   :  { %3192 = vst [vmem:[#allocation1 + $0x23] ss:$4 sm:$0xff] %v1909_v24  ;;  %3549 = vperm.xlu2 %4709, %v5134_v41   ;;  %3573 = vperm.xlu0 %4710, %v5226_v62   ;;  %v5868_v30 = vpop.xlane.xlu1 %597  ;;  %v1977_v24 = vperm.slane %v5559_v13, %v4885_v59  ;;  %v1985_v41 = vperm.slane %v5559_v13, %v4889_v61 }
 0x229   :  { %v5841_v32 = vld.sshfl [vmem:[#allocation1] sm:$0xff pattern:$0x73625140]  ;;  %3561 = vperm.xlu1 %4711, %v5170_v40   ;;  %v7172_v40 = vld [vmem:[#allocation6_spill] sm:$0xff] }
 0x22a   :  { %7167 = vst [vmem:[#allocation42_spill] sm:$0xff] %v5841_v32  ;;  %v5870_v12 = vpop.xlane.xlu2 %609 }
 0x22b   :  { %3205 = vst [vmem:[#allocation1] ss:$4 sm:$0xff] %v1945_v2  ;;  %v1981_v2 = vperm.slane %v5559_v13, %v4887_v60 }
 0x22c   :  { %3206 = vst [vmem:[#allocation1 + $0x1] ss:$4 sm:$0xff] %v1949_v23  ;;  %v5881_v62 = vpop.xlane.xlu0 %594 }
 0x22d   :  { %3207 = vst [vmem:[#allocation1 + $0x2] ss:$4 sm:$0xff] %v1953_v9  ;;  %v7170_v9 = vld [vmem:[#allocation31_spill] sm:$0xff] }
 0x22e   :  { %v5858_v39 = vld.sshfl [vmem:[#allocation1 + $0x20] sm:$0xff pattern:$0x73625140]  ;;  %3208 = vst [vmem:[#allocation1 + $0x3] ss:$4 sm:$0xff] %v1957_v15  ;;  %v1961_v15 = vperm.slane %v7170_v9, %v4885_v59 }
 0x22f   :  { %3199 = vst [vmem:[#allocation1 + $0x20] ss:$4 sm:$0xff] %v1929_v35  ;;  %3558 = vperm.xlu2 %4709, %v7172_v40   ;;  %v5895_v13 = vpop.xlane.xlu1 %606  ;;  %v2009_v40 = vperm.slane %v5607_v0, %v4885_v59 }
 0x230   :  { %3200 = vst [vmem:[#allocation1 + $0x21] ss:$4 sm:$0xff] %v1933_v33  ;;  %v1965_v33 = vperm.slane %v7170_v9, %v4887_v60 }
 0x231   :  { %3201 = vst [vmem:[#allocation1 + $0x22] ss:$4 sm:$0xff] %v1937_v47  ;;  %v7173_v47 = vld [vmem:[#allocation10_spill] sm:$0xff] }
 0x232   :  { %3202 = vst [vmem:[#allocation1 + $0x23] ss:$4 sm:$0xff] %v1941_v19  ;;  %3582 = vperm.xlu0 %4710, %v7173_v47   ;;  %v1969_v19 = vperm.slane %v7170_v9, %v4889_v61 }
 0x233   :  { %7168 = vst [vmem:[#allocation43_spill] sm:$0xff] %v5870_v12 }
 0x234   :  { %7174 = vst [vmem:[#allocation6_spill] sm:$0xff] %v5895_v13 }
 0x235   :  { %v5876_v23 = vld.sshfl [vmem:[#allocation1] sm:$0xff pattern:$0x73625140] }
 0x236   :  { %7169 = vst [vmem:[#allocation44_spill] sm:$0xff] %v5876_v23  ;;  %v7197_v23 = vld [vmem:[#allocation17_spill] sm:$0xff] }
 0x237   :  { %3215 = vst [vmem:[#allocation1] ss:$4 sm:$0xff] %v1977_v24  ;;  %v1973_v24 = vperm.slane %v7170_v9, %v4891_v63  ;;  %v2017_v9 = vperm.slane %v5607_v0, %v4889_v61 }
 0x238   :  { %3216 = vst [vmem:[#allocation1 + $0x1] ss:$4 sm:$0xff] %v1981_v2  ;;  %v5899_v2 = vpop.xlane.xlu2 %618 }
 0x239   :  { %3217 = vst [vmem:[#allocation1 + $0x2] ss:$4 sm:$0xff] %v1985_v41  ;;  %v5887_v35 = vld.sshfl [vmem:[#allocation1 + $0x20] sm:$0xff pattern:$0x73625140]  ;;  %v7176_v41 = vld [vmem:[#allocation7_spill] sm:$0xff] }
 0x23a   :  { %7171 = vst [vmem:[#allocation31_spill] sm:$0xff] %v5887_v35  ;;  %3570 = vperm.xlu1 %4711, %v7176_v41   ;;  %v5916_v41 = vpop.xlane.xlu1 %615 }
 0x23b   :  { %3218 = vst [vmem:[#allocation1 + $0x3] ss:$4 sm:$0xff] %v1989_v25  ;;  %v5902_v25 = vpop.xlane.xlu0 %603 }
 0x23c   :  { %3209 = vst [vmem:[#allocation1 + $0x20] ss:$4 sm:$0xff] %v1961_v15  ;;  %v2013_v15 = vperm.slane %v5607_v0, %v4887_v60 }
 0x23d   :  { %3210 = vst [vmem:[#allocation1 + $0x21] ss:$4 sm:$0xff] %v1965_v33  ;;  %v7178_v33 = vld [vmem:[#allocation8_spill] sm:$0xff] }
 0x23e   :  { %7175 = vst [vmem:[#allocation10_spill] sm:$0xff] %v5899_v2  ;;  %3567 = vperm.xlu2 %4709, %v7178_v33   ;;  %v2001_v33 = vperm.slane %v5624_v20, %v4889_v61 }
 0x23f   :  { %3211 = vst [vmem:[#allocation1 + $0x22] ss:$4 sm:$0xff] %v1969_v19  ;;  %v7179_v19 = vld [vmem:[#allocation15_spill] sm:$0xff] }
 0x240   :  { %3212 = vst [vmem:[#allocation1 + $0x23] ss:$4 sm:$0xff] %v1973_v24  ;;  %3591 = vperm.xlu0 %4710, %v7179_v19   ;;  %v2021_v24 = vperm.slane %v5607_v0, %v4891_v63  ;;  %v5920_v50 = vpop.xlane.xlu2 %627  ;;  %v7183_v0 = vld [vmem:[#allocation11_spill] sm:$0xff]  ;;  %v7185_v19 = vld [vmem:[#allocation9_spill] sm:$0xff] }
 0x241   :  { %7180 = vst [vmem:[#allocation8_spill] sm:$0xff] %v5916_v41 }
 0x242   :  { %v5906_v47 = vld.sshfl [vmem:[#allocation1] sm:$0xff pattern:$0x73625140]  ;;  %7181 = vst [vmem:[#allocation15_spill] sm:$0xff] %v5920_v50  ;;  %3579 = vperm.xlu1 %4711, %v7183_v0   ;;  %v5941_v0 = vpop.xlane.xlu1 %624 }
 0x243   :  { %7177 = vst [vmem:[#allocation7_spill] sm:$0xff] %v5906_v47  ;;  %v2041_v47 = vperm.slane %v5650_v4, %v4885_v59 }
 0x244   :  { %3225 = vst [vmem:[#allocation1] ss:$4 sm:$0xff] %v2009_v40  ;;  %v1997_v40 = vperm.slane %v5624_v20, %v4887_v60 }
 0x245   :  { %3226 = vst [vmem:[#allocation1 + $0x1] ss:$4 sm:$0xff] %v2013_v15  ;;  %v2005_v15 = vperm.slane %v5624_v20, %v4891_v63 }
 0x246   :  { %3227 = vst [vmem:[#allocation1 + $0x2] ss:$4 sm:$0xff] %v2017_v9  ;;  %v5931_v9 = vpop.xlane.xlu0 %612  ;;  %3576 = vperm.xlu2 %4709, %v7185_v19   ;;  %v2025_v19 = vperm.slane %v5586_v58, %v4885_v59 }
 0x247   :  { %v5922_v18 = vld.sshfl [vmem:[#allocation1 + $0x20] sm:$0xff pattern:$0x73625140]  ;;  %3228 = vst [vmem:[#allocation1 + $0x3] ss:$4 sm:$0xff] %v2021_v24 }
 0x248   :  { %7182 = vst [vmem:[#allocation45_spill] sm:$0xff] %v5922_v18  ;;  %v7186_v24 = vld [vmem:[#allocation16_spill] sm:$0xff]  ;;  %v5943_v20 = vpop.xlane.xlu2 %636 }
 0x249   :  { %3219 = vst [vmem:[#allocation1 + $0x20] ss:$4 sm:$0xff] %v1993_v51  ;;  %3600 = vperm.xlu0 %4710, %v7186_v24   ;;  %v2045_v51 = vperm.slane %v5650_v4, %v4887_v60 }
 0x24a   :  { %3220 = vst [vmem:[#allocation1 + $0x21] ss:$4 sm:$0xff] %v1997_v40  ;;  %v2049_v40 = vperm.slane %v5650_v4, %v4889_v61 }
 0x24b   :  { %7184 = vst [vmem:[#allocation11_spill] sm:$0xff] %v5931_v9 }
 0x24c   :  { %3221 = vst [vmem:[#allocation1 + $0x22] ss:$4 sm:$0xff] %v2001_v33  ;;  %v2053_v33 = vperm.slane %v5650_v4, %v4891_v63  ;;  %v2037_v4 = vperm.slane %v5586_v58, %v4891_v63 }
 0x24d   :  { %3222 = vst [vmem:[#allocation1 + $0x23] ss:$4 sm:$0xff] %v2005_v15  ;;  %v7190_v15 = vld [vmem:[#allocation12_spill] sm:$0xff] }
 0x24e   :  { %v5937_v18 = vld.sshfl [vmem:[#allocation1] sm:$0xff pattern:$0x73625140]  ;;  %7188 = vst [vmem:[#allocation16_spill] sm:$0xff] %v5941_v0  ;;  %3588 = vperm.xlu1 %4711, %v7190_v15   ;;  %v5952_v24 = vpop.xlane.xlu0 %621  ;;  %v7222_v0 = vld [vmem:[#allocation30_spill] sm:$0xff] }
 0x24f   :  { %7187 = vst [vmem:[#allocation9_spill] sm:$0xff] %v5937_v18  ;;  %v2029_v18 = vperm.slane %v5586_v58, %v4887_v60  ;;  %v7194_v15 = vld [vmem:[#allocation21_spill] sm:$0xff] }
 0x250   :  { %7189 = vst [vmem:[#allocation46_spill] sm:$0xff] %v5943_v20 }
 0x251   :  { %3235 = vst [vmem:[#allocation1] ss:$4 sm:$0xff] %v2041_v47  ;;  %v2033_v47 = vperm.slane %v5586_v58, %v4889_v61  ;;  %3609 = vperm.xlu0 %4710, %v7194_v15   ;;  %v7201_v15 = vld [vmem:[#allocation22_spill] sm:$0xff] }
 0x252   :  { %3236 = vst [vmem:[#allocation1 + $0x1] ss:$4 sm:$0xff] %v2045_v51  ;;  %v7193_v51 = vld [vmem:[#allocation13_spill] sm:$0xff] }
 0x253   :  { %3237 = vst [vmem:[#allocation1 + $0x2] ss:$4 sm:$0xff] %v2049_v40  ;;  %3585 = vperm.xlu2 %4709, %v7193_v51   ;;  %v5964_v40 = vpop.xlane.xlu2 %645  ;;  %v2057_v51 = vperm.slane %v5636_v49, %v4885_v59 }
 0x254   :  { %7191 = vst [vmem:[#allocation12_spill] sm:$0xff] %v5952_v24  ;;  %v5956_v17 = vld.sshfl [vmem:[#allocation1 + $0x20] sm:$0xff pattern:$0x73625140] }
 0x255   :  { %7192 = vst [vmem:[#allocation47_spill] sm:$0xff] %v5956_v17  ;;  %v2073_v17 = vperm.slane %v5614_v53, %v4885_v59 }
 0x256   :  { %3238 = vst [vmem:[#allocation1 + $0x3] ss:$4 sm:$0xff] %v2053_v33  ;;  %v5968_v33 = vpop.xlane.xlu1 %633  ;;  %3597 = vperm.xlu1 %4711, %v7197_v23   ;;  %v7200_v23 = vld [vmem:[#allocation14_spill] sm:$0xff] }
 0x257   :  { %3229 = vst [vmem:[#allocation1 + $0x20] ss:$4 sm:$0xff] %v2025_v19  ;;  %v2077_v19 = vperm.slane %v5614_v53, %v4887_v60 }
 0x258   :  { %3230 = vst [vmem:[#allocation1 + $0x21] ss:$4 sm:$0xff] %v2029_v18  ;;  %v5975_v18 = vpop.xlane.xlu0 %630 }
 0x259   :  { %3231 = vst [vmem:[#allocation1 + $0x22] ss:$4 sm:$0xff] %v2033_v47  ;;  %v2081_v47 = vperm.slane %v5614_v53, %v4889_v61  ;;  %3618 = vperm.xlu0 %4710, %v7201_v15  }
 0x25a   :  { %3232 = vst [vmem:[#allocation1 + $0x23] ss:$4 sm:$0xff] %v2037_v4  ;;  %v2085_v4 = vperm.slane %v5614_v53, %v4891_v63 }
 0x25b   :  { %7195 = vst [vmem:[#allocation13_spill] sm:$0xff] %v5964_v40  ;;  %3594 = vperm.xlu2 %4709, %v7200_v23   ;;  %v5991_v53 = vpop.xlane.xlu2 %654 }
 0x25c   :  { %7196 = vst [vmem:[#allocation21_spill] sm:$0xff] %v5968_v33 }
 0x25d   :  { %v5973_v58 = vld.sshfl [vmem:[#allocation1] sm:$0xff pattern:$0x73625140]  ;;  %7199 = vst [vmem:[#allocation48_spill] sm:$0xff] %v5975_v18  ;;  %v7221_v18 = vld [vmem:[#allocation34_spill] sm:$0xff] }
 0x25e   :  { %7198 = vst [vmem:[#allocation17_spill] sm:$0xff] %v5973_v58  ;;  %v2061_v58 = vperm.slane %v5636_v49, %v4887_v60  ;;  %v5998_v15 = vpop.xlane.xlu1 %642 }
 0x25f   :  { %3245 = vst [vmem:[#allocation1] ss:$4 sm:$0xff] %v2073_v17  ;;  %v2065_v17 = vperm.slane %v5636_v49, %v4889_v61 }
 0x260   :  { %3246 = vst [vmem:[#allocation1 + $0x1] ss:$4 sm:$0xff] %v2077_v19  ;;  %v2069_v19 = vperm.slane %v5636_v49, %v4891_v63  ;;  %v5996_v23 = vpop.xlane.xlu0 %639  ;;  %v7208_v49 = vld [vmem:[#allocation27_spill] sm:$0xff] }
 0x261   :  { %3247 = vst [vmem:[#allocation1 + $0x2] ss:$4 sm:$0xff] %v2081_v47  ;;  %v5985_v35 = vld.sshfl [vmem:[#allocation1 + $0x20] sm:$0xff pattern:$0x73625140]  ;;  %v7204_v47 = vld [vmem:[#allocation18_spill] sm:$0xff]  ;;  %3627 = vperm.xlu0 %4710, %v7208_v49  }
 0x262   :  { %7202 = vst [vmem:[#allocation14_spill] sm:$0xff] %v5985_v35  ;;  %3606 = vperm.xlu1 %4711, %v7204_v47   ;;  %v2089_v47 = vperm.slane %v5674_v5, %v4885_v59  ;;  %v7210_v49 = vld [vmem:[#allocation23_spill] sm:$0xff] }
 0x263   :  { %3248 = vst [vmem:[#allocation1 + $0x3] ss:$4 sm:$0xff] %v2085_v4  ;;  %v2105_v4 = vperm.slane %v5660_v57, %v4885_v59 }
 0x264   :  { %3239 = vst [vmem:[#allocation1 + $0x20] ss:$4 sm:$0xff] %v2057_v51  ;;  %v2109_v51 = vperm.slane %v5660_v57, %v4887_v60 }
 0x265   :  { %7203 = vst [vmem:[#allocation22_spill] sm:$0xff] %v5991_v53  ;;  %v7207_v53 = vld [vmem:[#allocation19_spill] sm:$0xff] }
 0x266   :  { %3240 = vst [vmem:[#allocation1 + $0x21] ss:$4 sm:$0xff] %v2061_v58  ;;  %3603 = vperm.xlu2 %4709, %v7207_v53   ;;  %v2113_v58 = vperm.slane %v5660_v57, %v4889_v61  ;;  %v2093_v53 = vperm.slane %v5674_v5, %v4887_v60 }
 0x267   :  { %3241 = vst [vmem:[#allocation1 + $0x22] ss:$4 sm:$0xff] %v2065_v17  ;;  %v2117_v17 = vperm.slane %v5660_v57, %v4891_v63  ;;  %v2101_v57 = vperm.slane %v5674_v5, %v4891_v63 }
 0x268   :  { %3242 = vst [vmem:[#allocation1 + $0x23] ss:$4 sm:$0xff] %v2069_v19  ;;  %v3487_v19 = vpop.permute.xlu2 %3486  ;;  %v6021_v40 = vpop.xlane.xlu0 %648 }
 0x269   :  { %7205 = vst [vmem:[#allocation18_spill] sm:$0xff] %v5996_v23  ;;  %v7219_v23 = vld [vmem:[#allocation29_spill] sm:$0xff] }
 0x26a   :  { %7206 = vst [vmem:[#allocation49_spill] sm:$0xff] %v5998_v15  ;;  %v6002_v35 = vld.sshfl [vmem:[#allocation1] sm:$0xff pattern:$0x73625140]  ;;  %3615 = vperm.xlu1 %4711, %v7210_v49   ;;  %v2137_v49 = vperm.slane %v5699_v3, %v4885_v59 }
 0x26b   :  { %3255 = vst [vmem:[#allocation1] ss:$4 sm:$0xff] %v2105_v4  ;;  %v2097_v4 = vperm.slane %v5674_v5, %v4889_v61  ;;  %v2145_v5 = vperm.slane %v5699_v3, %v4889_v61 }
 0x26c   :  { %3256 = vst [vmem:[#allocation1 + $0x1] ss:$4 sm:$0xff] %v2109_v51  ;;  %v6025_v51 = vpop.xlane.xlu1 %651 }
 0x26d   :  { %3257 = vst [vmem:[#allocation1 + $0x2] ss:$4 sm:$0xff] %v2113_v58  ;;  %v7213_v58 = vld [vmem:[#allocation20_spill] sm:$0xff] }
 0x26e   :  { %3258 = vst [vmem:[#allocation1 + $0x3] ss:$4 sm:$0xff] %v2117_v17  ;;  %3612 = vperm.xlu2 %4709, %v7213_v58   ;;  %v7214_v17 = vld [vmem:[#allocation28_spill] sm:$0xff]  ;;  %v2121_v58 = vperm.slane %v5640_v21, %v4885_v59 }
 0x26f   :  { %v6014_v15 = vld.sshfl [vmem:[#allocation1 + $0x20] sm:$0xff pattern:$0x73625140]  ;;  %7211 = vst [vmem:[#allocation27_spill] sm:$0xff] %v6021_v40  ;;  %3636 = vperm.xlu0 %4710, %v7214_v17   ;;  %v2141_v40 = vperm.slane %v5699_v3, %v4887_v60  ;;  %v3869_v17 = vlaneseq }
 0x270   :  { %7209 = vst [vmem:[#allocation19_spill] sm:$0xff] %v6014_v15  ;;  %v6031_v15 = vpop.permute.xlu2 %3495 }
 0x271   :  { %3249 = vst [vmem:[#allocation1 + $0x20] ss:$4 sm:$0xff] %v2089_v47 }
 0x272   :  { %3250 = vst [vmem:[#allocation1 + $0x21] ss:$4 sm:$0xff] %v2093_v53  ;;  %v7215_v53 = vld [vmem:[#allocation24_spill] sm:$0xff] }
 0x273   :  { %3251 = vst [vmem:[#allocation1 + $0x22] ss:$4 sm:$0xff] %v2097_v4  ;;  %3624 = vperm.xlu1 %4711, %v7215_v53   ;;  %v2149_v4 = vperm.slane %v5699_v3, %v4891_v63  ;;  %v7217_v53 = vld [vmem:[#allocation25_spill] sm:$0xff]  ;;  %v2133_v3 = vperm.slane %v5640_v21, %v4891_v63 }
 0x274   :  { %3252 = vst [vmem:[#allocation1 + $0x23] ss:$4 sm:$0xff] %v2101_v57  ;;  %v6042_v57 = vpop.xlane.xlu0 %657 }
 0x275   :  { %7212 = vst [vmem:[#allocation23_spill] sm:$0xff] %v6025_v51  ;;  %v6033_v47 = vld.sshfl [vmem:[#allocation1] sm:$0xff pattern:$0x73625140]  ;;  %v2125_v51 = vperm.slane %v5640_v21, %v4887_v60 }
 0x276   :  { %3265 = vst [vmem:[#allocation1] ss:$4 sm:$0xff] %v2137_v49  ;;  %v2129_v49 = vperm.slane %v5640_v21, %v4889_v61  ;;  %3621 = vperm.xlu2 %4709, %v7217_v53   ;;  %v2173_v21 = vperm.slane %v5664_v52, %v4887_v60  ;;  %v2177_v53 = vperm.slane %v5664_v52, %v4889_v61 }
 0x277   :  { %3266 = vst [vmem:[#allocation1 + $0x1] ss:$4 sm:$0xff] %v2141_v40  ;;  %3645 = vperm.xlu0 %4710, %v5616_v37   ;;  %v6054_v40 = vand.u32 127, %v3869_v17 }
 0x278   :  { %7216 = vst [vmem:[#allocation20_spill] sm:$0xff] %v6042_v57  ;;  %v3499_v57 = vpop.permute.xlu2 %3498 }
 0x279   :  { %3267 = vst [vmem:[#allocation1 + $0x2] ss:$4 sm:$0xff] %v2145_v5  ;;  %v6056_v5 = vpop.xlane.xlu1 %660  ;;  %v3871_v17 = vperm.slane %v3487_v19, %v6054_v40  ;;  %v2153_v19 = vperm.slane %v5684_v38, %v4885_v59 }
 0x27a   :  { %3268 = vst [vmem:[#allocation1 + $0x3] ss:$4 sm:$0xff] %v2149_v4  ;;  %v6059_v4 = vadd.s32 4294967288, %v6054_v40 }
 0x27b   :  { %v3254_v20 = vld.sshfl [vmem:[#allocation1 + $0x20] sm:$0xff pattern:$0x73625140]  ;;  %7218 = vst [vmem:[#allocation28_spill] sm:$0xff] %v6056_v5  ;;  %3633 = vperm.xlu1 %4711, %v7219_v23   ;;  %v2181_v23 = vperm.slane %v5664_v52, %v4891_v63  ;;  %v7220_v5 = vld [vmem:[#allocation26_spill] sm:$0xff] }
 0x27c   :  { %3259 = vst [vmem:[#allocation1 + $0x20] ss:$4 sm:$0xff] %v2121_v58  ;;  %v2169_v58 = vperm.slane %v5664_v52, %v4885_v59  ;;  %v3490_v37 = vpop.permute.xlu0 %3489  ;;  %v2157_v52 = vperm.slane %v5684_v38, %v4887_v60 }
 0x27d   :  { %3260 = vst [vmem:[#allocation1 + $0x21] ss:$4 sm:$0xff] %v2125_v51 }
 0x27e   :  { %3261 = vst [vmem:[#allocation1 + $0x22] ss:$4 sm:$0xff] %v2129_v49  ;;  %v3873_v49 = vperm.slane %v3490_v37, %v6059_v4  ;;  %3630 = vperm.xlu2 %4709, %v7220_v5   ;;  %v6080_v37 = vadd.s32 4294967272, %v6054_v40  ;;  %v6090_v5 = vadd.s32 4294967264, %v6054_v40 }
 0x27f   :  { %3262 = vst [vmem:[#allocation1 + $0x23] ss:$4 sm:$0xff] %v2133_v3  ;;  %3654 = vperm.xlu0 %4710, %v7221_v18  }
 0x280   :  { %v3875_v3 = vsel %vm3874_vm1, %v3873_v49, %v3871_v17  ;;  %v2161_v17 = vperm.slane %v5684_v38, %v4889_v61  ;;  %v3885_v2 = vperm.slane %v3499_v57, %v6090_v5  ;;  %v2205_v57 = vperm.slane %v5712_v34, %v4887_v60 }
 0x281   :  { %v6066_v51 = vld.sshfl [vmem:[#allocation1] sm:$0xff pattern:$0x73625140]  ;;  %v3493_v18 = vpop.permute.xlu1 %3492 }
 0x282   :  { %3275 = vst [vmem:[#allocation1] ss:$4 sm:$0xff] %v2169_v58  ;;  %v6083_v58 = vadd.s32 4294967280, %v6054_v40 }
 0x283   :  { %3276 = vst [vmem:[#allocation1 + $0x1] ss:$4 sm:$0xff] %v2173_v21  ;;  %v3505_v21 = vpop.permute.xlu2 %3504  ;;  %3642 = vperm.xlu1 %4711, %v7222_v0   ;;  %v6108_v0 = vadd.s32 4294967248, %v6054_v40 }
 0x284   :  { %3277 = vst [vmem:[#allocation1 + $0x2] ss:$4 sm:$0xff] %v2177_v53  ;;  %v3877_v49 = vperm.slane %v3493_v18, %v6083_v58  ;;  %v2165_v53 = vperm.slane %v5684_v38, %v4891_v63  ;;  %v6100_v50 = vpop.permute.xlu0 %3510  ;;  %v2201_v38 = vperm.slane %v5712_v34, %v4885_v59 }
 0x285   :  { %3278 = vst [vmem:[#allocation1 + $0x3] ss:$4 sm:$0xff] %v2181_v23  ;;  %v3881_v23 = vperm.slane %v6031_v15, %v6080_v37  ;;  %v7223_v15 = vld [vmem:[#allocation32_spill] sm:$0xff] }
 0x286   :  { %v6085_v33 = vld.sshfl [vmem:[#allocation1 + $0x20] sm:$0xff pattern:$0x73625140]  ;;  %3639 = vperm.xlu2 %4709, %v7223_v15   ;;  %v7224_v15 = vld [vmem:[#allocation35_spill] sm:$0xff] }
 0x287   :  { %3269 = vst [vmem:[#allocation1 + $0x20] ss:$4 sm:$0xff] %v2153_v19  ;;  %v3879_v19 = vsel %vm3878_vm2, %v3877_v49, %v3875_v3  ;;  %3729 = vperm.xlu0 %4710, %v3254_v20   ;;  %v6117_v3 = vadd.s32 4294967256, %v6054_v40  ;;  %v2209_v49 = vperm.slane %v5712_v34, %v4889_v61 }
 0x288   :  { %3270 = vst [vmem:[#allocation1 + $0x21] ss:$4 sm:$0xff] %v2157_v52  ;;  %v3883_v18 = vsel %vm3882_vm3, %v3881_v23, %v3879_v19  ;;  %v2185_v19 = vperm.slane %v5726_v31, %v4885_v59 }
 0x289   :  { %3271 = vst [vmem:[#allocation1 + $0x22] ss:$4 sm:$0xff] %v2161_v17  ;;  %v3887_v52 = vsel %vm3886_vm4, %v3885_v2, %v3883_v18  ;;  %v2213_v2 = vperm.slane %v5712_v34, %v4891_v63  ;;  %v3893_v18 = vperm.slane %v3505_v21, %v6108_v0  ;;  %v2197_v21 = vperm.slane %v5726_v31, %v4891_v63 }
 0x28a   :  { %3272 = vst [vmem:[#allocation1 + $0x23] ss:$4 sm:$0xff] %v2165_v53  ;;  %v3502_v53 = vpop.permute.xlu1 %3501 }
 0x28b   :  { %v3514_v23 = vpop.permute.xlu2 %3513  ;;  %v3889_v20 = vperm.slane %v3502_v53, %v6117_v3  ;;  %3651 = vperm.xlu1 %4711, %v7224_v15   ;;  %v7225_v15 = vld [vmem:[#allocation33_spill] sm:$0xff] }
 0x28c   :  { %v6112_v17 = vld.sshfl [vmem:[#allocation1] sm:$0xff pattern:$0x73625140] }
 0x28d   :  { %3285 = vst [vmem:[#allocation1] ss:$4 sm:$0xff] %v2201_v38  ;;  %v2189_v38 = vperm.slane %v5726_v31, %v4887_v60  ;;  %v3891_v34 = vsel %vm3890_vm5, %v3889_v20, %v3887_v52  ;;  %v6143_v52 = vadd.s32 4294967224, %v6054_v40  ;;  %v6146_v20 = vadd.s32 4294967240, %v6054_v40 }
 0x28e   :  { %3286 = vst [vmem:[#allocation1 + $0x1] ss:$4 sm:$0xff] %v2205_v57  ;;  %v3520_v57 = vpop.permute.xlu0 %3519  ;;  %v3895_v53 = vsel %vm3894_vm6, %v3893_v18, %v3891_v34  ;;  %3648 = vperm.xlu2 %4709, %v7225_v15   ;;  %v2233_v18 = vperm.slane %v5755_v28, %v4885_v59  ;;  %v2237_v34 = vperm.slane %v5755_v28, %v4887_v60 }
 0x28f   :  { %3287 = vst [vmem:[#allocation1 + $0x2] ss:$4 sm:$0xff] %v2209_v49  ;;  %v2193_v49 = vperm.slane %v5726_v31, %v4889_v61  ;;  %v3905_v15 = vperm.slane %v3514_v23, %v6143_v52  ;;  %v2221_v23 = vperm.slane %v5690_v8, %v4887_v60 }
 0x290   :  { %3288 = vst [vmem:[#allocation1 + $0x3] ss:$4 sm:$0xff] %v2213_v2  ;;  %v6139_v2 = vadd.s32 4294967232, %v6054_v40 }
 0x291   :  { %v6128_v24 = vld.sshfl [vmem:[#allocation1 + $0x20] sm:$0xff pattern:$0x73625140] }
 0x292   :  { %3279 = vst [vmem:[#allocation1 + $0x20] ss:$4 sm:$0xff] %v2185_v19  ;;  %v3508_v19 = vpop.permute.xlu1 %3507 }
 0x293   :  { %3280 = vst [vmem:[#allocation1 + $0x21] ss:$4 sm:$0xff] %v2189_v38  ;;  %v3523_v32 = vpop.permute.xlu2 %3522  ;;  %v3897_v31 = vperm.slane %v3508_v19, %v6146_v20  ;;  %3726 = vperm.xlu1 %4711, %v6002_v35  }
 0x294   :  { %3281 = vst [vmem:[#allocation1 + $0x22] ss:$4 sm:$0xff] %v2193_v49  ;;  %v3901_v49 = vperm.slane %v6100_v50, %v6139_v2  ;;  %v2217_v50 = vperm.slane %v5690_v8, %v4885_v59 }
 0x295   :  { %3282 = vst [vmem:[#allocation1 + $0x23] ss:$4 sm:$0xff] %v2197_v21  ;;  %v2241_v21 = vperm.slane %v5755_v28, %v4889_v61  ;;  %v3899_v19 = vsel %vm3898_vm7, %v3897_v31, %v3895_v53  ;;  %v6173_v53 = vadd.s32 4294967208, %v6054_v40  ;;  %v6179_v31 = vadd.s32 4294967200, %v6054_v40 }
 0x296   :  { %v3529_v9 = vpop.permute.xlu0 %3528  ;;  %v3903_v41 = vsel %vm3902_vm8, %v3901_v49, %v3899_v19  ;;  %3657 = vperm.xlu2 %4709, %v5672_v48  }
 0x297   :  { %v6151_v38 = vld.sshfl [vmem:[#allocation1] sm:$0xff pattern:$0x73625140]  ;;  %v3907_v35 = vsel %vm3906_vm9, %v3905_v15, %v3903_v41  ;;  %v6182_v41 = vadd.s32 4294967216, %v6054_v40  ;;  %v3917_v15 = vperm.slane %v3523_v32, %v6179_v31  ;;  %v2273_v32 = vperm.slane %v5716_v26, %v4889_v61 }
 0x298   :  { %7226 = vst [vmem:[#allocation24_spill] sm:$0xff] %v6151_v38  ;;  %v2245_v38 = vperm.slane %v5755_v28, %v4891_v63  ;;  %v2225_v28 = vperm.slane %v5690_v8, %v4889_v61 }
 0x299   :  { %3295 = vst [vmem:[#allocation1] ss:$4 sm:$0xff] %v2233_v18 }
 0x29a   :  { %3296 = vst [vmem:[#allocation1 + $0x1] ss:$4 sm:$0xff] %v2237_v34  ;;  %v2229_v34 = vperm.slane %v5690_v8, %v4891_v63  ;;  %v2265_v8 = vperm.slane %v5716_v26, %v4885_v59 }
 0x29b   :  { %3297 = vst [vmem:[#allocation1 + $0x2] ss:$4 sm:$0xff] %v2241_v21  ;;  %v6186_v49 = vpop.permute.xlu2 %3531  ;;  %v3913_v21 = vperm.slane %v3520_v57, %v6173_v53 }
 0x29c   :  { %v6170_v18 = vld.sshfl [vmem:[#allocation1 + $0x20] sm:$0xff pattern:$0x73625140]  ;;  %3298 = vst [vmem:[#allocation1 + $0x3] ss:$4 sm:$0xff] %v2245_v38  ;;  %v3517_v38 = vpop.permute.xlu1 %3516 }
 0x29d   :  { %7227 = vst [vmem:[#allocation25_spill] sm:$0xff] %v6170_v18  ;;  %v3909_v48 = vperm.slane %v3517_v38, %v6182_v41 }
 0x29e   :  { %3289 = vst [vmem:[#allocation1 + $0x20] ss:$4 sm:$0xff] %v2217_v50  ;;  %v3538_v50 = vpop.permute.xlu0 %3537 }
 0x29f   :  { %3290 = vst [vmem:[#allocation1 + $0x21] ss:$4 sm:$0xff] %v2221_v23  ;;  %v3911_v19 = vsel %vm3910_vm10, %v3909_v48, %v3907_v35  ;;  %v6203_v35 = vadd.s32 4294967184, %v6054_v40  ;;  %v6208_v48 = vadd.s32 4294967192, %v6054_v40 }
 0x2a0   :  { %3291 = vst [vmem:[#allocation1 + $0x22] ss:$4 sm:$0xff] %v2225_v28  ;;  %v3915_v23 = vsel %vm3914_vm11, %v3913_v21, %v3911_v19  ;;  %v2269_v28 = vperm.slane %v5716_v26, %v4887_v60  ;;  %v2249_v21 = vperm.slane %v5741_v6, %v4885_v59 }
 0x2a1   :  { %3292 = vst [vmem:[#allocation1 + $0x23] ss:$4 sm:$0xff] %v2229_v34  ;;  %v3919_v57 = vsel %vm3918_vm12, %v3917_v15, %v3915_v23  ;;  %v2277_v34 = vperm.slane %v5716_v26, %v4891_v63  ;;  %v2257_v26 = vperm.slane %v5741_v6, %v4889_v61 }
 0x2a3   :  { %v6197_v38 = vld.sshfl [vmem:[#allocation1] sm:$0xff pattern:$0x73625140]  ;;  %v3541_v15 = vpop.permute.xlu2 %3540 }
 0x2a4   :  { %7228 = vst [vmem:[#allocation29_spill] sm:$0xff] %v6197_v38  ;;  %v3526_v19 = vpop.permute.xlu1 %3525 }
 0x2a5   :  { %3305 = vst [vmem:[#allocation1] ss:$4 sm:$0xff] %v2265_v8  ;;  %v2253_v8 = vperm.slane %v5741_v6, %v4887_v60  ;;  %v3921_v38 = vperm.slane %v3526_v19, %v6208_v48  ;;  %v2297_v19 = vperm.slane %v5770_v55, %v4885_v59 }
 0x2a6   :  { %3306 = vst [vmem:[#allocation1 + $0x1] ss:$4 sm:$0xff] %v2269_v28  ;;  %v3925_v28 = vperm.slane %v3529_v9, %v6203_v35  ;;  %v3547_v18 = vpop.permute.xlu0 %3546  ;;  %v2301_v9 = vperm.slane %v5770_v55, %v4887_v60 }
 0x2a7   :  { %3307 = vst [vmem:[#allocation1 + $0x2] ss:$4 sm:$0xff] %v2273_v32  ;;  %v2261_v32 = vperm.slane %v5741_v6, %v4891_v63  ;;  %v2305_v6 = vperm.slane %v5770_v55, %v4889_v61 }
 0x2a8   :  { %v6212_v23 = vld.sshfl [vmem:[#allocation1 + $0x20] sm:$0xff pattern:$0x73625140]  ;;  %3308 = vst [vmem:[#allocation1 + $0x3] ss:$4 sm:$0xff] %v2277_v34 }
 0x2a9   :  { %7229 = vst [vmem:[#allocation26_spill] sm:$0xff] %v6212_v23  ;;  %v3923_v23 = vsel %vm3922_vm13, %v3921_v38, %v3919_v57  ;;  %v3933_v38 = vperm.slane %v3538_v50, %v6059_v4  ;;  %v2289_v50 = vperm.slane %v5782_v42, %v4889_v61 }
 0x2aa   :  { %3299 = vst [vmem:[#allocation1 + $0x20] ss:$4 sm:$0xff] %v2249_v21  ;;  %v6224_v34 = vsel %vm3926_vm14, %v3925_v28, %v3923_v23  ;;  %v2309_v23 = vperm.slane %v5770_v55, %v4891_v63  ;;  %v2293_v55 = vperm.slane %v5782_v42, %v4891_v63 }
 0x2ab   :  { %3300 = vst [vmem:[#allocation1 + $0x21] ss:$4 sm:$0xff] %v2253_v8  ;;  %v3550_v12 = vpop.permute.xlu2 %3549  ;;  %v2281_v8 = vperm.slane %v5782_v42, %v4885_v59 }
 0x2ac   :  { %3301 = vst [vmem:[#allocation1 + $0x22] ss:$4 sm:$0xff] %v2257_v26  ;;  %v3535_v13 = vpop.permute.xlu1 %3534 }
 0x2ad   :  { %3302 = vst [vmem:[#allocation1 + $0x23] ss:$4 sm:$0xff] %v2261_v32  ;;  %v3932_v57 = vperm.slane %v3535_v13, %v6054_v40  ;;  %v2285_v32 = vperm.slane %v5782_v42, %v4887_v60  ;;  %v3939_v42 = vperm.slane %v3547_v18, %v6090_v5 }
 0x2ae   :  { %v3556_v13 = vpop.permute.xlu0 %3555 }
 0x2af   :  { %v6228_v21 = vld.sshfl [vmem:[#allocation1] sm:$0xff pattern:$0x73625140]  ;;  %v3934_v26 = vsel %vm3874_vm1, %v3933_v38, %v3932_v57  ;;  %v2329_v57 = vperm.slane %v5808_v10, %v4885_v59 }
 0x2b0   :  { %7230 = vst [vmem:[#allocation34_spill] sm:$0xff] %v6228_v21 }
 0x2b1   :  { %3315 = vst [vmem:[#allocation1] ss:$4 sm:$0xff] %v2297_v19  ;;  %v3935_v19 = vperm.slane %v3541_v15, %v6083_v58  ;;  %v2337_v15 = vperm.slane %v5808_v10, %v4889_v61 }
 0x2b2   :  { %3316 = vst [vmem:[#allocation1 + $0x1] ss:$4 sm:$0xff] %v2301_v9 }
 0x2b3   :  { %3317 = vst [vmem:[#allocation1 + $0x2] ss:$4 sm:$0xff] %v2305_v6  ;;  %v3936_v6 = vsel %vm3878_vm2, %v3935_v19, %v3934_v26  ;;  %v3559_v38 = vpop.permute.xlu2 %3558 }
 0x2b4   :  { %v6241_v28 = vld.sshfl [vmem:[#allocation1 + $0x20] sm:$0xff pattern:$0x73625140]  ;;  %3318 = vst [vmem:[#allocation1 + $0x3] ss:$4 sm:$0xff] %v2309_v23  ;;  %v3544_v9 = vpop.permute.xlu1 %3543 }
 0x2b5   :  { %3309 = vst [vmem:[#allocation1 + $0x20] ss:$4 sm:$0xff] %v2281_v8  ;;  %v3937_v23 = vperm.slane %v3544_v9, %v6080_v37  ;;  %v2333_v8 = vperm.slane %v5808_v10, %v4887_v60  ;;  %v2313_v9 = vperm.slane %v5743_v36, %v4885_v59 }
 0x2b6   :  { %3310 = vst [vmem:[#allocation1 + $0x21] ss:$4 sm:$0xff] %v2285_v32  ;;  %v3941_v32 = vperm.slane %v3550_v12, %v6117_v3  ;;  %v3565_v19 = vpop.permute.xlu0 %3564  ;;  %v2321_v12 = vperm.slane %v5743_v36, %v4889_v61 }
 0x2b7   :  { %3311 = vst [vmem:[#allocation1 + $0x22] ss:$4 sm:$0xff] %v2289_v50  ;;  %v3938_v26 = vsel %vm3882_vm3, %v3937_v23, %v3936_v6  ;;  %v2341_v50 = vperm.slane %v5808_v10, %v4891_v63  ;;  %v2325_v10 = vperm.slane %v5743_v36, %v4891_v63 }
 0x2b8   :  { %3312 = vst [vmem:[#allocation1 + $0x23] ss:$4 sm:$0xff] %v2293_v55  ;;  %v3940_v55 = vsel %vm3886_vm4, %v3939_v42, %v3938_v26  ;;  %v3945_v42 = vperm.slane %v3556_v13, %v6146_v20  ;;  %v2361_v26 = vperm.slane %v5772_v44, %v4885_v59  ;;  %v2373_v13 = vperm.slane %v5772_v44, %v4891_v63 }
 0x2b9   :  { %v3942_v18 = vsel %vm3890_vm5, %v3941_v32, %v3940_v55 }
 0x2bb   :  { %v6254_v21 = vld.sshfl [vmem:[#allocation1] sm:$0xff pattern:$0x73625140]  ;;  %v3568_v23 = vpop.permute.xlu2 %3567 }
 0x2bc   :  { %7231 = vst [vmem:[#allocation30_spill] sm:$0xff] %v6254_v21  ;;  %v3553_v6 = vpop.permute.xlu1 %3552 }
 0x2bd   :  { %3325 = vst [vmem:[#allocation1] ss:$4 sm:$0xff] %v2329_v57  ;;  %v2317_v57 = vperm.slane %v5743_v36, %v4887_v60  ;;  %v2365_v36 = vperm.slane %v5772_v44, %v4887_v60 }
 0x2be   :  { %3326 = vst [vmem:[#allocation1 + $0x1] ss:$4 sm:$0xff] %v2333_v8  ;;  %v3943_v8 = vperm.slane %v3553_v6, %v6108_v0  ;;  %v3574_v55 = vpop.permute.xlu0 %3573  ;;  %v2349_v6 = vperm.slane %v5801_v29, %v4887_v60 }
 0x2bf   :  { %3327 = vst [vmem:[#allocation1 + $0x2] ss:$4 sm:$0xff] %v2337_v15  ;;  %v6271_v21 = vld.sshfl [vmem:[#allocation1 + $0x20] sm:$0xff pattern:$0x73625140]  ;;  %v3947_v15 = vperm.slane %v3559_v38, %v6139_v2  ;;  %v2345_v38 = vperm.slane %v5801_v29, %v4885_v59 }
 0x2c0   :  { %3328 = vst [vmem:[#allocation1 + $0x3] ss:$4 sm:$0xff] %v2341_v50  ;;  %v3944_v32 = vsel %vm3894_vm6, %v3943_v8, %v3942_v18 }
 0x2c1   :  { %3319 = vst [vmem:[#allocation1 + $0x20] ss:$4 sm:$0xff] %v2313_v9  ;;  %v3946_v50 = vsel %vm3898_vm7, %v3945_v42, %v3944_v32  ;;  %v2357_v32 = vperm.slane %v5801_v29, %v4891_v63 }
 0x2c2   :  { %3320 = vst [vmem:[#allocation1 + $0x21] ss:$4 sm:$0xff] %v2317_v57  ;;  %v3948_v57 = vsel %vm3902_vm8, %v3947_v15, %v3946_v50  ;;  %v2353_v15 = vperm.slane %v5801_v29, %v4889_v61  ;;  %v3953_v50 = vperm.slane %v3568_v23, %v6173_v53  ;;  %v2397_v29 = vperm.slane %v5822_v54, %v4887_v60 }
 0x2c3   :  { %3321 = vst [vmem:[#allocation1 + $0x22] ss:$4 sm:$0xff] %v2321_v12  ;;  %v2369_v12 = vperm.slane %v5772_v44, %v4889_v61  ;;  %v3951_v44 = vperm.slane %v3565_v19, %v6182_v41  ;;  %v2393_v19 = vperm.slane %v5822_v54, %v4885_v59 }
 0x2c4   :  { %3322 = vst [vmem:[#allocation1 + $0x23] ss:$4 sm:$0xff] %v2325_v10  ;;  %v3562_v18 = vpop.permute.xlu1 %3561  ;;  %v3577_v10 = vpop.permute.xlu2 %3576 }
 0x2c5   :  { %v3949_v42 = vperm.slane %v3562_v18, %v6143_v52 }
 0x2c7   :  { %v3333_v9 = vld.sshfl [vmem:[#allocation1] sm:$0xff pattern:$0x73625140] }
 0x2c8   :  { %3335 = vst [vmem:[#allocation1] ss:$4 sm:$0xff] %v2361_v26  ;;  %3774 = vperm.xlu2 %4709, %v3333_v9   ;;  %v3950_v26 = vsel %vm3906_vm9, %v3949_v42, %v3948_v57  ;;  %v3583_v9 = vpop.permute.xlu0 %3582  ;;  %v2401_v57 = vperm.slane %v5822_v54, %v4889_v61  ;;  %v2405_v42 = vperm.slane %v5822_v54, %v4891_v63 }
 0x2c9   :  { %3336 = vst [vmem:[#allocation1 + $0x1] ss:$4 sm:$0xff] %v2365_v36  ;;  %v3952_v36 = vsel %vm3910_vm10, %v3951_v44, %v3950_v26  ;;  %v3963_v18 = vperm.slane %v3583_v9, %v6054_v40  ;;  %v2377_v44 = vperm.slane %v5835_v7, %v4885_v59 }
 0x2ca   :  { %3337 = vst [vmem:[#allocation1 + $0x2] ss:$4 sm:$0xff] %v2369_v12  ;;  %v3954_v12 = vsel %vm3914_vm11, %v3953_v50, %v3952_v36  ;;  %v2381_v36 = vperm.slane %v5835_v7, %v4887_v60 }
 0x2cb   :  { %3338 = vst [vmem:[#allocation1 + $0x3] ss:$4 sm:$0xff] %v2373_v13  ;;  %v6295_v8 = vld.sshfl [vmem:[#allocation1 + $0x20] sm:$0xff pattern:$0x73625140] }
 0x2cc   :  { %3329 = vst [vmem:[#allocation1 + $0x20] ss:$4 sm:$0xff] %v2345_v38  ;;  %v3571_v38 = vpop.permute.xlu1 %3570  ;;  %v3586_v23 = vpop.permute.xlu2 %3585 }
 0x2cd   :  { %3330 = vst [vmem:[#allocation1 + $0x21] ss:$4 sm:$0xff] %v2349_v6  ;;  %v3964_v6 = vperm.slane %v3586_v23, %v6059_v4 }
 0x2ce   :  { %3331 = vst [vmem:[#allocation1 + $0x22] ss:$4 sm:$0xff] %v2353_v15  ;;  %v3957_v15 = vperm.slane %v3574_v55, %v6208_v48  ;;  %v2385_v55 = vperm.slane %v5835_v7, %v4889_v61 }
 0x2cf   :  { %3332 = vst [vmem:[#allocation1 + $0x23] ss:$4 sm:$0xff] %v2357_v32  ;;  %v3959_v32 = vperm.slane %v3577_v10, %v6203_v35  ;;  %v3965_v50 = vsel %vm3874_vm1, %v3964_v6, %v3963_v18  ;;  %v2389_v10 = vperm.slane %v5835_v7, %v4891_v63  ;;  %v2433_v18 = vperm.slane %v5860_v11, %v4889_v61 }
 0x2d0   :  { %3735 = vperm.xlu2 %4709, %v6085_v33   ;;  %v3955_v33 = vperm.slane %v3571_v38, %v6179_v31  ;;  %v2429_v38 = vperm.slane %v5860_v11, %v4887_v60  ;;  %v2409_v6 = vperm.slane %v5803_v46, %v4885_v59 }
 0x2d2   :  { %v3343_v13 = vld.sshfl [vmem:[#allocation1] sm:$0xff pattern:$0x73625140]  ;;  %v3956_v26 = vsel %vm3918_vm12, %v3955_v33, %v3954_v12  ;;  %v6334_v12 = vadd.s32 4294967176, %v6054_v40  ;;  %v2437_v33 = vperm.slane %v5860_v11, %v4891_v63 }
 0x2d3   :  { %3780 = vperm.xlu0 %4710, %v3343_v13   ;;  %3345 = vst [vmem:[#allocation1] ss:$4 sm:$0xff] %v2393_v19  ;;  %v3958_v54 = vsel %vm3922_vm13, %v3957_v15, %v3956_v26  ;;  %v2425_v13 = vperm.slane %v5860_v11, %v4885_v59  ;;  %v2421_v11 = vperm.slane %v5803_v46, %v4891_v63 }
 0x2d4   :  { %3346 = vst [vmem:[#allocation1 + $0x1] ss:$4 sm:$0xff] %v2397_v29  ;;  %v3960_v19 = vsel %vm3926_vm14, %v3959_v32, %v3958_v54  ;;  %v3580_v29 = vpop.permute.xlu1 %3579  ;;  %v3929_v7 = vperm.slane %v6186_v49, %v6334_v12  ;;  %v3592_v49 = vpop.permute.xlu0 %3591 }
 0x2d5   :  { %3347 = vst [vmem:[#allocation1 + $0x2] ss:$4 sm:$0xff] %v2401_v57  ;;  %v3961_v57 = vperm.slane %v3580_v29, %v6334_v12  ;;  %v3968_v26 = vperm.slane %v3592_v49, %v6080_v37  ;;  %v2465_v29 = vperm.slane %v5828_v43, %v4889_v61 }
 0x2d6   :  { %3348 = vst [vmem:[#allocation1 + $0x3] ss:$4 sm:$0xff] %v2405_v42  ;;  %v3334_v9 = vld.sshfl [vmem:[#allocation1 + $0x20] sm:$0xff pattern:$0x73625140]  ;;  %v2413_v42 = vperm.slane %v5803_v46, %v4887_v60 }
 0x2d7   :  { %3777 = vperm.xlu1 %4711, %v3334_v9   ;;  %3339 = vst [vmem:[#allocation1 + $0x20] ss:$4 sm:$0xff] %v2377_v44  ;;  %v3595_v44 = vpop.permute.xlu2 %3594 }
 0x2d8   :  { %3340 = vst [vmem:[#allocation1 + $0x21] ss:$4 sm:$0xff] %v2381_v36  ;;  %3684 = vperm.xlu2 %4709, %v5780_v16   ;;  %v6346_v16 = vsel %vm3930_vm15, %v3961_v57, %v3960_v19  ;;  %v3970_v36 = vperm.slane %v3595_v44, %v6090_v5  ;;  %v2461_v19 = vperm.slane %v5828_v43, %v4887_v60 }
 0x2d9   :  { %3341 = vst [vmem:[#allocation1 + $0x22] ss:$4 sm:$0xff] %v2385_v55  ;;  %v2457_v55 = vperm.slane %v5828_v43, %v4885_v59  ;;  %v2497_v44 = vperm.slane %v5868_v30, %v4889_v61 }
 0x2da   :  { %3342 = vst [vmem:[#allocation1 + $0x23] ss:$4 sm:$0xff] %v2389_v10 }
 0x2db   :  { %3681 = vperm.xlu0 %4710, %v5791_v45   ;;  %v6352_v45 = vsel %vm3930_vm15, %v3929_v7, %v6224_v34  ;;  %v2417_v34 = vperm.slane %v5803_v46, %v4889_v61 }
 0x2dc   :  { %v3589_v32 = vpop.permute.xlu1 %3588  ;;  %v3601_v57 = vpop.permute.xlu0 %3600 }
 0x2dd   :  { %v3353_v23 = vld.sshfl [vmem:[#allocation1] sm:$0xff pattern:$0x73625140] }
 0x2de   :  { %3355 = vst [vmem:[#allocation1] ss:$4 sm:$0xff] %v2425_v13 }
 0x2df   :  { %3732 = vperm.xlu1 %4711, %v6033_v47   ;;  %3356 = vst [vmem:[#allocation1 + $0x1] ss:$4 sm:$0xff] %v2429_v38  ;;  %v3966_v47 = vperm.slane %v3589_v32, %v6083_v58  ;;  %v2445_v38 = vperm.slane %v5845_v56, %v4887_v60  ;;  %v2477_v32 = vperm.slane %v5881_v62, %v4887_v60 }
 0x2e0   :  { %3357 = vst [vmem:[#allocation1 + $0x2] ss:$4 sm:$0xff] %v2433_v18  ;;  %v3974_v18 = vperm.slane %v3601_v57, %v6108_v0 }
 0x2e1   :  { %3358 = vst [vmem:[#allocation1 + $0x3] ss:$4 sm:$0xff] %v2437_v33  ;;  %v3344_v15 = vld.sshfl [vmem:[#allocation1 + $0x20] sm:$0xff pattern:$0x73625140]  ;;  %v3967_v9 = vsel %vm3878_vm2, %v3966_v47, %v3965_v50  ;;  %v2469_v50 = vperm.slane %v5828_v43, %v4891_v63  ;;  %v2449_v43 = vperm.slane %v5845_v56, %v4889_v61  ;;  %v3604_v47 = vpop.permute.xlu2 %3603 }
 0x2e2   :  { %3349 = vst [vmem:[#allocation1 + $0x20] ss:$4 sm:$0xff] %v2409_v6  ;;  %v3969_v54 = vsel %vm3882_vm3, %v3968_v26, %v3967_v9  ;;  %v2489_v6 = vperm.slane %v5868_v30, %v4885_v59  ;;  %v2505_v9 = vperm.slane %v5849_v1, %v4885_v59 }
 0x2e3   :  { %3786 = vperm.xlu0 %4710, %v3353_v23   ;;  %3350 = vst [vmem:[#allocation1 + $0x21] ss:$4 sm:$0xff] %v2413_v42  ;;  %v3971_v46 = vsel %vm3886_vm4, %v3970_v36, %v3969_v54  ;;  %v2493_v42 = vperm.slane %v5868_v30, %v4887_v60  ;;  %v2529_v36 = vperm.slane %v5902_v25, %v4889_v61 }
 0x2e4   :  { %3351 = vst [vmem:[#allocation1 + $0x22] ss:$4 sm:$0xff] %v2417_v34  ;;  %v3598_v13 = vpop.permute.xlu1 %3597  ;;  %v2509_v54 = vperm.slane %v5849_v1, %v4887_v60 }
 0x2e5   :  { %3352 = vst [vmem:[#allocation1 + $0x23] ss:$4 sm:$0xff] %v2421_v11  ;;  %v3972_v7 = vperm.slane %v3598_v13, %v6117_v3  ;;  %v2481_v11 = vperm.slane %v5881_v62, %v4889_v61 }
 0x2e7   :  { %3678 = vperm.xlu1 %4711, %v5747_v22   ;;  %v2441_v22 = vperm.slane %v5845_v56, %v4885_v59  ;;  %v3973_v33 = vsel %vm3890_vm5, %v3972_v7, %v3971_v46  ;;  %v7232_v7 = vld [vmem:[#allocation43_spill] sm:$0xff] }
 0x2e8   :  { %v6376_v10 = vld.sshfl [vmem:[#allocation1] sm:$0xff pattern:$0x73625140]  ;;  %v3975_v49 = vsel %vm3894_vm6, %v3974_v18, %v3973_v33  ;;  %v2565_v33 = vperm.slane %v7232_v7, %v4891_v63 }
 0x2e9   :  { %3365 = vst [vmem:[#allocation1] ss:$4 sm:$0xff] %v2457_v55  ;;  %v3610_v55 = vpop.permute.xlu0 %3609 }
 0x2ea   :  { %3366 = vst [vmem:[#allocation1 + $0x1] ss:$4 sm:$0xff] %v2461_v19 }
 0x2eb   :  { %3741 = vperm.xlu0 %4710, %v6128_v24   ;;  %3367 = vst [vmem:[#allocation1 + $0x2] ss:$4 sm:$0xff] %v2465_v29  ;;  %v2453_v24 = vperm.slane %v5845_v56, %v4891_v63  ;;  %v2501_v56 = vperm.slane %v5868_v30, %v4891_v63  ;;  %v2485_v30 = vperm.slane %v5881_v62, %v4891_v63 }
 0x2ec   :  { %v3354_v23 = vld.sshfl [vmem:[#allocation1 + $0x20] sm:$0xff pattern:$0x73625140]  ;;  %3368 = vst [vmem:[#allocation1 + $0x3] ss:$4 sm:$0xff] %v2469_v50  ;;  %v3607_v19 = vpop.permute.xlu1 %3606  ;;  %v2517_v29 = vperm.slane %v5849_v1, %v4891_v63  ;;  %v3980_v50 = vperm.slane %v3610_v55, %v6143_v52 }
 0x2ed   :  { %3789 = vperm.xlu2 %4709, %v3354_v23   ;;  %3359 = vst [vmem:[#allocation1 + $0x20] ss:$4 sm:$0xff] %v2441_v22  ;;  %v3978_v57 = vperm.slane %v3607_v19, %v6139_v2  ;;  %v3613_v23 = vpop.permute.xlu2 %3612 }
 0x2ee   :  { %3360 = vst [vmem:[#allocation1 + $0x21] ss:$4 sm:$0xff] %v2445_v38  ;;  %v2553_v38 = vperm.slane %v7232_v7, %v4885_v59 }
 0x2ef   :  { %3361 = vst [vmem:[#allocation1 + $0x22] ss:$4 sm:$0xff] %v2449_v43  ;;  %3783 = vperm.xlu1 %4711, %v3344_v15   ;;  %v2473_v15 = vperm.slane %v5881_v62, %v4885_v59  ;;  %v2533_v62 = vperm.slane %v5902_v25, %v4891_v63  ;;  %v2561_v43 = vperm.slane %v7232_v7, %v4889_v61 }
 0x2f0   :  { %3362 = vst [vmem:[#allocation1 + $0x23] ss:$4 sm:$0xff] %v2453_v24 }
 0x2f3   :  { %3690 = vperm.xlu0 %4710, %v5810_v27   ;;  %v6400_v34 = vld.sshfl [vmem:[#allocation1] sm:$0xff pattern:$0x73625140] }
 0x2f4   :  { %3375 = vst [vmem:[#allocation1] ss:$4 sm:$0xff] %v2489_v6 }
 0x2f5   :  { %3744 = vperm.xlu2 %4709, %v6112_v17   ;;  %3376 = vst [vmem:[#allocation1 + $0x1] ss:$4 sm:$0xff] %v2493_v42  ;;  %v2521_v17 = vperm.slane %v5902_v25, %v4885_v59 }
 0x2f6   :  { %3377 = vst [vmem:[#allocation1 + $0x2] ss:$4 sm:$0xff] %v2497_v44 }
 0x2f7   :  { %3738 = vperm.xlu1 %4711, %v6066_v51   ;;  %v3364_v27 = vld.sshfl [vmem:[#allocation1 + $0x20] sm:$0xff pattern:$0x73625140]  ;;  %3378 = vst [vmem:[#allocation1 + $0x3] ss:$4 sm:$0xff] %v2501_v56  ;;  %v2525_v51 = vperm.slane %v5902_v25, %v4887_v60 }
 0x2f8   :  { %3369 = vst [vmem:[#allocation1 + $0x20] ss:$4 sm:$0xff] %v2473_v15  ;;  %v7234_v15 = vld [vmem:[#allocation25_spill] sm:$0xff] }
 0x2f9   :  { %3370 = vst [vmem:[#allocation1 + $0x21] ss:$4 sm:$0xff] %v2477_v32  ;;  %v3982_v32 = vperm.slane %v3613_v23, %v6182_v41 }
 0x2fa   :  { %3371 = vst [vmem:[#allocation1 + $0x22] ss:$4 sm:$0xff] %v2481_v11  ;;  %v3616_v11 = vpop.permute.xlu1 %3615 }
 0x2fb   :  { %3795 = vperm.xlu0 %4710, %v3364_v27   ;;  %3372 = vst [vmem:[#allocation1 + $0x23] ss:$4 sm:$0xff] %v2485_v30  ;;  %v3622_v27 = vpop.permute.xlu2 %3621 }
 0x2fd   :  { %3693 = vperm.xlu2 %4709, %v5858_v39   ;;  %v3976_v39 = vperm.slane %v3604_v47, %v6146_v20  ;;  %v3984_v47 = vperm.slane %v3616_v11, %v6173_v53 }
 0x2fe   :  { %v6421_v26 = vld.sshfl [vmem:[#allocation1] sm:$0xff pattern:$0x73625140] }
 0x2ff   :  { %3687 = vperm.xlu1 %4711, %v5824_v14   ;;  %3385 = vst [vmem:[#allocation1] ss:$4 sm:$0xff] %v2521_v17  ;;  %v2513_v14 = vperm.slane %v5849_v1, %v4889_v61  ;;  %v3977_v25 = vsel %vm3898_vm7, %v3976_v39, %v3975_v49  ;;  %v2557_v1 = vperm.slane %v7232_v7, %v4887_v60  ;;  %v3619_v49 = vpop.permute.xlu0 %3618  ;;  %v7235_v17 = vld [vmem:[#allocation8_spill] sm:$0xff] }
 0x300   :  { %3386 = vst [vmem:[#allocation1 + $0x1] ss:$4 sm:$0xff] %v2525_v51  ;;  %v3979_v13 = vsel %vm3902_vm8, %v3978_v57, %v3977_v25  ;;  %v2585_v51 = vperm.slane %v7235_v17, %v4885_v59  ;;  %v2593_v39 = vperm.slane %v7235_v17, %v4889_v61  ;;  %v2597_v55 = vperm.slane %v7235_v17, %v4891_v63  ;;  %v7236_v25 = vld [vmem:[#allocation11_spill] sm:$0xff]  ;;  %v7237_v57 = vld [vmem:[#allocation42_spill] sm:$0xff] }
 0x301   :  { %3387 = vst [vmem:[#allocation1 + $0x2] ss:$4 sm:$0xff] %v2529_v36  ;;  %v3981_v22 = vsel %vm3906_vm9, %v3980_v50, %v3979_v13  ;;  %v2589_v36 = vperm.slane %v7235_v17, %v4887_v60  ;;  %v2573_v50 = vperm.slane %v7236_v25, %v4887_v60  ;;  %v2581_v7 = vperm.slane %v7236_v25, %v4891_v63 }
 0x302   :  { %3388 = vst [vmem:[#allocation1 + $0x3] ss:$4 sm:$0xff] %v2533_v62  ;;  %v6433_v46 = vld.sshfl [vmem:[#allocation1 + $0x20] sm:$0xff pattern:$0x73625140]  ;;  %v3983_v30 = vsel %vm3910_vm10, %v3982_v32, %v3981_v22  ;;  %v2577_v22 = vperm.slane %v7236_v25, %v4889_v61 }
 0x303   :  { %3379 = vst [vmem:[#allocation1 + $0x20] ss:$4 sm:$0xff] %v2505_v9  ;;  %v3986_v9 = vperm.slane %v3619_v49, %v6179_v31  ;;  %v3631_v23 = vpop.permute.xlu2 %3630 }
 0x304   :  { %3380 = vst [vmem:[#allocation1 + $0x21] ss:$4 sm:$0xff] %v2509_v54  ;;  %v3985_v54 = vsel %vm3914_vm11, %v3984_v47, %v3983_v30  ;;  %v7239_v30 = vld [vmem:[#allocation10_spill] sm:$0xff] }
 0x305   :  { %3381 = vst [vmem:[#allocation1 + $0x22] ss:$4 sm:$0xff] %v2513_v14  ;;  %v3987_v19 = vsel %vm3918_vm12, %v3986_v9, %v3985_v54  ;;  %v2601_v17 = vperm.slane %v7239_v30, %v4885_v59  ;;  %v2613_v9 = vperm.slane %v7239_v30, %v4891_v63 }
 0x306   :  { %3382 = vst [vmem:[#allocation1 + $0x23] ss:$4 sm:$0xff] %v2517_v29  ;;  %v2569_v29 = vperm.slane %v7236_v25, %v4885_v59 }
 0x307   :  { %3792 = vperm.xlu1 %4711, %v6376_v10   ;;  %v7233_v10 = vld [vmem:[#allocation6_spill] sm:$0xff]  ;;  %v3628_v14 = vpop.permute.xlu0 %3627 }
 0x308   :  { %v2537_v24 = vperm.slane %v7233_v10, %v4885_v59  ;;  %v2541_v6 = vperm.slane %v7233_v10, %v4887_v60  ;;  %v2545_v44 = vperm.slane %v7233_v10, %v4889_v61  ;;  %v2549_v56 = vperm.slane %v7233_v10, %v4891_v63 }
 0x309   :  { %v6449_v18 = vld.sshfl [vmem:[#allocation1] sm:$0xff pattern:$0x73625140] }
 0x30a   :  { %3395 = vst [vmem:[#allocation1] ss:$4 sm:$0xff] %v2553_v38  ;;  %v3988_v38 = vperm.slane %v3622_v27, %v6208_v48 }
 0x30b   :  { %3396 = vst [vmem:[#allocation1 + $0x1] ss:$4 sm:$0xff] %v2557_v1  ;;  %v3625_v1 = vpop.permute.xlu1 %3624 }
 0x30c   :  { %3397 = vst [vmem:[#allocation1 + $0x2] ss:$4 sm:$0xff] %v2561_v43  ;;  %v3989_v43 = vsel %vm3922_vm13, %v3988_v38, %v3987_v19  ;;  %v3994_v19 = vperm.slane %v3631_v23, %v6054_v40 }
 0x30d   :  { %3398 = vst [vmem:[#allocation1 + $0x3] ss:$4 sm:$0xff] %v2565_v33  ;;  %v6459_v42 = vld.sshfl [vmem:[#allocation1 + $0x20] sm:$0xff pattern:$0x73625140] }
 0x30e   :  { %3389 = vst [vmem:[#allocation1 + $0x20] ss:$4 sm:$0xff] %v2537_v24  ;;  %v7238_v33 = vld [vmem:[#allocation12_spill] sm:$0xff]  ;;  %v3990_v24 = vperm.slane %v3625_v1, %v6203_v35 }
 0x30f   :  { %3747 = vperm.xlu1 %4711, %v7234_v15   ;;  %3390 = vst [vmem:[#allocation1 + $0x21] ss:$4 sm:$0xff] %v2541_v6  ;;  %v2617_v10 = vperm.slane %v7238_v33, %v4885_v59  ;;  %v2621_v49 = vperm.slane %v7238_v33, %v4887_v60  ;;  %v3637_v15 = vpop.permute.xlu0 %3636  ;;  %v2629_v27 = vperm.slane %v7238_v33, %v4891_v63 }
 0x310   :  { %3391 = vst [vmem:[#allocation1 + $0x22] ss:$4 sm:$0xff] %v2545_v44  ;;  %v3992_v44 = vperm.slane %v3628_v14, %v6334_v12  ;;  %v3991_v32 = vsel %vm3926_vm14, %v3990_v24, %v3989_v43 }
 0x311   :  { %3392 = vst [vmem:[#allocation1 + $0x23] ss:$4 sm:$0xff] %v2549_v56  ;;  %v2625_v56 = vperm.slane %v7238_v33, %v4889_v61  ;;  %v7241_v33 = vld [vmem:[#allocation16_spill] sm:$0xff] }
 0x312   :  { %v6507_v11 = vsel %vm3930_vm15, %v3992_v44, %v3991_v32  ;;  %v2641_v44 = vperm.slane %v7241_v33, %v4889_v61 }
 0x313   :  { %v3634_v54 = vpop.permute.xlu1 %3633 }
 0x314   :  { %v6473_v62 = vld.sshfl [vmem:[#allocation1] sm:$0xff pattern:$0x73625140]  ;;  %v3995_v25 = vperm.slane %v3634_v54, %v6059_v4 }
 0x315   :  { %3405 = vst [vmem:[#allocation1] ss:$4 sm:$0xff] %v2585_v51  ;;  %v2605_v51 = vperm.slane %v7239_v30, %v4887_v60 }
 0x316   :  { %3406 = vst [vmem:[#allocation1 + $0x1] ss:$4 sm:$0xff] %v2589_v36  ;;  %v2609_v36 = vperm.slane %v7239_v30, %v4889_v61  ;;  %v3996_v1 = vsel %vm3874_vm1, %v3995_v25, %v3994_v19 }
 0x317   :  { %3407 = vst [vmem:[#allocation1 + $0x2] ss:$4 sm:$0xff] %v2593_v39  ;;  %3696 = vperm.xlu1 %4711, %v7237_v57   ;;  %v3640_v39 = vpop.permute.xlu2 %3639 }
 0x318   :  { %3408 = vst [vmem:[#allocation1 + $0x3] ss:$4 sm:$0xff] %v2597_v55  ;;  %v6487_v13 = vld.sshfl [vmem:[#allocation1 + $0x20] sm:$0xff pattern:$0x73625140]  ;;  %v7240_v55 = vld [vmem:[#allocation15_spill] sm:$0xff]  ;;  %v3999_v38 = vperm.slane %v3640_v39, %v6080_v37 }
 0x319   :  { %3399 = vst [vmem:[#allocation1 + $0x20] ss:$4 sm:$0xff] %v2569_v29  ;;  %v2649_v14 = vperm.slane %v7240_v55, %v4885_v59  ;;  %v2653_v29 = vperm.slane %v7240_v55, %v4887_v60  ;;  %v2661_v23 = vperm.slane %v7240_v55, %v4891_v63 }
 0x31a   :  { %3400 = vst [vmem:[#allocation1 + $0x21] ss:$4 sm:$0xff] %v2573_v50  ;;  %v3997_v50 = vperm.slane %v3637_v15, %v6083_v58 }
 0x31b   :  { %3401 = vst [vmem:[#allocation1 + $0x22] ss:$4 sm:$0xff] %v2577_v22  ;;  %v3646_v22 = vpop.permute.xlu0 %3645  ;;  %v3643_v32 = vpop.permute.xlu1 %3642 }
 0x31c   :  { %3402 = vst [vmem:[#allocation1 + $0x23] ss:$4 sm:$0xff] %v2581_v7  ;;  %v2657_v7 = vperm.slane %v7240_v55, %v4889_v61  ;;  %v3998_v43 = vsel %vm3878_vm2, %v3997_v50, %v3996_v1  ;;  %v4003_v30 = vperm.slane %v3646_v22, %v6117_v3  ;;  %v7243_v50 = vld [vmem:[#allocation48_spill] sm:$0xff] }
 0x31d   :  { %v4000_v24 = vsel %vm3882_vm3, %v3999_v38, %v3998_v43  ;;  %v2665_v22 = vperm.slane %v7243_v50, %v4885_v59  ;;  %v2669_v38 = vperm.slane %v7243_v50, %v4887_v60  ;;  %v2673_v43 = vperm.slane %v7243_v50, %v4889_v61 }
 0x31f   :  { %v3413_v6 = vld.sshfl [vmem:[#allocation1] sm:$0xff pattern:$0x73625140]  ;;  %v3649_v15 = vpop.permute.xlu2 %3648 }
 0x320   :  { %3822 = vperm.xlu0 %4710, %v3413_v6   ;;  %3415 = vst [vmem:[#allocation1] ss:$4 sm:$0xff] %v2617_v10  ;;  %v2633_v10 = vperm.slane %v7241_v33, %v4885_v59 }
 0x321   :  { %3416 = vst [vmem:[#allocation1 + $0x1] ss:$4 sm:$0xff] %v2621_v49  ;;  %v2637_v49 = vperm.slane %v7241_v33, %v4887_v60 }
 0x322   :  { %3417 = vst [vmem:[#allocation1 + $0x2] ss:$4 sm:$0xff] %v2625_v56  ;;  %v2645_v56 = vperm.slane %v7241_v33, %v4891_v63  ;;  %v2677_v33 = vperm.slane %v7243_v50, %v4891_v63 }
 0x323   :  { %3418 = vst [vmem:[#allocation1 + $0x3] ss:$4 sm:$0xff] %v2629_v27  ;;  %v6513_v47 = vld.sshfl [vmem:[#allocation1 + $0x20] sm:$0xff pattern:$0x73625140]  ;;  %v4001_v27 = vperm.slane %v3643_v32, %v6090_v5  ;;  %v3655_v39 = vpop.permute.xlu0 %3654 }
 0x324   :  { %3409 = vst [vmem:[#allocation1 + $0x20] ss:$4 sm:$0xff] %v2601_v17  ;;  %v4005_v17 = vperm.slane %v3649_v15, %v6108_v0 }
 0x325   :  { %3410 = vst [vmem:[#allocation1 + $0x21] ss:$4 sm:$0xff] %v2605_v51  ;;  %v4002_v51 = vsel %vm3886_vm4, %v4001_v27, %v4000_v24 }
 0x326   :  { %3411 = vst [vmem:[#allocation1 + $0x22] ss:$4 sm:$0xff] %v2609_v36  ;;  %v7242_v36 = vld [vmem:[#allocation21_spill] sm:$0xff]  ;;  %v4004_v54 = vsel %vm3890_vm5, %v4003_v30, %v4002_v51 }
 0x327   :  { %3412 = vst [vmem:[#allocation1 + $0x23] ss:$4 sm:$0xff] %v2613_v9  ;;  %v2681_v9 = vperm.slane %v7242_v36, %v4885_v59  ;;  %v2685_v55 = vperm.slane %v7242_v36, %v4887_v60  ;;  %v4006_v19 = vsel %vm3894_vm6, %v4005_v17, %v4004_v54  ;;  %v2689_v25 = vperm.slane %v7242_v36, %v4889_v61 }
 0x32a   :  { %v3423_v57 = vld.sshfl [vmem:[#allocation1] sm:$0xff pattern:$0x73625140] }
 0x32b   :  { %3425 = vst [vmem:[#allocation1] ss:$4 sm:$0xff] %v2649_v14 }
 0x32c   :  { %3426 = vst [vmem:[#allocation1 + $0x1] ss:$4 sm:$0xff] %v2653_v29  ;;  %v2693_v29 = vperm.slane %v7242_v36, %v4891_v63 }
 0x32d   :  { %3427 = vst [vmem:[#allocation1 + $0x2] ss:$4 sm:$0xff] %v2657_v7  ;;  %v3652_v7 = vpop.permute.xlu1 %3651 }
 0x32e   :  { %v3414_v6 = vld.sshfl [vmem:[#allocation1 + $0x20] sm:$0xff pattern:$0x73625140]  ;;  %3428 = vst [vmem:[#allocation1 + $0x3] ss:$4 sm:$0xff] %v2661_v23  ;;  %v4007_v23 = vperm.slane %v3652_v7, %v6146_v20 }
 0x32f   :  { %3825 = vperm.xlu2 %4709, %v3414_v6   ;;  %3419 = vst [vmem:[#allocation1 + $0x20] ss:$4 sm:$0xff] %v2633_v10  ;;  %v3730_v6 = vpop.permute.xlu0 %3729 }
 0x330   :  { %3420 = vst [vmem:[#allocation1 + $0x21] ss:$4 sm:$0xff] %v2637_v49  ;;  %v4008_v10 = vsel %vm3898_vm7, %v4007_v23, %v4006_v19  ;;  %v3658_v49 = vpop.permute.xlu2 %3657  ;;  %v4057_v17 = vperm.slane %v3730_v6, %v6059_v4 }
 0x331   :  { %3421 = vst [vmem:[#allocation1 + $0x22] ss:$4 sm:$0xff] %v2641_v44  ;;  %v7244_v44 = vld [vmem:[#allocation18_spill] sm:$0xff] }
 0x332   :  { %3422 = vst [vmem:[#allocation1 + $0x23] ss:$4 sm:$0xff] %v2645_v56  ;;  %v2713_v56 = vperm.slane %v7244_v44, %v4885_v59  ;;  %v2717_v15 = vperm.slane %v7244_v44, %v4887_v60  ;;  %v2721_v30 = vperm.slane %v7244_v44, %v4889_v61  ;;  %v2725_v36 = vperm.slane %v7244_v44, %v4891_v63 }
 0x335   :  { %v3433_v14 = vld.sshfl [vmem:[#allocation1] sm:$0xff pattern:$0x73625140]  ;;  %v3727_v27 = vpop.permute.xlu1 %3726 }
 0x336   :  { %3435 = vst [vmem:[#allocation1] ss:$4 sm:$0xff] %v2681_v9  ;;  %v4056_v51 = vperm.slane %v3727_v27, %v6054_v40  ;;  %v7245_v9 = vld [vmem:[#allocation24_spill] sm:$0xff] }
 0x337   :  { %3828 = vperm.xlu2 %4709, %v3423_v57   ;;  %3436 = vst [vmem:[#allocation1 + $0x1] ss:$4 sm:$0xff] %v2685_v55  ;;  %v4009_v57 = vperm.slane %v3655_v39, %v6139_v2 }
 0x338   :  { %3437 = vst [vmem:[#allocation1 + $0x2] ss:$4 sm:$0xff] %v2689_v25  ;;  %v4058_v54 = vsel %vm3874_vm1, %v4057_v17, %v4056_v51 }
 0x339   :  { %v3424_v1 = vld.sshfl [vmem:[#allocation1 + $0x20] sm:$0xff pattern:$0x73625140]  ;;  %3438 = vst [vmem:[#allocation1 + $0x3] ss:$4 sm:$0xff] %v2693_v29  ;;  %v4010_v24 = vsel %vm3902_vm8, %v4009_v57, %v4008_v10 }
 0x33a   :  { %3831 = vperm.xlu0 %4710, %v3424_v1   ;;  %3429 = vst [vmem:[#allocation1 + $0x20] ss:$4 sm:$0xff] %v2665_v22  ;;  %v3775_v22 = vpop.permute.xlu2 %3774 }
 0x33b   :  { %3430 = vst [vmem:[#allocation1 + $0x21] ss:$4 sm:$0xff] %v2669_v38  ;;  %v7247_v38 = vld [vmem:[#allocation13_spill] sm:$0xff]  ;;  %v4087_v23 = vperm.slane %v3775_v22, %v6054_v40  ;;  %v7251_v22 = vld [vmem:[#allocation26_spill] sm:$0xff] }
 0x33c   :  { %3431 = vst [vmem:[#allocation1 + $0x22] ss:$4 sm:$0xff] %v2673_v43  ;;  %v2745_v1 = vperm.slane %v7247_v38, %v4885_v59  ;;  %v2749_v57 = vperm.slane %v7247_v38, %v4887_v60  ;;  %v2753_v10 = vperm.slane %v7247_v38, %v4889_v61  ;;  %v2757_v44 = vperm.slane %v7247_v38, %v4891_v63  ;;  %v7252_v38 = vld [vmem:[#allocation27_spill] sm:$0xff] }
 0x33d   :  { %3432 = vst [vmem:[#allocation1 + $0x23] ss:$4 sm:$0xff] %v2677_v33 }
 0x33f   :  { %3798 = vperm.xlu2 %4709, %v6400_v34   ;;  %v7246_v34 = vld [vmem:[#allocation46_spill] sm:$0xff] }
 0x340   :  { %v3443_v32 = vld.sshfl [vmem:[#allocation1] sm:$0xff pattern:$0x73625140]  ;;  %v2697_v39 = vperm.slane %v7246_v34, %v4885_v59  ;;  %v2701_v55 = vperm.slane %v7246_v34, %v4887_v60  ;;  %v2705_v25 = vperm.slane %v7246_v34, %v4889_v61  ;;  %v2709_v29 = vperm.slane %v7246_v34, %v4891_v63  ;;  %v7250_v34 = vld [vmem:[#allocation23_spill] sm:$0xff] }
 0x341   :  { %3445 = vst [vmem:[#allocation1] ss:$4 sm:$0xff] %v2713_v56  ;;  %v7248_v56 = vld [vmem:[#allocation49_spill] sm:$0xff] }
 0x342   :  { %3750 = vperm.xlu0 %4710, %v7245_v9   ;;  %3446 = vst [vmem:[#allocation1 + $0x1] ss:$4 sm:$0xff] %v2717_v15  ;;  %v2729_v15 = vperm.slane %v7248_v56, %v4885_v59  ;;  %v2733_v27 = vperm.slane %v7248_v56, %v4887_v60 }
 0x343   :  { %3447 = vst [vmem:[#allocation1 + $0x2] ss:$4 sm:$0xff] %v2721_v30  ;;  %v2737_v30 = vperm.slane %v7248_v56, %v4889_v61 }
 0x344   :  { %v3434_v19 = vld.sshfl [vmem:[#allocation1 + $0x20] sm:$0xff pattern:$0x73625140]  ;;  %3448 = vst [vmem:[#allocation1 + $0x3] ss:$4 sm:$0xff] %v2725_v36  ;;  %v7249_v36 = vld [vmem:[#allocation31_spill] sm:$0xff] }
 0x345   :  { %3837 = vperm.xlu1 %4711, %v3434_v19   ;;  %3439 = vst [vmem:[#allocation1 + $0x20] ss:$4 sm:$0xff] %v2697_v39  ;;  %v3781_v50 = vpop.permute.xlu0 %3780  ;;  %v2777_v39 = vperm.slane %v7250_v34, %v4885_v59 }
 0x346   :  { %3440 = vst [vmem:[#allocation1 + $0x21] ss:$4 sm:$0xff] %v2701_v55  ;;  %v2781_v55 = vperm.slane %v7250_v34, %v4887_v60 }
 0x347   :  { %3441 = vst [vmem:[#allocation1 + $0x22] ss:$4 sm:$0xff] %v2705_v25  ;;  %3834 = vperm.xlu2 %4709, %v3433_v14   ;;  %v4011_v14 = vperm.slane %v3658_v49, %v6143_v52  ;;  %v2785_v25 = vperm.slane %v7250_v34, %v4889_v61 }
 0x348   :  { %3442 = vst [vmem:[#allocation1 + $0x23] ss:$4 sm:$0xff] %v2709_v29  ;;  %v2789_v29 = vperm.slane %v7250_v34, %v4891_v63 }
 0x349   :  { %v3778_v7 = vpop.permute.xlu1 %3777 }
 0x34a   :  { %3840 = vperm.xlu0 %4710, %v3443_v32   ;;  %v4088_v43 = vperm.slane %v3778_v7, %v6059_v4  ;;  %v6605_v32 = vsel %vm3906_vm9, %v4011_v14, %v4010_v24  ;;  %v3736_v7 = vpop.permute.xlu2 %3735 }
 0x34b   :  { %v3453_v33 = vld.sshfl [vmem:[#allocation1] sm:$0xff pattern:$0x73625140] }
 0x34c   :  { %3455 = vst [vmem:[#allocation1] ss:$4 sm:$0xff] %v2745_v1  ;;  %v4089_v6 = vsel %vm3874_vm1, %v4088_v43, %v4087_v23  ;;  %v2761_v1 = vperm.slane %v7252_v38, %v4885_v59  ;;  %v2765_v43 = vperm.slane %v7252_v38, %v4887_v60 }
 0x34d   :  { %3801 = vperm.xlu1 %4711, %v6433_v46   ;;  %3456 = vst [vmem:[#allocation1 + $0x1] ss:$4 sm:$0xff] %v2749_v57  ;;  %v3682_v17 = vpop.permute.xlu0 %3681  ;;  %v2741_v46 = vperm.slane %v7248_v56, %v4891_v63  ;;  %v2773_v56 = vperm.slane %v7252_v38, %v4891_v63 }
 0x34e   :  { %3457 = vst [vmem:[#allocation1 + $0x2] ss:$4 sm:$0xff] %v2753_v10 }
 0x34f   :  { %v3444_v49 = vld.sshfl [vmem:[#allocation1 + $0x20] sm:$0xff pattern:$0x73625140]  ;;  %3458 = vst [vmem:[#allocation1 + $0x3] ss:$4 sm:$0xff] %v2757_v44 }
 0x350   :  { %3843 = vperm.xlu2 %4709, %v3444_v49   ;;  %3449 = vst [vmem:[#allocation1 + $0x20] ss:$4 sm:$0xff] %v2729_v15  ;;  %v7254_v49 = vld [vmem:[#allocation20_spill] sm:$0xff] }
 0x351   :  { %3450 = vst [vmem:[#allocation1 + $0x21] ss:$4 sm:$0xff] %v2733_v27  ;;  %v3733_v51 = vpop.permute.xlu1 %3732  ;;  %v7253_v27 = vld [vmem:[#allocation44_spill] sm:$0xff] }
 0x352   :  { %3699 = vperm.xlu0 %4710, %v7249_v36   ;;  %3451 = vst [vmem:[#allocation1 + $0x22] ss:$4 sm:$0xff] %v2737_v30  ;;  %v4059_v24 = vperm.slane %v3733_v51, %v6083_v58  ;;  %v2809_v30 = vperm.slane %v7254_v49, %v4885_v59  ;;  %v3685_v34 = vpop.permute.xlu2 %3684 }
 0x353   :  { %3452 = vst [vmem:[#allocation1 + $0x23] ss:$4 sm:$0xff] %v2741_v46  ;;  %v2813_v46 = vperm.slane %v7254_v49, %v4887_v60 }
 0x354   :  { %v4060_v9 = vsel %vm3878_vm2, %v4059_v24, %v4058_v54  ;;  %v4090_v54 = vperm.slane %v3781_v50, %v6083_v58  ;;  %v2769_v50 = vperm.slane %v7252_v38, %v4889_v61  ;;  %v2817_v24 = vperm.slane %v7254_v49, %v4889_v61 }
 0x355   :  { %3846 = vperm.xlu1 %4711, %v3453_v33   ;;  %v4026_v33 = vperm.slane %v3682_v17, %v6059_v4  ;;  %v3787_v10 = vpop.permute.xlu0 %3786  ;;  %v7255_v17 = vld [vmem:[#allocation36_spill] sm:$0xff] }
 0x356   :  { %v3463_v19 = vld.sshfl [vmem:[#allocation1] sm:$0xff pattern:$0x73625140]  ;;  %v4091_v44 = vsel %vm3878_vm2, %v4090_v54, %v4089_v6  ;;  %v4061_v6 = vperm.slane %v3736_v7, %v6080_v37  ;;  %v7257_v7 = vld [vmem:[#allocation22_spill] sm:$0xff] }
 0x357   :  { %3465 = vst [vmem:[#allocation1] ss:$4 sm:$0xff] %v2777_v39  ;;  %v2793_v54 = vperm.slane %v7257_v7, %v4885_v59 }
 0x358   :  { %3753 = vperm.xlu2 %4709, %v7251_v22   ;;  %3466 = vst [vmem:[#allocation1 + $0x1] ss:$4 sm:$0xff] %v2781_v55  ;;  %v4062_v55 = vsel %vm3882_vm3, %v4061_v6, %v4060_v9  ;;  %v4094_v22 = vperm.slane %v3787_v10, %v6090_v5  ;;  %v7259_v6 = vld [vmem:[#allocation28_spill] sm:$0xff] }
 0x359   :  { %3467 = vst [vmem:[#allocation1 + $0x2] ss:$4 sm:$0xff] %v2785_v25  ;;  %v3679_v23 = vpop.permute.xlu1 %3678  ;;  %v2821_v25 = vperm.slane %v7254_v49, %v4891_v63 }
 0x35a   :  { %v3454_v57 = vld.sshfl [vmem:[#allocation1 + $0x20] sm:$0xff pattern:$0x73625140]  ;;  %3468 = vst [vmem:[#allocation1 + $0x3] ss:$4 sm:$0xff] %v2789_v29  ;;  %v4025_v14 = vperm.slane %v3679_v23, %v6054_v40  ;;  %v2797_v23 = vperm.slane %v7257_v7, %v4887_v60 }
 0x35b   :  { %3849 = vperm.xlu0 %4710, %v3454_v57   ;;  %3459 = vst [vmem:[#allocation1 + $0x20] ss:$4 sm:$0xff] %v2761_v1  ;;  %v7256_v29 = vld [vmem:[#allocation29_spill] sm:$0xff]  ;;  %v2801_v57 = vperm.slane %v7257_v7, %v4889_v61 }
 0x35c   :  { %3460 = vst [vmem:[#allocation1 + $0x21] ss:$4 sm:$0xff] %v2765_v43  ;;  %v4027_v15 = vsel %vm3874_vm1, %v4026_v33, %v4025_v14  ;;  %v2805_v33 = vperm.slane %v7257_v7, %v4891_v63 }
 0x35d   :  { %3461 = vst [vmem:[#allocation1 + $0x22] ss:$4 sm:$0xff] %v2769_v50  ;;  %3702 = vperm.xlu1 %4711, %v7253_v27   ;;  %v3742_v38 = vpop.permute.xlu0 %3741 }
 0x35e   :  { %3462 = vst [vmem:[#allocation1 + $0x23] ss:$4 sm:$0xff] %v2773_v56  ;;  %v4065_v50 = vperm.slane %v3742_v38, %v6117_v3  ;;  %v3790_v56 = vpop.permute.xlu2 %3789  ;;  %v7262_v38 = vld [vmem:[#allocation7_spill] sm:$0xff] }
 0x360   :  { %3660 = vperm.xlu2 %4709, %v7255_v17   ;;  %v2825_v17 = vperm.slane %v7259_v6, %v4885_v59 }
 0x361   :  { %v3784_v51 = vpop.permute.xlu1 %3783  ;;  %v6645_v36 = vld.sshfl [vmem:[#allocation1] sm:$0xff pattern:$0x73625140] }
 0x362   :  { %v4092_v39 = vperm.slane %v3784_v51, %v6080_v37  ;;  %3475 = vst [vmem:[#allocation1] ss:$4 sm:$0xff] %v2809_v30  ;;  %v7260_v51 = vld [vmem:[#allocation45_spill] sm:$0xff] }
 0x363   :  { %3756 = vperm.xlu0 %4710, %v7256_v29   ;;  %3476 = vst [vmem:[#allocation1 + $0x1] ss:$4 sm:$0xff] %v2813_v46  ;;  %v2829_v46 = vperm.slane %v7259_v6, %v4887_v60 }
 0x364   :  { %v4093_v1 = vsel %vm3882_vm3, %v4092_v39, %v4091_v44  ;;  %3477 = vst [vmem:[#allocation1 + $0x2] ss:$4 sm:$0xff] %v2817_v24  ;;  %v7258_v44 = vld [vmem:[#allocation38_spill] sm:$0xff] }
 0x365   :  { %3852 = vperm.xlu1 %4711, %v3463_v19   ;;  %v3464_v9 = vld.sshfl [vmem:[#allocation1 + $0x20] sm:$0xff pattern:$0x73625140]  ;;  %v4095_v43 = vsel %vm3886_vm4, %v4094_v22, %v4093_v1  ;;  %3478 = vst [vmem:[#allocation1 + $0x3] ss:$4 sm:$0xff] %v2821_v25  ;;  %v4028_v19 = vperm.slane %v3685_v34, %v6083_v58  ;;  %v3691_v30 = vpop.permute.xlu0 %3690  ;;  %v2833_v34 = vperm.slane %v7259_v6, %v4889_v61 }
 0x366   :  { %3469 = vst [vmem:[#allocation1 + $0x20] ss:$4 sm:$0xff] %v2793_v54  ;;  %v4032_v59 = vperm.slane %v3691_v30, %v6090_v5  ;;  %v7261_v25 = vld [vmem:[#allocation37_spill] sm:$0xff] }
 0x367   :  { %3470 = vst [vmem:[#allocation1 + $0x21] ss:$4 sm:$0xff] %v2797_v23 }
 0x368   :  { %3804 = vperm.xlu2 %4709, %v6421_v26   ;;  %3471 = vst [vmem:[#allocation1 + $0x22] ss:$4 sm:$0xff] %v2801_v57  ;;  %v4029_v26 = vsel %vm3878_vm2, %v4028_v19, %v4027_v15 }
 0x369   :  { %3472 = vst [vmem:[#allocation1 + $0x23] ss:$4 sm:$0xff] %v2805_v33  ;;  %v3739_v10 = vpop.permute.xlu1 %3738 }
 0x36a   :  { %v4063_v14 = vperm.slane %v3739_v10, %v6090_v5 }
 0x36b   :  { %3663 = vperm.xlu0 %4710, %v7258_v44  }
 0x36c   :  { %v4064_v27 = vsel %vm3886_vm4, %v4063_v14, %v4062_v55  ;;  %v4096_v55 = vperm.slane %v3790_v56, %v6117_v3  ;;  %v7265_v56 = vld [vmem:[#allocation40_spill] sm:$0xff] }
 0x36d   :  { %3759 = vperm.xlu1 %4711, %v6241_v28   ;;  %v4066_v49 = vsel %vm3890_vm5, %v4065_v50, %v4064_v27  ;;  %v2837_v28 = vperm.slane %v7259_v6, %v4891_v63  ;;  %v3745_v63 = vpop.permute.xlu2 %3744  ;;  %v3796_v22 = vpop.permute.xlu0 %3795  ;;  %v7264_v50 = vld [vmem:[#allocation47_spill] sm:$0xff] }
 0x36e   :  { %v4097_v29 = vsel %vm3890_vm5, %v4096_v55, %v4095_v43  ;;  %v4100_v1 = vperm.slane %v3796_v22, %v6146_v20  ;;  %v7269_v55 = vld [vmem:[#allocation41_spill] sm:$0xff] }
 0x370   :  { %3705 = vperm.xlu2 %4709, %v7260_v51   ;;  %v3474_v24 = vld.sshfl [vmem:[#allocation1 + $0x20] sm:$0xff pattern:$0x73625140] }
 0x371   :  { %3479 = vst [vmem:[#allocation1 + $0x20] ss:$4 sm:$0xff] %v2825_v17  ;;  %v3688_v39 = vpop.permute.xlu1 %3687 }
 0x372   :  { %3480 = vst [vmem:[#allocation1 + $0x21] ss:$4 sm:$0xff] %v2829_v46  ;;  %v4030_v15 = vperm.slane %v3688_v39, %v6080_v37  ;;  %v7266_v46 = vld [vmem:[#allocation39_spill] sm:$0xff]  ;;  %v7267_v39 = vld [vmem:[#allocation30_spill] sm:$0xff] }
 0x373   :  { %3807 = vperm.xlu0 %4710, %v6459_v42   ;;  %3481 = vst [vmem:[#allocation1 + $0x22] ss:$4 sm:$0xff] %v2833_v34  ;;  %v4067_v42 = vperm.slane %v3745_v63, %v6108_v0 }
 0x374   :  { %3482 = vst [vmem:[#allocation1 + $0x23] ss:$4 sm:$0xff] %v2837_v28  ;;  %v4031_v60 = vsel %vm3882_vm3, %v4030_v15, %v4029_v26  ;;  %v7268_v15 = vld [vmem:[#allocation9_spill] sm:$0xff] }
 0x375   :  { %3666 = vperm.xlu1 %4711, %v7261_v25   ;;  %v4033_v61 = vsel %vm3886_vm4, %v4032_v59, %v4031_v60  ;;  %v4068_v43 = vsel %vm3894_vm6, %v4067_v42, %v4066_v49  ;;  %v3694_v33 = vpop.permute.xlu2 %3693  ;;  %v7270_v59 = vld [vmem:[#allocation14_spill] sm:$0xff] }
 0x376   :  { %v4034_v19 = vperm.slane %v3694_v33, %v6117_v3 }
 0x378   :  { %3855 = vperm.xlu2 %4709, %v3464_v9   ;;  %v7263_v9 = vld [vmem:[#allocation34_spill] sm:$0xff] }
 0x379   :  { %v3793_v7 = vpop.permute.xlu1 %3792 }
 0x37a   :  { %v4098_v54 = vperm.slane %v3793_v7, %v6108_v0  ;;  %v7272_v7 = vld [vmem:[#allocation17_spill] sm:$0xff] }
 0x37b   :  { %3708 = vperm.xlu0 %4710, %v7262_v38   ;;  %v3484_v60 = vld.sshfl [vmem:[#allocation1 + $0x20] sm:$0xff pattern:$0x73625140] }
 0x37c   :  { %v4099_v23 = vsel %vm3894_vm6, %v4098_v54, %v4097_v29  ;;  %v7271_v29 = vld [vmem:[#allocation19_spill] sm:$0xff] }
 0x37d   :  { %3810 = vperm.xlu1 %4711, %v6449_v18   ;;  %v4101_v57 = vsel %vm3898_vm7, %v4100_v1, %v4099_v23  ;;  %v4035_v18 = vsel %vm3890_vm5, %v4034_v19, %v4033_v61 }
 0x380   :  { %3762 = vperm.xlu2 %4709, %v7263_v9  }
 0x381   :  { %v3748_v10 = vpop.permute.xlu1 %3747 }
 0x382   :  { %v4069_v14 = vperm.slane %v3748_v10, %v6146_v20 }
 0x383   :  { %3858 = vperm.xlu0 %4710, %v6645_v36  }
 0x384   :  { %v4070_v44 = vsel %vm3898_vm7, %v4069_v14, %v4068_v43 }
 0x385   :  { %3711 = vperm.xlu1 %4711, %v7264_v50  }
 0x388   :  { %3669 = vperm.xlu2 %4709, %v7265_v56  }
 0x389   :  { %v3826_v27 = vpop.permute.xlu2 %3825  ;;  %v3697_v49 = vpop.permute.xlu1 %3696 }
 0x38a   :  { %v4036_v26 = vperm.slane %v3697_v49, %v6108_v0  ;;  %v4119_v17 = vperm.slane %v3826_v27, %v6059_v4 }
 0x38b   :  { %3765 = vperm.xlu0 %4710, %v6271_v21  }
 0x38c   :  { %v4037_v30 = vsel %vm3894_vm6, %v4036_v26, %v4035_v18 }
 0x38d   :  { %3861 = vperm.xlu1 %4711, %v3474_v24  }
 0x390   :  { %3813 = vperm.xlu2 %4709, %v6487_v13  }
 0x391   :  { %v3829_v36 = vpop.permute.xlu2 %3828 }
 0x392   :  { %v3823_v6 = vpop.permute.xlu0 %3822  ;;  %v4121_v34 = vperm.slane %v3829_v36, %v6083_v58 }
 0x393   :  { %3672 = vperm.xlu0 %4710, %v7266_v46   ;;  %v4118_v51 = vperm.slane %v3823_v6, %v6054_v40  ;;  %v3483_v40 = vld.sshfl [vmem:[#allocation1] sm:$0xff pattern:$0x73625140] }
 0x395   :  { %3768 = vperm.xlu1 %4711, %v7267_v39   ;;  %v4120_v28 = vsel %vm3874_vm1, %v4119_v17, %v4118_v51  ;;  %vm4157_vm1 = vcmask 1041408  }
 0x396   :  { %v4122_v21 = vsel %vm3878_vm2, %v4121_v34, %v4120_v28  ;;  %vm4159_vm2 = vcmask 1045508  }
 0x398   :  { %3714 = vperm.xlu2 %4709, %v7268_v15  }
 0x399   :  { %v3799_v24 = vpop.permute.xlu2 %3798 }
 0x39a   :  { %v4102_v13 = vperm.slane %v3799_v24, %v6139_v2 }
 0x39b   :  { %3816 = vperm.xlu0 %4710, %v6473_v62  }
 0x39c   :  { %v4103_v4 = vsel %vm3902_vm8, %v4102_v13, %v4101_v57 }
 0x39d   :  { %3675 = vperm.xlu1 %4711, %v7269_v55  }
 0x3a0   :  { %3864 = vperm.xlu2 %4709, %v3483_v40  }
 0x3a1   :  { %v3835_v58 = vpop.permute.xlu2 %3834 }
 0x3a2   :  { %v4125_v63 = vperm.slane %v3835_v58, %v6090_v5 }
 0x3a3   :  { %3717 = vperm.xlu0 %4710, %v7270_v59  }
 0x3a5   :  { %3819 = vperm.xlu1 %4711, %v6513_v47  }
 0x3a8   :  { %3771 = vperm.xlu2 %4709, %v6295_v8  }
 0x3aa   :  { %v3844_v25 = vpop.permute.xlu2 %3843 }
 0x3ab   :  { %3867 = vperm.xlu0 %4710, %v3484_v60   ;;  %v4131_v19 = vperm.slane %v3844_v25, %v6146_v20 }
 0x3ac   :  { %v3832_v61 = vpop.permute.xlu0 %3831 }
 0x3ad   :  { %3723 = vperm.xlu1 %4711, %v7271_v29   ;;  %v4123_v62 = vperm.slane %v3832_v61, %v6080_v37 }
 0x3af   :  { %v4124_v22 = vsel %vm3882_vm3, %v4123_v62, %v4122_v21  ;;  %vm4161_vm3 = vcmask 1043456  }
 0x3b0   :  { %3720 = vperm.xlu2 %4709, %v7272_v7   ;;  %v4126_v54 = vsel %vm3886_vm4, %v4125_v63, %v4124_v22  ;;  %vm4330_vm4 = vcmask 261120  }
 0x3b2   :  { %v3754_v42 = vpop.permute.xlu2 %3753 }
 0x3b3   :  { %v4073_v47 = vperm.slane %v3754_v42, %v6143_v52  ;;  %v4202_v42 = vld [vmem:[%s7108_s1 + $0xf8] sm:$0xff] }
 0x3b4   :  { %v3751_v8 = vpop.permute.xlu0 %3750  ;;  %4265 = vmatpush.msra.mxu1 %v4202_v42 }
 0x3b5   :  { %v4071_v38 = vperm.slane %v3751_v8, %v6139_v2  ;;  %v4234_v8 = vld [vmem:[%s7108_s1 + $0x1f8] sm:$0xff] }
 0x3b6   :  { %4305 = vmatpush.msra.mxu3 %v4234_v8 }
 0x3b7   :  { %v3838_v1 = vpop.permute.xlu1 %3837  ;;  %v4072_v23 = vsel %vm3902_vm8, %v4071_v38, %v4070_v44  ;;  %v4185_v38 = vld [vmem:[%s7108_s1 + $0x70] sm:$0xff] }
 0x3b8   :  { %v4127_v57 = vperm.slane %v3838_v1, %v6117_v3  ;;  %v4074_v37 = vsel %vm3906_vm9, %v4073_v47, %v4072_v23  ;;  %v4218_v47 = vld [vmem:[%s7108_s1 + $0x178] sm:$0xff]  ;;  %v4201_v1 = vld [vmem:[%s7108_s1 + $0xf0] sm:$0xff] }
 0x3b9   :  { %4285 = vmatpush.msra.mxu2 %v4218_v47  ;;  %v4217_v23 = vld [vmem:[%s7108_s1 + $0x170] sm:$0xff]  ;;  %4266 = vmatpush.msra.mxu1 %v4201_v1  ;;  %v4195_v1 = vld [vmem:[%s7108_s1 + $0xc0] sm:$0xff] }
 0x3ba   :  { %v4128_v5 = vsel %vm3890_vm5, %v4127_v57, %v4126_v54  ;;  %v3661_v43 = vpop.permute.xlu2 %3660  ;;  %v4186_v54 = vld [vmem:[%s7108_s1 + $0x78] sm:$0xff]  ;;  %v4233_v57 = vld [vmem:[%s7108_s1 + $0x1f0] sm:$0xff]  ;;  %vm4354_vm5 = vcmask 9216  }
 0x3bb   :  { %v4013_v33 = vperm.slane %v3661_v43, %v6182_v41  ;;  %4245 = vmatpush.msra.mxu0 %v4186_v54  ;;  %v4200_v43 = vld [vmem:[%s7108_s1 + $0xe8] sm:$0xff]  ;;  %4286 = vmatpush.msra.mxu2 %v4217_v23 }
 0x3bc   :  { %v3841_v9 = vpop.permute.xlu0 %3840  ;;  %4306 = vmatpush.msra.mxu3 %v4233_v57  ;;  %4267 = vmatpush.msra.mxu1 %v4200_v43  ;;  %v4227_v57 = vld [vmem:[%s7108_s1 + $0x1c0] sm:$0xff]  ;;  %v4194_v43 = vld [vmem:[%s7108_s1 + $0xb8] sm:$0xff] }
 0x3bd   :  { %v6741_v10 = vsel %vm3910_vm10, %v4013_v33, %v6605_v32  ;;  %v4129_v14 = vperm.slane %v3841_v9, %v6108_v0  ;;  %4246 = vmatpush.msra.mxu0 %v4185_v38  ;;  %v4216_v33 = vld [vmem:[%s7108_s1 + $0x168] sm:$0xff] }
 0x3be   :  { %v4232_v9 = vld [vmem:[%s7108_s1 + $0x1e8] sm:$0xff]  ;;  %4287 = vmatpush.msra.mxu2 %v4216_v33 }
 0x3bf   :  { %v3802_v50 = vpop.permute.xlu1 %3801  ;;  %v4130_v44 = vsel %vm3894_vm6, %v4129_v14, %v4128_v5  ;;  %4307 = vmatpush.msra.mxu3 %v4232_v9  ;;  %v4210_v9 = vld [vmem:[%s7108_s1 + $0x138] sm:$0xff] }
 0x3c0   :  { %v4104_v3 = vperm.slane %v3802_v50, %v6143_v52  ;;  %v4132_v18 = vsel %vm3898_vm7, %v4131_v19, %v4130_v44  ;;  %v4183_v50 = vld [vmem:[%s7108_s1 + $0x60] sm:$0xff] }
 0x3c1   :  { %v4199_v44 = vld [vmem:[%s7108_s1 + $0xe0] sm:$0xff] }
 0x3c2   :  { %v4105_v56 = vsel %vm3906_vm9, %v4104_v3, %v4103_v4  ;;  %v3805_v27 = vpop.permute.xlu2 %3804  ;;  %v4215_v3 = vld [vmem:[%s7108_s1 + $0x160] sm:$0xff]  ;;  %4268 = vmatpush.msra.mxu1 %v4199_v44  ;;  %v4177_v44 = vld [vmem:[%s7108_s1 + $0x30] sm:$0xff] }
 0x3c3   :  { %v4106_v49 = vperm.slane %v3805_v27, %v6182_v41  ;;  %v4182_v27 = vld [vmem:[%s7108_s1 + $0x58] sm:$0xff]  ;;  %4288 = vmatpush.msra.mxu2 %v4215_v3 }
 0x3c4   :  { %v3700_v26 = vpop.permute.xlu0 %3699 }
 0x3c5   :  { %v6751_v32 = vsel %vm3910_vm10, %v4106_v49, %v4105_v56  ;;  %v4038_v0 = vperm.slane %v3700_v26, %v6146_v20  ;;  %v4231_v56 = vld [vmem:[%s7108_s1 + $0x1e0] sm:$0xff]  ;;  %v4198_v49 = vld [vmem:[%s7108_s1 + $0xd8] sm:$0xff] }
 0x3c6   :  { %4308 = vmatpush.msra.mxu3 %v4231_v56  ;;  %v4214_v26 = vld [vmem:[%s7108_s1 + $0x158] sm:$0xff]  ;;  %4269 = vmatpush.msra.mxu1 %v4198_v49  ;;  %v4209_v56 = vld [vmem:[%s7108_s1 + $0x130] sm:$0xff] }
 0x3c7   :  { %v3847_v36 = vpop.permute.xlu1 %3846  ;;  %v4039_v6 = vsel %vm3898_vm7, %v4038_v0, %v4037_v30  ;;  %v4230_v0 = vld [vmem:[%s7108_s1 + $0x1d8] sm:$0xff]  ;;  %4289 = vmatpush.msra.mxu2 %v4214_v26  ;;  %v4176_v26 = vld [vmem:[%s7108_s1 + $0x28] sm:$0xff] }
 0x3c8   :  { %v4133_v17 = vperm.slane %v3847_v36, %v6139_v2  ;;  %v4181_v36 = vld [vmem:[%s7108_s1 + $0x50] sm:$0xff]  ;;  %4309 = vmatpush.msra.mxu3 %v4230_v0  ;;  %v4192_v0 = vld [vmem:[%s7108_s1 + $0xa8] sm:$0xff] }
 0x3ca   :  { %v4134_v46 = vsel %vm3902_vm8, %v4133_v17, %v4132_v18  ;;  %v6757_v51 = vpop.permute.xlu2 %3705  ;;  %v4197_v17 = vld [vmem:[%s7108_s1 + $0xd0] sm:$0xff] }
 0x3cb   :  { %4270 = vmatpush.msra.mxu1 %v4197_v17  ;;  %v4208_v17 = vld [vmem:[%s7108_s1 + $0x128] sm:$0xff] }
 0x3cd   :  { %v3850_v34 = vpop.permute.xlu0 %3849 }
 0x3ce   :  { %v4135_v39 = vperm.slane %v3850_v34, %v6143_v52  ;;  %v4229_v34 = vld [vmem:[%s7108_s1 + $0x1d0] sm:$0xff] }
 0x3cf   :  { %v3703_v28 = vpop.permute.xlu1 %3702  ;;  %4310 = vmatpush.msra.mxu3 %v4229_v34  ;;  %v4191_v34 = vld [vmem:[%s7108_s1 + $0xa0] sm:$0xff] }
 0x3d0   :  { %v4040_v21 = vperm.slane %v3703_v28, %v6139_v2  ;;  %v4136_v15 = vsel %vm3906_vm9, %v4135_v39, %v4134_v46  ;;  %v4213_v46 = vld [vmem:[%s7108_s1 + $0x150] sm:$0xff]  ;;  %v4180_v39 = vld [vmem:[%s7108_s1 + $0x48] sm:$0xff] }
 0x3d1   :  { %v4196_v28 = vld [vmem:[%s7108_s1 + $0xc8] sm:$0xff]  ;;  %4290 = vmatpush.msra.mxu2 %v4213_v46  ;;  %v4175_v46 = vld [vmem:[%s7108_s1 + $0x20] sm:$0xff] }
 0x3d2   :  { %v6763_v24 = vsel %vm3902_vm8, %v4040_v21, %v4039_v6  ;;  %v6765_v20 = vpop.permute.xlu2 %3855  ;;  %4271 = vmatpush.msra.mxu1 %v4196_v28  ;;  %v4207_v28 = vld [vmem:[%s7108_s1 + $0x120] sm:$0xff] }
 0x3d4   :  { %4272 = vmatpush.msra.mxu1 %v4195_v1  ;;  %v4188_v1 = vld [vmem:[%s7108_s1 + $0x88] sm:$0xff] }
 0x3d5   :  { %v3757_v30 = vpop.permute.xlu0 %3756 }
 0x3d6   :  { %v4075_v13 = vperm.slane %v3757_v30, %v6182_v41  ;;  %v4228_v30 = vld [vmem:[%s7108_s1 + $0x1c8] sm:$0xff]  ;;  %4273 = vmatpush.msra.mxu1 %v4194_v43  ;;  %v4171_v43 = vld [vmem:[%s7108_s1] sm:$0xff] }
 0x3d7   :  { %v3853_v4 = vpop.permute.xlu1 %3852  ;;  %4311 = vmatpush.msra.mxu3 %v4228_v30 }
 0x3d8   :  { %v4137_v55 = vperm.slane %v3853_v4, %v6182_v41  ;;  %v6770_v40 = vsel %vm3910_vm10, %v4075_v13, %v4074_v37  ;;  %v4184_v37 = vld [vmem:[%s7108_s1 + $0x68] sm:$0xff] }
 0x3d9   :  { %4247 = vmatpush.msra.mxu0 %v4184_v37  ;;  %v4178_v37 = vld [vmem:[%s7108_s1 + $0x38] sm:$0xff]  ;;  %4312 = vmatpush.msra.mxu3 %v4227_v57  ;;  %v4220_v57 = vld [vmem:[%s7108_s1 + $0x188] sm:$0xff] }
 0x3da   :  { %v6773_v58 = vsel %vm3910_vm10, %v4137_v55, %v4136_v15  ;;  %v6775_v2 = vpop.permute.xlu2 %3762  ;;  %v4212_v15 = vld [vmem:[%s7108_s1 + $0x148] sm:$0xff] }
 0x3db   :  { %4248 = vmatpush.msra.mxu0 %v4183_v50  ;;  %v4079_v13 = vperm.slane %v6775_v2, %v6179_v31  ;;  %4291 = vmatpush.msra.mxu2 %v4212_v15  ;;  %v4179_v2 = vld [vmem:[%s7108_s1 + $0x40] sm:$0xff]  ;;  %v4226_v50 = vld [vmem:[%s7108_s1 + $0x1b8] sm:$0xff]  ;;  %v4042_v15 = vperm.slane %v6757_v51, %v6143_v52 }
 0x3dc   :  { %4313 = vmatpush.msra.mxu3 %v4226_v50  ;;  %v4206_v52 = vld [vmem:[%s7108_s1 + $0x118] sm:$0xff] }
 0x3dd   :  { %v6777_v59 = vpop.permute.xlu0 %3663  ;;  %4249 = vmatpush.msra.mxu0 %v4182_v27  ;;  %v4225_v27 = vld [vmem:[%s7108_s1 + $0x1b0] sm:$0xff]  ;;  %v4222_v51 = vld [vmem:[%s7108_s1 + $0x198] sm:$0xff] }
 0x3de   :  { %4314 = vmatpush.msra.mxu3 %v4225_v27 }
 0x3df   :  { %v6779_v60 = vpop.permute.xlu1 %3759  ;;  %4250 = vmatpush.msra.mxu0 %v4181_v36 }
 0x3e0   :  { %v4077_v21 = vperm.slane %v6779_v60, %v6173_v53 }
 0x3e1   :  { %4251 = vmatpush.msra.mxu0 %v4180_v39 }
 0x3e2   :  { %v6781_v25 = vpop.permute.xlu2 %3669  ;;  %v4078_v55 = vsel %vm3914_vm11, %v4077_v21, %v6770_v40  ;;  %v4211_v40 = vld [vmem:[%s7108_s1 + $0x140] sm:$0xff] }
 0x3e3   :  { %v4080_v8 = vsel %vm3918_vm12, %v4079_v13, %v4078_v55  ;;  %4252 = vmatpush.msra.mxu0 %v4179_v2  ;;  %4292 = vmatpush.msra.mxu2 %v4211_v40  ;;  %v4223_v21 = vld [vmem:[%s7108_s1 + $0x1a0] sm:$0xff]  ;;  %v4174_v13 = vld [vmem:[%s7108_s1 + $0x18] sm:$0xff]  ;;  %v4043_v2 = vsel %vm3906_vm9, %v4042_v15, %v6763_v24  ;;  %v4204_v24 = vld [vmem:[%s7108_s1 + $0x108] sm:$0xff] }
 0x3e5   :  { %v6783_v61 = vpop.permute.xlu0 %3807  ;;  %4253 = vmatpush.msra.mxu0 %v4178_v37  ;;  %4293 = vmatpush.msra.mxu2 %v4210_v9 }
 0x3e6   :  { %v4108_v30 = vperm.slane %v6783_v61, %v6173_v53  ;;  %v4139_v61 = vperm.slane %v6765_v20, %v6173_v53  ;;  %v4205_v20 = vld [vmem:[%s7108_s1 + $0x110] sm:$0xff] }
 0x3e7   :  { %v6785_v29 = vpop.permute.xlu1 %3666  ;;  %4254 = vmatpush.msra.mxu0 %v4177_v44  ;;  %4294 = vmatpush.msra.mxu2 %v4209_v56 }
 0x3e8   :  { %v4140_v37 = vsel %vm3914_vm11, %v4139_v61, %v6773_v58  ;;  %v4019_v58 = vperm.slane %v6781_v25, %v6208_v48 }
 0x3e9   :  { %4255 = vmatpush.msra.mxu0 %v4176_v26  ;;  %4295 = vmatpush.msra.mxu2 %v4208_v17 }
 0x3ea   :  { %v6787_v62 = vpop.permute.xlu2 %3813 }
 0x3eb   :  { %4256 = vmatpush.msra.mxu0 %v4175_v46  ;;  %4296 = vmatpush.msra.mxu2 %v4207_v28 }
 0x3ed   :  { %v6789_v63 = vpop.permute.xlu0 %3708  ;;  %4257 = vmatpush.msra.mxu0 %v4174_v13  ;;  %4297 = vmatpush.msra.mxu2 %v4206_v52 }
 0x3ef   :  { %v6791_v22 = vpop.permute.xlu1 %3810  ;;  %4298 = vmatpush.msra.mxu2 %v4205_v20 }
 0x3f0   :  { %v4110_v55 = vperm.slane %v6791_v22, %v6179_v31  ;;  %v4173_v22 = vld [vmem:[%s7108_s1 + $0x10] sm:$0xff] }
 0x3f1   :  { %4258 = vmatpush.msra.mxu0 %v4173_v22  ;;  %4299 = vmatpush.msra.mxu2 %v4204_v24 }
 0x3f2   :  { %v6793_v7 = vpop.permute.xlu2 %3714 }
 0x3f5   :  { %v6822_v5 = vpop.permute.xlu0 %3858 }
 0x3f7   :  { %v6833_v14 = vpop.permute.xlu1 %3711 }
 0x3fa   :  { %v6835_v19 = vpop.permute.xlu2 %3864 }
 0x3fd   :  { %v3766_v18 = vpop.permute.xlu0 %3765 }
 0x3fe   :  { %v4081_v60 = vperm.slane %v3766_v18, %v6208_v48  ;;  %v4193_v18 = vld [vmem:[%s7108_s1 + $0xb0] sm:$0xff] }
 0x3ff   :  { %v6864_v6 = vpop.permute.xlu1 %3861  ;;  %4274 = vmatpush.msra.mxu1 %v4193_v18  ;;  %v4048_v18 = vperm.slane %v6793_v7, %v6179_v31 }
 0x400   :  { %v4082_v23 = vsel %vm3922_vm13, %v4081_v60, %v4080_v8  ;;  %v4015_v60 = vperm.slane %v6777_v59, %v6173_v53  ;;  %v4221_v59 = vld [vmem:[%s7108_s1 + $0x190] sm:$0xff]  ;;  %v4109_v8 = vsel %vm3914_vm11, %v4108_v30, %v6751_v32  ;;  %v4044_v32 = vperm.slane %v6789_v63, %v6182_v41 }
 0x401   :  { %4275 = vmatpush.msra.mxu1 %v4192_v0  ;;  %v4111_v40 = vsel %vm3918_vm12, %v4110_v55, %v4109_v8  ;;  %v4046_v63 = vperm.slane %v6833_v14, %v6173_v53  ;;  %v4203_v53 = vld [vmem:[%s7108_s1 + $0x100] sm:$0xff] }
 0x402   :  { %v3772_v4 = vpop.permute.xlu2 %3771  ;;  %v4016_v41 = vsel %vm3914_vm11, %v4015_v60, %v6741_v10  ;;  %v4141_v10 = vperm.slane %v6822_v5, %v6179_v31  ;;  %v4219_v14 = vld [vmem:[%s7108_s1 + $0x180] sm:$0xff]  ;;  %v4045_v5 = vsel %vm3910_vm10, %v4044_v32, %v4043_v2  ;;  %4300 = vmatpush.msra.mxu2 %v4203_v53 }
 0x403   :  { %v4085_v47 = vperm.slane %v3772_v4, %v6334_v12  ;;  %v4190_v4 = vld [vmem:[%s7108_s1 + $0x98] sm:$0xff]  ;;  %4276 = vmatpush.msra.mxu1 %v4191_v34  ;;  %v4047_v27 = vsel %vm3914_vm11, %v4046_v63, %v4045_v5 }
 0x405   :  { %v6894_v54 = vpop.permute.xlu0 %3672  ;;  %4277 = vmatpush.msra.mxu1 %v4190_v4 }
 0x407   :  { %v3769_v42 = vpop.permute.xlu1 %3768 }
 0x408   :  { %v4083_v38 = vperm.slane %v3769_v42, %v6203_v35  ;;  %v4189_v42 = vld [vmem:[%s7108_s1 + $0x90] sm:$0xff] }
 0x409   :  { %4278 = vmatpush.msra.mxu1 %v4189_v42 }
 0x40a   :  { %v4084_v33 = vsel %vm3926_vm14, %v4083_v38, %v4082_v23  ;;  %v4112_v38 = vperm.slane %v6787_v62, %v6208_v48  ;;  %v3721_v46 = vpop.permute.xlu2 %3720 }
 0x40b   :  { %v4086_v3 = vsel %vm3930_vm15, %v4085_v47, %v4084_v33  ;;  %v4017_v47 = vperm.slane %v6785_v29, %v6179_v31  ;;  %v4172_v29 = vld [vmem:[%s7108_s1 + $0x8] sm:$0xff]  ;;  %v4187_v33 = vld [vmem:[%s7108_s1 + $0x80] sm:$0xff]  ;;  %4279 = vmatpush.msra.mxu1 %v4188_v1  ;;  %v4021_v31 = vperm.slane %v6894_v54, %v6203_v35 }
 0x40c   :  { %v6940_v49 = vsel %vm4149_vm0, %v4086_v3, %v6346_v16  ;;  %v4224_v16 = vld [vmem:[%s7108_s1 + $0x1a8] sm:$0xff]  ;;  %4259 = vmatpush.msra.mxu0 %v4172_v29  ;;  %v4113_v44 = vsel %vm3922_vm13, %v4112_v38, %v4111_v40  ;;  %v4143_v3 = vperm.slane %v6864_v6, %v6208_v48  ;;  %v4142_v6 = vsel %vm3918_vm12, %v4141_v10, %v4140_v37  ;;  %v4326_v1 = vld [vmem:[%s7109_s2] sm:$0xff] }
 0x40d   :  { %v6948_v36 = vpop.permute.xlu0 %3816  ;;  %4315 = vmatpush.msra.mxu3 %v4224_v16  ;;  %v4018_v9 = vsel %vm3918_vm12, %v4017_v47, %v4016_v41  ;;  %4280 = vmatpush.msra.mxu1 %v4187_v33  ;;  %v4327_v29 = vld [vmem:[%s7109_s2 + $0x8] sm:$0xff] }
 0x40e   :  { %v4114_v62 = vperm.slane %v6948_v36, %v6203_v35  ;;  %4260 = vmatpush.msra.mxu0 %v4171_v43  ;;  %v4145_v36 = vperm.slane %v6835_v19, %v6203_v35  ;;  %v4144_v17 = vsel %vm3922_vm13, %v4143_v3, %v4142_v6  ;;  %v4020_v28 = vsel %vm3922_vm13, %v4019_v58, %v4018_v9 }
 0x40f   :  { %v6962_v39 = vpop.permute.xlu1 %3675  ;;  %4316 = vmatpush.msra.mxu3 %v4223_v21  ;;  %v4022_v15 = vsel %vm3926_vm14, %v4021_v31, %v4020_v28 }
 0x410   :  { %v4115_v56 = vsel %vm3926_vm14, %v4114_v62, %v4113_v44  ;;  %v4023_v16 = vperm.slane %v6962_v39, %v6334_v12  ;;  %v4146_v54 = vsel %vm3926_vm14, %v4145_v36, %v4144_v17 }
 0x411   :  { %4317 = vmatpush.msra.mxu3 %v4222_v51  ;;  %v4154_v51 = vrot.slane %v6940_v49, 6  ;;  %v4329_v49 = vld [vmem:[%s7109_s2 + $0x18] sm:$0xff] }
 0x412   :  { %v4024_v13 = vsel %vm3930_vm15, %v4023_v16, %v4022_v15  ;;  %4346 = vmatpush.msrb.mxu0 %v4329_v49 }
 0x413   :  { %4318 = vmatpush.msra.mxu3 %v4221_v59 }
 0x415   :  { %v3718_v23 = vpop.permute.xlu0 %3717  ;;  %4319 = vmatpush.msra.mxu3 %v4220_v57 }
 0x416   :  { %v4050_v0 = vperm.slane %v3718_v23, %v6208_v48  ;;  %v4049_v48 = vsel %vm3918_vm12, %v4048_v18, %v4047_v27 }
 0x417   :  { %v3820_v50 = vpop.permute.xlu1 %3819  ;;  %4320 = vmatpush.msra.mxu3 %v4219_v14 }
 0x418   :  { %v4116_v25 = vperm.slane %v3820_v50, %v6334_v12  ;;  %v4051_v21 = vsel %vm3922_vm13, %v4050_v0, %v4049_v48 }
 0x41a   :  { %v4117_v26 = vsel %vm3930_vm15, %v4116_v25, %v4115_v56 }
 0x41b   :  { %v4152_v7 = vsel %vm4149_vm0, %v4117_v26, %v6507_v11  ;;  %v4052_v11 = vperm.slane %v3721_v46, %v6203_v35 }
 0x41c   :  { %v4155_v61 = vrot.slane %v4152_v7, 4 }
 0x41d   :  { %v3868_v34 = vpop.permute.xlu0 %3867  ;;  %v4053_v55 = vsel %vm3926_vm14, %v4052_v11, %v4051_v21 }
 0x41e   :  { %v4147_v19 = vperm.slane %v3868_v34, %v6334_v12 }
 0x41f   :  { %v3724_v30 = vpop.permute.xlu1 %3723 }
 0x420   :  { %v4054_v39 = vperm.slane %v3724_v30, %v6334_v12  ;;  %v4148_v4 = vsel %vm3930_vm15, %v4147_v19, %v4146_v54 }
 0x421   :  { %v4153_v52 = vsel %vm4149_vm0, %v4148_v4, %v4024_v13 }
 0x422   :  { %v4055_v60 = vsel %vm3930_vm15, %v4054_v39, %v4053_v55  ;;  %v4156_v35 = vrot.slane %v4153_v52, 2 }
 0x423   :  { %v4150_v22 = vsel %vm4149_vm0, %v4055_v60, %v6352_v45  ;;  %v4328_v45 = vld [vmem:[%s7109_s2 + $0x10] sm:$0xff]  ;;  %s4747_s2 = smov [#allocation3]  }
 0x424   :  { %v4158_v42 = vsel %vm4157_vm1, %v4150_v22, %v4154_v51  ;;  %v4160_v47 = vsel %vm4159_vm2, %v4155_v61, %v4156_v35  ;;  %4347 = vmatpush.msrb.mxu0 %v4328_v45  ;;  %s4372_s27 = sshll.u32 %s4747_s2, 4  ;;  %s4373_s27 = int_to_ptr.vmem [resolvable:$true] %s4372_s27 }
 0x425   :  { %v4162_v12 = vsel %vm4161_vm3, %v4158_v42, %v4160_v47 }
 0x426   :  { %v4170_v20 = vmul.f32 0.015625, %v4162_v12  ;;  %4348 = vmatpush.msrb.mxu0 %v4327_v29 }
 0x428   :  { %4236 = vst [vmem:[#allocation1] ss:$4 sm:$0xff] %v4170_v20  ;;  %4349 = vmatpush.msrb.mxu0 %v4326_v1 }
 0x42f   :  { %v4237_v59 = vld.sshfl [vmem:[#allocation1] sm:$0xff pattern:$0x73625140]  ;;  %v4238_v8 = vld.sshfl [vmem:[#allocation1 + $0x8] sm:$0xff pattern:$0x73625140] }
 0x430   :  { %4261 = vmatmul.f32.vlgmr.msra.gmra.mxu0 %v4237_v59  ;;  %4281 = vmatmul.f32.vlgmr.msra.gmra.mxu1 %v4238_v8  ;;  %v4239_v38 = vld.sshfl [vmem:[#allocation1 + $0x10] sm:$0xff pattern:$0x73625140]  ;;  %v4240_v2 = vld.sshfl [vmem:[#allocation1 + $0x18] sm:$0xff pattern:$0x73625140] }
 0x431   :  { %4301 = vmatmul.f32.vlgmr.msra.gmra.mxu2 %v4239_v38  ;;  %4321 = vmatmul.f32.vlgmr.msra.gmra.mxu3 %v4240_v2 }
 0x4ad   :  { %v4262_v40 = vpop.f32.mrf.mxu0  ;;  %v4282_v32 = vpop.f32.mrf.mxu1 }
 0x4ae   :  { %v4283_v62 = vadd.f32 %v4282_v32, %v4262_v40 }
 0x4b4   :  { %v4302_v23 = vpop.f32.mrf.mxu2  ;;  %v4322_v57 = vpop.f32.mrf.mxu3 }
 0x4b5   :  { %v4303_v24 = vadd.f32 %v4302_v23, %v4283_v62 }
 0x4b7   :  { %v4323_v37 = vadd.f32 %v4322_v57, %v4303_v24 }
 0x4b9   :  { %v4325_v41 = vmax.f32 %v4323_v37, 0.0 }
 0x4bb   :  { %4383 = vmatmul.msk.f32.vlgmr.msrb.gmra.mxu0 %vm4330_vm4, %v4325_v41 }
 0x538   :  { %v4351_v63 = vpop.f32.mrf.mxu0 }
 0x539   :  { %v4355_v43 = vsel %vm4354_vm5, %v4351_v63, -inf }
 0x53a   :  { %4356 = vmax.xlane.f32.xlu0 %v4355_v43 }
 0x5ad   :  { %v4357_v33 = vpop.xlane.xlu0 %4356 }
 0x5ae   :  { %v4358_v9 = vsub.f32 %v4351_v63, %v4357_v33 }
 0x5b0   :  { %v4359_v58 = vmul.f32 1.442695, %v4358_v9 }
 0x5b2   :  { %4712 = vpow2.f32 %v4359_v58 }
 0x5b8   :  { %v4713_v10 = vpop.eup %4712 }
 0x5b9   :  { %v4361_v50 = vsel %vm4354_vm5, %v4713_v10, 0.0 }
 0x5ba   :  { %4362 = vadd.xlane.f32.xlu2 %v4361_v50 }
 0x62d   :  { %v4363_v53 = vpop.xlane.xlu2 %4362 }
 0x62e   :  { %4714 = vrcp.f32 %v4363_v53 }
 0x634   :  { %v4715_v14 = vpop.eup %4714 }
 0x635   :  { %v4365_v44 = vmul.f32 %v4715_v14, %v4713_v10 }
 0x637   :  { %4366 = vst.msk [vmem:[#allocation3] sm:$0x3] %vm4354_vm5, %v4365_v44 }
 0x638   :  { %4377 = dma.vmem_to_hbm [thread:$0]  %s4373_s27, 32, %s4375_s30, [#allocation4]  }
 0x639   :  { %4740 = dma.done.wait [#allocation4], 32  }
 0x63a   :  { %4741 = vsyncadd [#allocation4], 4294967264 }
 0x63b   :  { %4382 = vsyncpa [#allocation4], 1 }

</bundles_post_ra>
